<compile_context>
chip_gen: v7x
topology: tpu7x:2x2x1
jax: 0.10.0
libtpu: 0.0.40
codegen_flags: <defaults>
</compile_context>

<pallas_src>
import jax
import jax.numpy as jnp
from jax.experimental import pallas as pl
from jax.experimental.pallas import tpu as pltpu


def dqr_nc2_kernel(x_ref, w1_ref, b1_ref, w2l_ref, b2l_ref,
                   w2ft_ref, b2f_ref, tri_ref, out_ref):
    f32 = jnp.float32
    bf16 = jnp.bfloat16
    H = w2l_ref.shape[0]

    # ---- fused first layer of both branches: one single-pass bf16 MXU matmul
    x = x_ref[...].astype(bf16)                                 # VPU cast, hidden under MXU
    h = jnp.dot(x, w1_ref[...], preferred_element_type=f32)     # (Bt, 2H) f32
    h = jnp.maximum(h + b1_ref[...], 0.0)
    h_l = h[:, :H]                                              # logit hidden
    h_f = h[:, H:]                                              # factor hidden

    # ---- logit branch second layer: bf16 hi/lo split of the activations
    #      (2 single-pass bf16 matmuls ~ f32 accuracy, cheaper than f32 MXU)
    w2l = w2l_ref[...]                                          # bf16, resident
    hl_hi = h_l.astype(bf16)
    hl_lo = (h_l - hl_hi.astype(f32)).astype(bf16)
    z = (jnp.dot(hl_hi, w2l, preferred_element_type=f32)
         + jnp.dot(hl_lo, w2l, preferred_element_type=f32)
         + b2l_ref[...])

    # ---- softmax(dim=1): EUP exp, approx reciprocal + one Newton step
    z = z - jnp.max(z, axis=1, keepdims=True)
    e = jnp.exp(z)
    s = jnp.sum(e, axis=1, keepdims=True)
    r = pl.reciprocal(s, approx=True)
    r = r * (2.0 - s * r)                  # Newton step -> ~f32 accuracy
    p = e * r                              # softmax probabilities, f32

    # ---- cumsum(dim=1) as upper-triangular matmul (tri exact in bf16);
    #      same hi/lo split on p to keep ~f32 accuracy with bf16 MXU passes
    tri = tri_ref[...]
    p_hi = p.astype(bf16)
    p_lo = (p - p_hi.astype(f32)).astype(bf16)
    logits = (jnp.dot(p_hi, tri, preferred_element_type=f32)
              + jnp.dot(p_lo, tri, preferred_element_type=f32))

    # ---- factor head: only 2 output columns are ever used -> keep it off the
    #      MXU (VPU multiply + XLU lane reduction, f32 throughout)
    scale = jnp.sum(h_f * w2ft_ref[0:1, :], axis=1, keepdims=True) + b2f_ref[:, 0:1]
    shift = jnp.sum(h_f * w2ft_ref[1:2, :], axis=1, keepdims=True) + b2f_ref[:, 1:2]
    scale = jnp.maximum(scale, 0.0)        # activation == 'ReLU' (module default)
    # TODO(synk): 'ELU' / 'log' activation variants of the module not wired up.

    out_ref[...] = (logits * scale + shift).astype(out_ref.dtype)


def prepare_params(params):
    """One-time packing / trimming / quantization of the module parameters.

    Call once at parameter-load time; `dqr_nc2_forward` consumes the result,
    so no per-call HBM repacking / casting happens on the forward path.
    """
    (w1l, b1l, w2l, b2l, w1f, b1f, w2f, b2f) = params
    bf = jnp.bfloat16
    Dout = w2l.shape[1]
    w1cat = jnp.concatenate([w1l, w1f], axis=1).astype(bf)       # (D, 2H) bf16
    b1cat = jnp.concatenate([b1l, b1f], axis=1)                  # (1, 2H) f32
    w2l_q = w2l.astype(bf)                                       # (H, Dout) bf16
    # Only columns 0 (scale) and 1 (shift) of the factor head are used; keep
    # them transposed (2, H), bf16-rounded but stored f32 for the VPU path.
    w2ft = w2f[:, :2].T.astype(bf).astype(jnp.float32)           # (2, H) f32
    b2f2 = b2f[:, :2]                                            # (1, 2) f32
    # Upper-triangular (incl. diagonal) ones: p @ tri == cumsum(p, dim=1)
    tri = jnp.triu(jnp.ones((Dout, Dout), bf))                   # exact in bf16
    return (w1cat, b1cat, w2l_q, b2l, w2ft, b2f2, tri)


def dqr_nc2_forward(x, prepared, *, block_b=256):
    (w1cat, b1cat, w2l_q, b2l, w2ft, b2f2, tri) = prepared
    B, D = x.shape
    H2 = w1cat.shape[1]
    H = H2 // 2
    Dout = w2l_q.shape[1]
    if B % block_b:
        block_b = B                       # small batches: single grid step

    grid = (B // block_b,)
    return pl.pallas_call(
        dqr_nc2_kernel,
        out_shape=jax.ShapeDtypeStruct((B, Dout), jnp.float32),
        grid=grid,
        in_specs=[
            pl.BlockSpec((block_b, D), lambda i: (i, 0)),      # x tile (f32)
            pl.BlockSpec((D, H2), lambda i: (0, 0)),           # resident packed L1 weight
            pl.BlockSpec((1, H2), lambda i: (0, 0)),
            pl.BlockSpec((H, Dout), lambda i: (0, 0)),         # logit L2 weight (bf16)
            pl.BlockSpec((1, Dout), lambda i: (0, 0)),
            pl.BlockSpec((2, H), lambda i: (0, 0)),            # factor-head cols (transposed)
            pl.BlockSpec((1, 2), lambda i: (0, 0)),
            pl.BlockSpec((Dout, Dout), lambda i: (0, 0)),      # cumsum tri (constant)
        ],
        out_specs=pl.BlockSpec((block_b, Dout), lambda i: (i, 0)),
        compiler_params=pltpu.CompilerParams(
            dimension_semantics=("parallel",)),
    )(x, w1cat, b1cat, w2l_q, b2l, w2ft, b2f2, tri)


def reference_forward(x, params):
    """Pure-JAX reference mirroring the kernel's bf16 weight/input quantization."""
    (w1l, b1l, w2l, b2l, w1f, b1f, w2f, b2f) = params
    bf = jnp.bfloat16
    hi = jax.lax.Precision.HIGHEST
    xq = x.astype(bf)
    h_l = jnp.maximum(
        jnp.dot(xq, w1l.astype(bf), preferred_element_type=jnp.float32) + b1l, 0.0)
    h_f = jnp.maximum(
        jnp.dot(xq, w1f.astype(bf), preferred_element_type=jnp.float32) + b1f, 0.0)
    z = jnp.dot(h_l, w2l.astype(bf).astype(jnp.float32), precision=hi) + b2l
    p = jax.nn.softmax(z, axis=1)
    logits = jnp.cumsum(p, axis=1)
    f = jnp.dot(h_f, w2f.astype(bf).astype(jnp.float32), precision=hi) + b2f
    scale = jnp.maximum(f[:, 0:1], 0.0)
    shift = f[:, 1:2]
    return logits * scale + shift


def init_params(key, d_in, d_hid, d_out):
    # Deterministic synthetic init (PyTorch-Linear-style uniform bounds), f32.
    ks = jax.random.split(key, 8)

    def lin(kw, kb, fan_in, fan_out):
        bound = 1.0 / jnp.sqrt(fan_in)
        w = jax.random.uniform(kw, (fan_in, fan_out), jnp.float32, -bound, bound)
        b = jax.random.uniform(kb, (1, fan_out), jnp.float32, -bound, bound)
        return w, b

    w1l, b1l = lin(ks[0], ks[1], d_in, d_hid)
    w2l, b2l = lin(ks[2], ks[3], d_hid, d_out)
    w1f, b1f = lin(ks[4], ks[5], d_in, d_hid)
    w2f, b2f = lin(ks[6], ks[7], d_hid, d_out)
    return (w1l, b1l, w2l, b2l, w1f, b1f, w2f, b2f)


if __name__ == "__main__":
    key = jax.random.PRNGKey(0)
    kx, kp = jax.random.split(key)

    # Module default widths [256, 256, 256]; 2 grid steps (one per v7x core).
    B, D, H, Dout = 512, 256, 256, 256
    x = jax.random.normal(kx, (B, D), dtype=jnp.float32)
    params = init_params(kp, D, H, Dout)

    prepared = prepare_params(params)          # one-time prep, off the hot path
    out = jax.block_until_ready(dqr_nc2_forward(x, prepared, block_b=256))

    ref = reference_forward(x, params)
    assert out.shape == (B, Dout)
    max_err = float(jnp.max(jnp.abs(out - ref)))
    assert jnp.allclose(out, ref, atol=5e-4, rtol=5e-4), max_err

    print("KERNEL_OK")
</pallas_src>

<mosaic_0001>
module attributes {stable_mosaic.version = 11 : i64} {
  func.func @dqr_nc2_kernel(%arg0: i32, %arg1: memref<256x256xf32, #tpu.memory_space<vmem>>, %arg2: memref<256x512xbf16, #tpu.memory_space<vmem>>, %arg3: memref<1x512xf32, #tpu.memory_space<vmem>>, %arg4: memref<256x256xbf16, #tpu.memory_space<vmem>>, %arg5: memref<1x256xf32, #tpu.memory_space<vmem>>, %arg6: memref<2x256xf32, #tpu.memory_space<vmem>>, %arg7: memref<1x2xf32, #tpu.memory_space<vmem>>, %arg8: memref<256x256xbf16, #tpu.memory_space<vmem>>, %arg9: memref<256x256xf32, #tpu.memory_space<vmem>>) attributes {dimension_semantics = [#tpu.dimension_semantics<parallel>], iteration_bounds = array<i64: 2>, scalar_prefetch = 0 : i64, scratch_operands = 0 : i64, tpu.core_type = #tpu.core_type<tc>, window_params = [{transform_indices = @transform_0, window_bounds = array<i64: 256, 256>}, {pipeline_mode = #tpu.pipeline_mode<synchronous>, transform_indices = @transform_1, window_bounds = array<i64: 256, 512>}, {pipeline_mode = #tpu.pipeline_mode<synchronous>, transform_indices = @transform_2, window_bounds = array<i64: 1, 512>}, {pipeline_mode = #tpu.pipeline_mode<synchronous>, transform_indices = @transform_3, window_bounds = array<i64: 256, 256>}, {pipeline_mode = #tpu.pipeline_mode<synchronous>, transform_indices = @transform_4, window_bounds = array<i64: 1, 256>}, {pipeline_mode = #tpu.pipeline_mode<synchronous>, transform_indices = @transform_5, window_bounds = array<i64: 2, 256>}, {pipeline_mode = #tpu.pipeline_mode<synchronous>, transform_indices = @transform_6, window_bounds = array<i64: 1, 2>}, {pipeline_mode = #tpu.pipeline_mode<synchronous>, transform_indices = @transform_7, window_bounds = array<i64: 256, 256>}, {transform_indices = @transform_8, window_bounds = array<i64: 256, 256>}]} {
    %c0 = arith.constant 0 : index
    %c0_0 = arith.constant 0 : index
    %0 = vector.load %arg1[%c0, %c0_0] : memref<256x256xf32, #tpu.memory_space<vmem>>, vector<256x256xf32>
    %1 = arith.truncf %0 : vector<256x256xf32> to vector<256x256xbf16>
    %c0_1 = arith.constant 0 : index
    %c0_2 = arith.constant 0 : index
    %2 = vector.load %arg2[%c0_1, %c0_2] : memref<256x512xbf16, #tpu.memory_space<vmem>>, vector<256x512xbf16>
    %cst = arith.constant dense<0.000000e+00> : vector<256x512xf32>
    %3 = tpu.matmul %1, %2, %cst {dimension_numbers = #tpu.dot_dimension_numbers<[1], [0], [0], [1], [0, 0, 1, 1], [], []>} : vector<256x256xbf16>, vector<256x512xbf16>, vector<256x512xf32> -> vector<256x512xf32>
    %c0_3 = arith.constant 0 : index
    %c0_4 = arith.constant 0 : index
    %4 = vector.load %arg3[%c0_3, %c0_4] : memref<1x512xf32, #tpu.memory_space<vmem>>, vector<1x512xf32>
    %5 = vector.broadcast %4 : vector<1x512xf32> to vector<256x512xf32>
    %6 = arith.addf %3, %5 : vector<256x512xf32>
    %cst_5 = arith.constant 0.000000e+00 : f32
    %7 = vector.broadcast %cst_5 : f32 to vector<256x512xf32>
    %8 = arith.maximumf %6, %7 : vector<256x512xf32>
    %9 = vector.extract_strided_slice %8 {offsets = [0, 0], sizes = [256, 256], strides = [1, 1]} : vector<256x512xf32> to vector<256x256xf32>
    %10 = vector.extract_strided_slice %8 {offsets = [0, 256], sizes = [256, 256], strides = [1, 1]} : vector<256x512xf32> to vector<256x256xf32>
    %c0_6 = arith.constant 0 : index
    %c0_7 = arith.constant 0 : index
    %11 = vector.load %arg4[%c0_6, %c0_7] : memref<256x256xbf16, #tpu.memory_space<vmem>>, vector<256x256xbf16>
    %12 = arith.truncf %9 : vector<256x256xf32> to vector<256x256xbf16>
    %13 = arith.extf %12 : vector<256x256xbf16> to vector<256x256xf32>
    %14 = arith.subf %9, %13 : vector<256x256xf32>
    %15 = arith.truncf %14 : vector<256x256xf32> to vector<256x256xbf16>
    %cst_8 = arith.constant dense<0.000000e+00> : vector<256x256xf32>
    %16 = tpu.matmul %12, %11, %cst_8 {dimension_numbers = #tpu.dot_dimension_numbers<[1], [0], [0], [1], [0, 0, 1, 1], [], []>} : vector<256x256xbf16>, vector<256x256xbf16>, vector<256x256xf32> -> vector<256x256xf32>
    %cst_9 = arith.constant dense<0.000000e+00> : vector<256x256xf32>
    %17 = tpu.matmul %15, %11, %cst_9 {dimension_numbers = #tpu.dot_dimension_numbers<[1], [0], [0], [1], [0, 0, 1, 1], [], []>} : vector<256x256xbf16>, vector<256x256xbf16>, vector<256x256xf32> -> vector<256x256xf32>
    %18 = arith.addf %16, %17 : vector<256x256xf32>
    %c0_10 = arith.constant 0 : index
    %c0_11 = arith.constant 0 : index
    %19 = vector.load %arg5[%c0_10, %c0_11] : memref<1x256xf32, #tpu.memory_space<vmem>>, vector<1x256xf32>
    %20 = vector.broadcast %19 : vector<1x256xf32> to vector<256x256xf32>
    %21 = arith.addf %18, %20 : vector<256x256xf32>
    %cst_12 = arith.constant dense<0xFF800000> : vector<256xf32>
    %22 = vector.multi_reduction <maximumf>, %21, %cst_12 [1] : vector<256x256xf32> to vector<256xf32>
    %23 = vector.shape_cast %22 : vector<256xf32> to vector<256x1xf32>
    %24 = vector.broadcast %23 : vector<256x1xf32> to vector<256x256xf32>
    %25 = arith.subf %21, %24 : vector<256x256xf32>
    %26 = math.exp %25 : vector<256x256xf32>
    %cst_13 = arith.constant dense<0.000000e+00> : vector<256xf32>
    %27 = vector.multi_reduction <add>, %26, %cst_13 [1] : vector<256x256xf32> to vector<256xf32>
    %28 = vector.shape_cast %27 : vector<256xf32> to vector<256x1xf32>
    %29 = tpu.reciprocal %28 {approx = true} : vector<256x1xf32> -> vector<256x1xf32>
    %30 = arith.mulf %28, %29 : vector<256x1xf32>
    %cst_14 = arith.constant 2.000000e+00 : f32
    %31 = vector.broadcast %cst_14 : f32 to vector<256x1xf32>
    %32 = arith.subf %31, %30 : vector<256x1xf32>
    %33 = arith.mulf %29, %32 : vector<256x1xf32>
    %34 = vector.broadcast %33 : vector<256x1xf32> to vector<256x256xf32>
    %35 = arith.mulf %26, %34 : vector<256x256xf32>
    %c0_15 = arith.constant 0 : index
    %c0_16 = arith.constant 0 : index
    %36 = vector.load %arg8[%c0_15, %c0_16] : memref<256x256xbf16, #tpu.memory_space<vmem>>, vector<256x256xbf16>
    %37 = arith.truncf %35 : vector<256x256xf32> to vector<256x256xbf16>
    %38 = arith.extf %37 : vector<256x256xbf16> to vector<256x256xf32>
    %39 = arith.subf %35, %38 : vector<256x256xf32>
    %40 = arith.truncf %39 : vector<256x256xf32> to vector<256x256xbf16>
    %cst_17 = arith.constant dense<0.000000e+00> : vector<256x256xf32>
    %41 = tpu.matmul %37, %36, %cst_17 {dimension_numbers = #tpu.dot_dimension_numbers<[1], [0], [0], [1], [0, 0, 1, 1], [], []>} : vector<256x256xbf16>, vector<256x256xbf16>, vector<256x256xf32> -> vector<256x256xf32>
    %cst_18 = arith.constant dense<0.000000e+00> : vector<256x256xf32>
    %42 = tpu.matmul %40, %36, %cst_18 {dimension_numbers = #tpu.dot_dimension_numbers<[1], [0], [0], [1], [0, 0, 1, 1], [], []>} : vector<256x256xbf16>, vector<256x256xbf16>, vector<256x256xf32> -> vector<256x256xf32>
    %43 = arith.addf %41, %42 : vector<256x256xf32>
    %c0_19 = arith.constant 0 : index
    %c0_20 = arith.constant 0 : index
    %44 = vector.load %arg6[%c0_19, %c0_20] : memref<2x256xf32, #tpu.memory_space<vmem>>, vector<1x256xf32>
    %45 = vector.broadcast %44 : vector<1x256xf32> to vector<256x256xf32>
    %46 = arith.mulf %10, %45 : vector<256x256xf32>
    %cst_21 = arith.constant dense<0.000000e+00> : vector<256xf32>
    %47 = vector.multi_reduction <add>, %46, %cst_21 [1] : vector<256x256xf32> to vector<256xf32>
    %48 = vector.shape_cast %47 : vector<256xf32> to vector<256x1xf32>
    %c0_22 = arith.constant 0 : index
    %c0_23 = arith.constant 0 : index
    %49 = vector.load %arg7[%c0_22, %c0_23] : memref<1x2xf32, #tpu.memory_space<vmem>>, vector<1x1xf32>
    %50 = vector.broadcast %49 : vector<1x1xf32> to vector<256x1xf32>
    %51 = arith.addf %48, %50 : vector<256x1xf32>
    %c1 = arith.constant 1 : index
    %c0_24 = arith.constant 0 : index
    %52 = vector.load %arg6[%c1, %c0_24] : memref<2x256xf32, #tpu.memory_space<vmem>>, vector<1x256xf32>
    %53 = vector.broadcast %52 : vector<1x256xf32> to vector<256x256xf32>
    %54 = arith.mulf %10, %53 : vector<256x256xf32>
    %cst_25 = arith.constant dense<0.000000e+00> : vector<256xf32>
    %55 = vector.multi_reduction <add>, %54, %cst_25 [1] : vector<256x256xf32> to vector<256xf32>
    %56 = vector.shape_cast %55 : vector<256xf32> to vector<256x1xf32>
    %c0_26 = arith.constant 0 : index
    %c1_27 = arith.constant 1 : index
    %57 = vector.load %arg7[%c0_26, %c1_27] : memref<1x2xf32, #tpu.memory_space<vmem>>, vector<1x1xf32>
    %58 = vector.broadcast %57 : vector<1x1xf32> to vector<256x1xf32>
    %59 = arith.addf %56, %58 : vector<256x1xf32>
    %cst_28 = arith.constant 0.000000e+00 : f32
    %60 = vector.broadcast %cst_28 : f32 to vector<256x1xf32>
    %61 = arith.maximumf %51, %60 : vector<256x1xf32>
    %62 = vector.broadcast %61 : vector<256x1xf32> to vector<256x256xf32>
    %63 = arith.mulf %43, %62 : vector<256x256xf32>
    %64 = vector.broadcast %59 : vector<256x1xf32> to vector<256x256xf32>
    %65 = arith.addf %63, %64 : vector<256x256xf32>
    %c0_29 = arith.constant 0 : index
    %c0_30 = arith.constant 0 : index
    %66 = vector.load %arg9[%c0_29, %c0_30] : memref<256x256xf32, #tpu.memory_space<vmem>>, vector<256x256xf32>
    tpu.vector_store %arg9[%c0_29, %c0_30], %65 {strides = array<i32>} : memref<256x256xf32, #tpu.memory_space<vmem>>, vector<256x256xf32>,
    return
  }
  func.func @transform_0(%arg0: i32) -> (i32, i32) {
    %c0_i32 = arith.constant 0 : i32
    %c0_i32_0 = arith.constant 0 : i32
    return %arg0, %c0_i32 : i32, i32
  }
  func.func @transform_1(%arg0: i32) -> (i32, i32) {
    %c0_i32 = arith.constant 0 : i32
    %c0_i32_0 = arith.constant 0 : i32
    %c0_i32_1 = arith.constant 0 : i32
    return %c0_i32, %c0_i32_0 : i32, i32
  }
  func.func @transform_2(%arg0: i32) -> (i32, i32) {
    %c0_i32 = arith.constant 0 : i32
    %c0_i32_0 = arith.constant 0 : i32
    %c0_i32_1 = arith.constant 0 : i32
    return %c0_i32, %c0_i32_0 : i32, i32
  }
  func.func @transform_3(%arg0: i32) -> (i32, i32) {
    %c0_i32 = arith.constant 0 : i32
    %c0_i32_0 = arith.constant 0 : i32
    %c0_i32_1 = arith.constant 0 : i32
    return %c0_i32, %c0_i32_0 : i32, i32
  }
  func.func @transform_4(%arg0: i32) -> (i32, i32) {
    %c0_i32 = arith.constant 0 : i32
    %c0_i32_0 = arith.constant 0 : i32
    %c0_i32_1 = arith.constant 0 : i32
    return %c0_i32, %c0_i32_0 : i32, i32
  }
  func.func @transform_5(%arg0: i32) -> (i32, i32) {
    %c0_i32 = arith.constant 0 : i32
    %c0_i32_0 = arith.constant 0 : i32
    %c0_i32_1 = arith.constant 0 : i32
    return %c0_i32, %c0_i32_0 : i32, i32
  }
  func.func @transform_6(%arg0: i32) -> (i32, i32) {
    %c0_i32 = arith.constant 0 : i32
    %c0_i32_0 = arith.constant 0 : i32
    %c0_i32_1 = arith.constant 0 : i32
    return %c0_i32, %c0_i32_0 : i32, i32
  }
  func.func @transform_7(%arg0: i32) -> (i32, i32) {
    %c0_i32 = arith.constant 0 : i32
    %c0_i32_0 = arith.constant 0 : i32
    %c0_i32_1 = arith.constant 0 : i32
    return %c0_i32, %c0_i32_0 : i32, i32
  }
  func.func @transform_8(%arg0: i32) -> (i32, i32) {
    %c0_i32 = arith.constant 0 : i32
    %c0_i32_0 = arith.constant 0 : i32
    return %arg0, %c0_i32 : i32, i32
  }
}

</mosaic_0001>

<bundles_post_ra>
// kernel: tpu_custom_call.1
= control target key start
LH: loop header
LB: loop body
LE: loop exit
PB: predicated region body
PF: predicated region fallthrough
CT: control target
= control target key end

     0   :  { %s8723_s0 = inlined_call_operand.hbm [shape: f32[512,256], index: 0, kind: input, shape index: {}]   ;;  %s8724_s1 = inlined_call_operand.hbm [shape: bf16[256,512], index: 1, kind: input, shape index: {}]   ;;  %s8725_s2 = inlined_call_operand.vmem [shape: f32[1,512], index: 2, kind: input, shape index: {}]   ;;  %s8726_s3 = inlined_call_operand.hbm [shape: bf16[256,256], index: 3, kind: input, shape index: {}]   ;;  %s8727_s4 = inlined_call_operand.vmem [shape: f32[1,256], index: 4, kind: input, shape index: {}]   ;;  %s8728_s5 = inlined_call_operand.vmem [shape: f32[2,256], index: 5, kind: input, shape index: {}]   ;;  %s8729_s6 = inlined_call_operand.vmem [shape: f32[1,2], index: 6, kind: input, shape index: {}]   ;;  %s8730_s7 = inlined_call_operand.hbm [shape: bf16[256,256], index: 7, kind: input, shape index: {}]   ;;  %s8731_s8 = inlined_call_operand.hbm [shape: f32[512,256], index: 8, kind: output, shape index: {}]  }
   0x1   :  { %8884 = sst [smem:[#allocation137_spill]] %s8724_s1 }
   0x2   :  { %13 = vsyncpa [#allocation3], 0 }
   0x3   :  { %15 = vsyncpa [#allocation3 + $0x1], 0 }
   0x4   :  { %16 = vsyncpa [#allocation6], 0 }
   0x5   :  { %17 = vsyncpa [#allocation9], 0 }
   0x6   :  { %18 = vsyncpa [#allocation4], 0 }
   0x7   :  { %20 = vsyncpa [#allocation4 + $0x1], 0  ;;  %s5693_s27 = smov 0   ;;  %s5695_s28 = smov 0  }
   0x8   :  { %s5697_s29 = smov 0   ;;  %s5699_s30 = smov 0  }
   0x9 LB: > { %8885 = sst [smem:[#allocation15_spill]] %s5621_s27  ;;  %s5714_s9 = sadd.s32 4294967295, %s5633_s30   ;;  %s5633_s30 = sphi %s5699_s30, %s9449_s30   ;;  %s5629_s29 = sphi %s5697_s29, %s9448_s29   ;;  %s5625_s28 = sphi %s5695_s28, %s9447_s28   ;;  %s5621_s27 = sphi %s5693_s27, %s9446_s27  }
   0xa   : > { %s4656_s10 = sadd.s32 4294967294, %s5633_s30   ;;  %p46_p0 = scmp.ne.s32.totalorder %s5625_s28, %s5621_s27 }
   0xb   : > { %p8732_p1 = scmp.eq.s32.totalorder %s5714_s9, 0  ;;  %p223_p3 = scmp.eq.s32.totalorder %s4656_s10, 1 }
   0xc   : > { %p4657_p5 = scmp.ge.s32.totalorder %s5633_s30, 1  ;;  %p230_p7 = scmp.lt.s32.totalorder %s5633_s30, 3 }
   0xd   : > { %p5723_p4 = por %p8732_p1, %p46_p0  ;;  %p5728_p6 = por %p223_p3, %p46_p0 }
   0xe   : > { %p5733_p8 = pnand %p4657_p5, %p230_p7  ;;  %s5635_s14 = smov [#allocation5]  }
   0xf   : > { %s8886_s11 = scalar_select %p5723_p4, 1, 0 }
  0x10   : > { %s8887_s12 = scalar_select %p5728_p6, 1, 0 }
  0x11   : > { %s8889_s13 = scalar_select %p5733_p8, 1, 0 }
  0x12   : > { %8888 = sst [smem:[#allocation16_spill]] %s8887_s12  ;;  %s242_s15 = sshll.u32 %s5635_s14, 4  ;;  %s5737_s15 = int_to_ptr.vmem [resolvable:$true] %s242_s15 }
  0x13   : > { %p4956_p9 = pneg %p5733_p8  ;;  %s5636_s17 = smov [#allocation7]  }
  0x14   : > { %s258_s18 = sshll.u32 %s5636_s17, 4  ;;  %s8891_s1 = sld [smem:[#allocation137_spill]]  ;;  %s5748_s18 = int_to_ptr.vmem [resolvable:$true] %s258_s18 }
  0x15   : > { %p5744_p11 = pnand %p4956_p9, %p8732_p1 }
  0x17   : > { %p5758_p13 = pneg %p5744_p11 }
  0x1a   : > { %s5445_s21 = scalar_lea.hbm %s8891_s1, 8192 }
  0x1b   : > { %p5446_p12 = scmp.ne.s32.totalorder %s8891_s1, %s5445_s21  ;;  %p5452_p5 = scmp.lt.u32.totalorder %s5445_s21, %s8891_s1 }
  0x1d   : > { %p5448_p0 = pnand %p5758_p13, %p5446_p12 }
  0x1f   : > { %p5449_p3 = pneg %p5448_p0 }
  0x21   : > { %p5454_p7 = pnand %p5452_p5, %p5449_p3 }
  0x23   : > { %5457 = shalt.err (!%p5454_p7)
}
  0x24   : > { %s5458_s10 = scalar_lea.vmem %s5737_s15, 8192  ;;  %p5466_p2 = scmp.lt.s32.totalorder %s5737_s15, %s5737_s15 }
  0x25   : > { %p5459_p9 = scmp.ne.s32.totalorder %s5737_s15, %s5458_s10  ;;  %p5467_p6 = scmp.lt.s32.totalorder %s5458_s10, %s5458_s10 }
  0x27   : > { %p5461_p10 = pnand %p5459_p9, %p5758_p13  ;;  %p5468_p12 = por %p5467_p6, %p5466_p2 }
  0x29   : > { %p5462_p1 = pneg %p5461_p10 }
  0x2b   : > { %p5469_p0 = pnand %p5468_p12, %p5462_p1 }
  0x2d   : > { %5472 = shalt.err (!%p5469_p0)
}
  0x2e   : > { %s8734_s14 = smov 256   ;;  %s8735_s17 = smov 16  }
  0x2f   : > { %4959 = dma.hbm_to_vmem [thread:$0]  (!%p5744_p11), %s8891_s1, 8192, %s5737_s15, [#allocation6], %s8734_s14, %s8734_s14, %s8735_s17  }
  0x30   : > { %s5473_s23 = scalar_lea.hbm %s8726_s3, 4096 }
  0x31   : > { %p5474_p1 = scmp.ne.s32.totalorder %s8726_s3, %s5473_s23  ;;  %p5480_p10 = scmp.lt.u32.totalorder %s5473_s23, %s8726_s3 }
  0x33   : > { %p5476_p2 = pnand %p5474_p1, %p5758_p13 }
  0x35   : > { %p5477_p6 = pneg %p5476_p2 }
  0x37   : > { %p5482_p3 = pnand %p5480_p10, %p5477_p6 }
  0x39   : > { %5485 = shalt.err (!%p5482_p3)
}
  0x3a   : > { %s5486_s15 = scalar_lea.vmem %s5748_s18, 4096  ;;  %p5494_p12 = scmp.lt.s32.totalorder %s5748_s18, %s5748_s18 }
  0x3b   : > { %p5487_p5 = scmp.ne.s32.totalorder %s5748_s18, %s5486_s15  ;;  %p5495_p0 = scmp.lt.s32.totalorder %s5486_s15, %s5486_s15 }
  0x3d   : > { %p5489_p7 = pnand %p5487_p5, %p5758_p13  ;;  %p5496_p1 = por %p5495_p0, %p5494_p12 }
  0x3f   : > { %p5490_p9 = pneg %p5489_p7 }
  0x41   : > { %p5497_p2 = pnand %p5496_p1, %p5490_p9 }
  0x43   : > { %5500 = shalt.err (!%p5497_p2)
}
  0x44   : > { %s5639_s19 = smov 128   ;;  %s5640_s12 = smov 8  }
  0x45   : > { %4962 = dma.hbm_to_vmem [thread:$0]  (!%p5744_p11), %s8726_s3, 4096, %s5748_s18, [#allocation6], %s5639_s19, %s5639_s19, %s5640_s12  }
  0x46   : > { %s5641_s22 = smov [#allocation8]   ;;  %s5806_s25 = sadd.s32 1, %s5633_s30  }
  0x47   : > { %s280_s23 = sshll.u32 %s5641_s22, 4  ;;  %s5501_s15 = scalar_lea.hbm %s8730_s7, 4096  ;;  %s281_s23 = int_to_ptr.vmem [resolvable:$true] %s280_s23 }
  0x48   : > { %p5502_p6 = scmp.ne.s32.totalorder %s8730_s7, %s5501_s15  ;;  %p5508_p5 = scmp.lt.u32.totalorder %s5501_s15, %s8730_s7 }
  0x4a   : > { %p5504_p10 = pnand %p5502_p6, %p5758_p13 }
  0x4c   : > { %p5505_p3 = pneg %p5504_p10 }
  0x4e   : > { %p5510_p7 = pnand %p5508_p5, %p5505_p3 }
  0x50   : > { %5513 = shalt.err (!%p5510_p7)
}
  0x51   : > { %s5514_s18 = scalar_lea.vmem %s281_s23, 4096  ;;  %p5522_p1 = scmp.lt.s32.totalorder %s281_s23, %s281_s23 }
  0x52   : > { %p5515_p9 = scmp.ne.s32.totalorder %s281_s23, %s5514_s18  ;;  %p5523_p2 = scmp.lt.s32.totalorder %s5514_s18, %s5514_s18 }
  0x54   : > { %p5517_p12 = pnand %p5515_p9, %p5758_p13  ;;  %p5524_p4 = por %p5523_p2, %p5522_p1 }
  0x56   : > { %p5518_p0 = pneg %p5517_p12 }
  0x58   : > { %p5525_p8 = pnand %p5524_p4, %p5518_p0 }
  0x5a   : > { %5528 = shalt.err (!%p5525_p8)
}
  0x5b   : > { %4965 = dma.hbm_to_vmem [thread:$0]  (!%p5744_p11), %s8730_s7, 4096, %s281_s23, [#allocation9], %s5639_s19, %s5639_s19, %s5640_s12  }
  0x5c   : > { %s30_s1 = ssub.s32 %s5633_s30, %s5806_s25  ;;  %s33_s27 = sadd.s32 1, %s5629_s29 }
  0x5d   : > { %p31_p4 = scmp.eq.s32.totalorder %s30_s1, 0  ;;  %p40_p8 = scmp.ne.s32.totalorder %s5629_s29, %s5625_s28 }
  0x5e   : > { %p41_p13 = scmp.eq.s32.totalorder %s5633_s30, 0  ;;  %p4977_p6 = scmp.lt.s32.totalorder %s5633_s30, 2 }
  0x5f   : > { %s5834_s16 = scalar_select %p31_p4, %s5629_s29, %s33_s27  }
  0x60   : > { %p42_p10 = por %p41_p13, %p40_p8  ;;  %p8893_p3 = scmp.eq.s32.totalorder %s5714_s9, 1 }
  0x61   : > { %s294_s20 = sand.u32 1, %s5629_s29   ;;  %s4809_s21 = sshll.u32 %s5633_s30, 13 }
  0x62   : > { %p5838_p5 = por %p8893_p3, %p40_p8  ;;  %s4662_s22 = sshll.u32 %s294_s20, 9 }
  0x63   : > { %s5847_s19 = scalar_lea.hbm %s8723_s0, %s4809_s21  ;;  %s298_s12 = scalar_lea.vmem [#allocation2], %s4662_s22 }
  0x64   : > { %s306_s23 = sshll.u32 %s298_s12, 4  ;;  %p5849_p11 = pnand %p4977_p6, %p42_p10  ;;  %s5853_s23 = int_to_ptr.vmem [resolvable:$true] %s306_s23 }
  0x65   : > { %s5855_s18 = scalar_lea.sflag [#allocation3], %s294_s20  ;;  %s5529_s14 = scalar_lea.hbm %s5847_s19, 8192 }
  0x66   : > { %p5530_p7 = scmp.ne.s32.totalorder %s5847_s19, %s5529_s14  ;;  %p5531_p9 = pneg %p5849_p11 }
  0x67   : > { %s5534_s27 = scalar_lea.hbm %s8723_s0, 16384  ;;  %p5535_p1 = scmp.lt.u32.totalorder %s5847_s19, %s8723_s0 }
  0x68   : > { %p5532_p12 = pnand %p5531_p9, %p5530_p7  ;;  %p5536_p2 = scmp.lt.u32.totalorder %s5534_s27, %s5529_s14 }
  0x69   : > { %p5538_p8 = scmp.lt.u32.totalorder %s5529_s14, %s5847_s19 }
  0x6a   : > { %p5533_p0 = pneg %p5532_p12  ;;  %p5537_p4 = por %p5536_p2, %p5535_p1 }
  0x6c   : > { %p5539_p13 = por %p5538_p8, %p5537_p4 }
  0x6e   : > { %p5540_p6 = pnand %p5539_p13, %p5533_p0 }
  0x70   : > { %5543 = shalt.err (!%p5540_p6)
}
  0x71   : > { %s5544_s20 = scalar_lea.vmem %s5853_s23, 8192  ;;  %s5642_s26 = smov [#allocation2]  }
  0x72   : > { %p5545_p10 = scmp.ne.s32.totalorder %s5853_s23, %s5544_s20  ;;  %s5549_s10 = sshll.u32 %s5642_s26, 4  ;;  %s5550_s10 = int_to_ptr.vmem [resolvable:$false] %s5549_s10 }
  0x73   : > { %s5551_s12 = scalar_lea.vmem %s5550_s10, 16384  ;;  %p5552_p12 = scmp.lt.s32.totalorder %s5853_s23, %s5550_s10 }
  0x74   : > { %p5547_p3 = pnand %p5545_p10, %p5531_p9  ;;  %p5553_p1 = scmp.lt.s32.totalorder %s5551_s12, %s5544_s20 }
  0x76   : > { %p5548_p7 = pneg %p5547_p3  ;;  %p5554_p2 = por %p5553_p1, %p5552_p12 }
  0x78   : > { %p5555_p4 = pnand %p5554_p2, %p5548_p7 }
  0x7a   : > { %5558 = shalt.err (!%p5555_p4)
}
  0x7b   : > { %s8896_s14 = smov 16   ;;  %s8897_s17 = smov 256  }
  0x7c   : > { %4969 = dma.hbm_to_vmem [thread:$0]  (!%p5849_p11), %s5847_s19, 8192, %s5853_s23, %s5855_s18, %s8897_s17, %s8897_s17, %s8896_s14  }
  0x7d   : > { %p8898_p9 = scmp.ne.s32.totalorder %s8889_s13, 0 }
  0x7f   : > { %318 = sbr.rel (%p8898_p9) target bundleno = 1685 (0x695), region = 52 }
  0x86   : > { %s5889_s1 = sand.u32 1, %s5625_s28   ;;  %p8899_p0 = scmp.ne.s32.totalorder %s8886_s11, 0 }
  0x87   : > { %s4667_s27 = sshll.u32 %s5889_s1, 9  ;;  %s321_s21 = scalar_lea.sflag [#allocation3], %s5889_s1 }
  0x88   : > { %s5895_s15 = scalar_lea.vmem [#allocation2], %s4667_s27 }
  0x89   : > { %5604 = dma.done.wait (%p8899_p0), %s321_s21, 8192  }
  0x8a   : > { %5606 = vsyncadd (%p8899_p0), %s321_s21, 4294959104  ;;  %p8900_p11 = scmp.eq.s32.totalorder %s5714_s9, 0 }
  0x8c   : > { %5608 = dma.done.wait (%p8900_p11), [#allocation6], 12288   ;;  %p8901_p8 = pmov %p8900_p11 }
  0x8e   : > { %5610 = vsyncadd (%p8901_p8), [#allocation6], 4294955008  ;;  %p8902_p13 = pmov %p8901_p8 }
  0x8f   : > { %p8903_p6 = pmov %p8901_p8 }
  0x90   : > { %5612 = dma.done.wait (%p8902_p13), [#allocation9], 4096  }
  0x91   : > { %5614 = vsyncadd (%p8903_p6), [#allocation9], 4294963200  ;;  %v5029_v0 = vld [vmem:[#allocation5 + $0x4] ss:$16 sps:$4 sm:$0xff]   ;;  %v5031_v1 = vld [vmem:[#allocation5] ss:$16 sps:$4 sm:$0xff]  }
  0x92   : > { %873 = vmatprep.subr.bf16.mxu0 %v5029_v0  ;;  %v5032_v2 = vld [vmem:[#allocation5 + $0x24] ss:$16 sps:$4 sm:$0xff]   ;;  %v5034_v3 = vld [vmem:[#allocation5 + $0x20] ss:$16 sps:$4 sm:$0xff]   ;;  %v372_v13 = vld [vmem:[%s5895_s15 + $0x8] sm:$0xff]  ;;  %s8546_s21 = scalar_lea.vmem [#allocation10], %s4667_s27 }
  0x93   : > { %874 = vmatpush1.bf16.msra.mxu0 %v5031_v1  ;;  %v5035_v4 = vld [vmem:[#allocation5 + $0x44] ss:$16 sps:$4 sm:$0xff]   ;;  %v5037_v5 = vld [vmem:[#allocation5 + $0x40] ss:$16 sps:$4 sm:$0xff]   ;;  %v374_v14 = vld [vmem:[%s5895_s15 + $0x18] sm:$0xff]  ;;  %s4811_s27 = sshll.u32 %s5714_s9, 13 }
  0x94   : > { %875 = vmatprep.subr.bf16.mxu0 %v5032_v2  ;;  %v5038_v6 = vld [vmem:[#allocation5 + $0x64] ss:$16 sps:$4 sm:$0xff]   ;;  %v5040_v7 = vld [vmem:[#allocation5 + $0x60] ss:$16 sps:$4 sm:$0xff]   ;;  %v436_v15 = vpack.c.bf16 %v374_v14, %v372_v13  ;;  %v376_v37 = vld [vmem:[%s5895_s15 + $0x28] sm:$0xff]  ;;  %s8674_s19 = scalar_lea.hbm %s8731_s8, %s4811_s27  ;;  %s4540_s9 = scalar_lea.sflag [#allocation4], %s5889_s1 }
  0x95   : > { %v5041_v8 = vld [vmem:[#allocation5 + $0x84] ss:$16 sps:$4 sm:$0xff]   ;;  %v5043_v9 = vld [vmem:[#allocation5 + $0x80] ss:$16 sps:$4 sm:$0xff]   ;;  %v378_v38 = vld [vmem:[%s5895_s15 + $0x38] sm:$0xff]  ;;  %s5645_s18 = smov [#allocation10]  }
  0x96   : > { %v5044_v10 = vld [vmem:[#allocation5 + $0xa4] ss:$16 sps:$4 sm:$0xff]   ;;  %v5046_v11 = vld [vmem:[#allocation5 + $0xa0] ss:$16 sps:$4 sm:$0xff]   ;;  %905 = vmatprep.mubr.bf16.mxu0 %v436_v15  ;;  %1098 = vmatprep.mubr.bf16.mxu1 %v436_v15  ;;  %v5919_v41 = vpack.c.bf16 %v378_v38, %v376_v37  ;;  %v380_v47 = vld [vmem:[%s5895_s15 + $0x48] sm:$0xff]  ;;  %s5563_s22 = sshll.u32 %s5645_s18, 4  ;;  %s5564_s22 = int_to_ptr.vmem [resolvable:$false] %s5563_s22 }
  0x97   : > { %876 = vmatpush1.bf16.msra.mxu0 %v5034_v3  ;;  %v5047_v12 = vld [vmem:[#allocation5 + $0xc4] ss:$16 sps:$4 sm:$0xff]   ;;  %v5049_v16 = vld [vmem:[#allocation5 + $0xc0] ss:$16 sps:$4 sm:$0xff]   ;;  %v382_v48 = vld [vmem:[%s5895_s15 + $0x58] sm:$0xff]  ;;  %s5565_s20 = scalar_lea.vmem %s5564_s22, 16384 }
  0x98   : > { %877 = vmatprep.subr.bf16.mxu0 %v5035_v4  ;;  %v5050_v17 = vld [vmem:[#allocation5 + $0xe4] ss:$16 sps:$4 sm:$0xff]   ;;  %v5052_v18 = vld [vmem:[#allocation5 + $0xe0] ss:$16 sps:$4 sm:$0xff]   ;;  %v5944_v53 = vpack.c.bf16 %v382_v48, %v380_v47  ;;  %v384_v57 = vld [vmem:[%s5895_s15 + $0x68] sm:$0xff] }
  0x99   : > { %v5053_v19 = vld [vmem:[#allocation5 + $0x104] ss:$16 sps:$4 sm:$0xff]   ;;  %v5055_v20 = vld [vmem:[#allocation5 + $0x100] ss:$16 sps:$4 sm:$0xff]   ;;  %v386_v58 = vld [vmem:[%s5895_s15 + $0x78] sm:$0xff] }
  0x9a   : > { %v5056_v21 = vld [vmem:[#allocation5 + $0x124] ss:$16 sps:$4 sm:$0xff]   ;;  %v5058_v22 = vld [vmem:[#allocation5 + $0x120] ss:$16 sps:$4 sm:$0xff]   ;;  %8905 = vst [vmem:[#allocation18_spill] sm:$0xff] %v5944_v53  ;;  %v5966_v63 = vpack.c.bf16 %v386_v58, %v384_v57  ;;  %v388_v3 = vld [vmem:[%s5895_s15 + $0x88] sm:$0xff] }
  0x9b   : > { %878 = vmatpush1.bf16.msra.mxu0 %v5037_v5  ;;  %v5059_v23 = vld [vmem:[#allocation5 + $0x144] ss:$16 sps:$4 sm:$0xff]   ;;  %v5061_v24 = vld [vmem:[#allocation5 + $0x140] ss:$16 sps:$4 sm:$0xff]   ;;  %v390_v4 = vld [vmem:[%s5895_s15 + $0x98] sm:$0xff] }
  0x9c   : > { %879 = vmatprep.subr.bf16.mxu0 %v5038_v6  ;;  %v5062_v25 = vld [vmem:[#allocation5 + $0x164] ss:$16 sps:$4 sm:$0xff]   ;;  %v5064_v26 = vld [vmem:[#allocation5 + $0x160] ss:$16 sps:$4 sm:$0xff]   ;;  %8907 = vst [vmem:[#allocation20_spill] sm:$0xff] %v5966_v63  ;;  %v392_v13 = vld [vmem:[%s5895_s15 + $0xa8] sm:$0xff] }
  0x9d   : > { %v5065_v27 = vld [vmem:[#allocation5 + $0x184] ss:$16 sps:$4 sm:$0xff]   ;;  %v5067_v28 = vld [vmem:[#allocation5 + $0x180] ss:$16 sps:$4 sm:$0xff]   ;;  %v394_v14 = vld [vmem:[%s5895_s15 + $0xb8] sm:$0xff] }
  0x9e   : > { %v5068_v29 = vld [vmem:[#allocation5 + $0x1a4] ss:$16 sps:$4 sm:$0xff]   ;;  %v5070_v30 = vld [vmem:[#allocation5 + $0x1a0] ss:$16 sps:$4 sm:$0xff]  }
  0x9f   : > { %880 = vmatpush1.bf16.msra.mxu0 %v5040_v7  ;;  %v5071_v31 = vld [vmem:[#allocation5 + $0x1c4] ss:$16 sps:$4 sm:$0xff]   ;;  %v5073_v32 = vld [vmem:[#allocation5 + $0x1c0] ss:$16 sps:$4 sm:$0xff]   ;;  %v5984_v7 = vpack.c.bf16 %v390_v4, %v388_v3  ;;  %v408_v3 = vld [vmem:[%s5895_s15 + $0x128] sm:$0xff] }
  0xa0   : > { %881 = vmatprep.subr.bf16.mxu0 %v5041_v8  ;;  %v5074_v33 = vld [vmem:[#allocation5 + $0x1e4] ss:$16 sps:$4 sm:$0xff]   ;;  %v5076_v34 = vld [vmem:[#allocation5 + $0x1e0] ss:$16 sps:$4 sm:$0xff]   ;;  %v410_v4 = vld [vmem:[%s5895_s15 + $0x138] sm:$0xff] }
  0xa1   : > { %v371_v35 = vld [vmem:[%s5895_s15] sm:$0xff]  ;;  %v373_v36 = vld [vmem:[%s5895_s15 + $0x10] sm:$0xff]  ;;  %8909 = vst [vmem:[#allocation22_spill] sm:$0xff] %v5984_v7 }
  0xa2   : > { %v5915_v39 = vld [vmem:[#allocation7 + $0x4] ss:$8 sps:$4 sm:$0xff]   ;;  %v5917_v40 = vpack.c.bf16 %v373_v36, %v371_v35  ;;  %v5921_v42 = vld [vmem:[#allocation7] ss:$8 sps:$4 sm:$0xff]   ;;  %v5924_v43 = vld [vmem:[#allocation7 + $0x14] ss:$8 sps:$4 sm:$0xff]  }
  0xa3   : > { %882 = vmatpush1.bf16.msra.mxu0 %v5043_v9  ;;  %v375_v44 = vld [vmem:[%s5895_s15 + $0x20] sm:$0xff]  ;;  %v377_v45 = vld [vmem:[%s5895_s15 + $0x30] sm:$0xff] }
  0xa4   : > { %883 = vmatprep.subr.bf16.mxu0 %v5044_v10  ;;  %v5928_v46 = vld [vmem:[#allocation7 + $0x10] ss:$8 sps:$4 sm:$0xff]   ;;  %v5933_v49 = vld [vmem:[#allocation7 + $0x24] ss:$8 sps:$4 sm:$0xff]   ;;  %v5938_v50 = vld [vmem:[#allocation7 + $0x20] ss:$8 sps:$4 sm:$0xff]   ;;  %v5940_v51 = vpack.c.bf16 %v377_v45, %v375_v44 }
  0xa5   : > { %v5942_v52 = vld [vmem:[#allocation7 + $0x34] ss:$8 sps:$4 sm:$0xff]   ;;  %v379_v54 = vld [vmem:[%s5895_s15 + $0x40] sm:$0xff]  ;;  %v5950_v56 = vld [vmem:[#allocation7 + $0x30] ss:$8 sps:$4 sm:$0xff]  }
  0xa6   : > { %8904 = vst [vmem:[#allocation17_spill] sm:$0xff] %v5940_v51  ;;  %v381_v55 = vld [vmem:[%s5895_s15 + $0x50] sm:$0xff]  ;;  %v5955_v59 = vld [vmem:[#allocation7 + $0x44] ss:$8 sps:$4 sm:$0xff]   ;;  %v5960_v60 = vld [vmem:[#allocation7 + $0x40] ss:$8 sps:$4 sm:$0xff]  }
  0xa7   : > { %884 = vmatpush1.bf16.msra.mxu0 %v5046_v11  ;;  %v5962_v61 = vpack.c.bf16 %v381_v55, %v379_v54  ;;  %v5964_v62 = vld [vmem:[#allocation7 + $0x54] ss:$8 sps:$4 sm:$0xff]   ;;  %v383_v0 = vld [vmem:[%s5895_s15 + $0x60] sm:$0xff]  ;;  %v5972_v2 = vld [vmem:[#allocation7 + $0x50] ss:$8 sps:$4 sm:$0xff]  }
  0xa8   : > { %885 = vmatprep.subr.bf16.mxu0 %v5047_v12  ;;  %v385_v1 = vld [vmem:[%s5895_s15 + $0x70] sm:$0xff]  ;;  %v5980_v5 = vld [vmem:[#allocation7 + $0x64] ss:$8 sps:$4 sm:$0xff]   ;;  %v5987_v8 = vld [vmem:[#allocation7 + $0x60] ss:$8 sps:$4 sm:$0xff]  }
  0xa9   : > { %8906 = vst [vmem:[#allocation19_spill] sm:$0xff] %v5962_v61  ;;  %v5982_v6 = vpack.c.bf16 %v385_v1, %v383_v0  ;;  %v5990_v9 = vld [vmem:[#allocation7 + $0x74] ss:$8 sps:$4 sm:$0xff]   ;;  %v387_v10 = vld [vmem:[%s5895_s15 + $0x80] sm:$0xff]  ;;  %v5997_v12 = vld [vmem:[#allocation7 + $0x70] ss:$8 sps:$4 sm:$0xff]  }
  0xaa   : > { %v389_v11 = vld [vmem:[%s5895_s15 + $0x90] sm:$0xff]  ;;  %v6002_v15 = vld [vmem:[#allocation7 + $0x84] ss:$8 sps:$4 sm:$0xff]   ;;  %v6053_v38 = vld [vmem:[#allocation7 + $0xc0] ss:$8 sps:$4 sm:$0xff]  }
  0xab   : > { %886 = vmatpush1.bf16.msra.mxu0 %v5049_v16  ;;  %8908 = vst [vmem:[#allocation21_spill] sm:$0xff] %v5982_v6  ;;  %v6004_v16 = vpack.c.bf16 %v389_v11, %v387_v10  ;;  %v6046_v35 = vld [vmem:[#allocation7 + $0xc4] ss:$8 sps:$4 sm:$0xff]   ;;  %v6056_v44 = vld [vmem:[#allocation7 + $0xd4] ss:$8 sps:$4 sm:$0xff]   ;;  %v6081_v11 = vpack.c.bf16 %v410_v4, %v408_v3 }
  0xac   : > { %887 = vmatprep.subr.bf16.mxu0 %v5050_v17  ;;  %v6006_v17 = vpack.c.bf16 %v394_v14, %v392_v13  ;;  %v399_v45 = vld [vmem:[%s5895_s15 + $0xe0] sm:$0xff]  ;;  %v401_v47 = vld [vmem:[%s5895_s15 + $0xf0] sm:$0xff]  ;;  %v404_v54 = vld [vmem:[%s5895_s15 + $0x108] sm:$0xff] }
  0xad   : > { %8910 = vst [vmem:[#allocation23_spill] sm:$0xff] %v6004_v16  ;;  %v6063_v48 = vld [vmem:[#allocation7 + $0xd0] ss:$8 sps:$4 sm:$0xff]   ;;  %v6068_v57 = vpack.c.bf16 %v401_v47, %v399_v45  ;;  %v403_v0 = vld [vmem:[%s5895_s15 + $0x100] sm:$0xff]  ;;  %8919 = vst [vmem:[#allocation32_spill] sm:$0xff] %v6081_v11 }
  0xae   : > { %8911 = vst [vmem:[#allocation24_spill] sm:$0xff] %v6006_v17  ;;  %v406_v55 = vld [vmem:[%s5895_s15 + $0x118] sm:$0xff]  ;;  %v405_v1 = vld [vmem:[%s5895_s15 + $0x110] sm:$0xff]  ;;  %v407_v13 = vld [vmem:[%s5895_s15 + $0x120] sm:$0xff] }
  0xaf   : > { %888 = vmatpush1.bf16.msra.mxu0 %v5052_v18  ;;  %v6009_v18 = vld [vmem:[#allocation7 + $0x80] ss:$8 sps:$4 sm:$0xff]   ;;  %8916 = vst [vmem:[#allocation29_spill] sm:$0xff] %v6068_v57  ;;  %v6070_v58 = vpack.c.bf16 %v406_v55, %v404_v54  ;;  %v6079_v10 = vpack.c.bf16 %v405_v1, %v403_v0  ;;  %v409_v14 = vld [vmem:[%s5895_s15 + $0x130] sm:$0xff]  ;;  %v422_v1 = vld [vmem:[%s5895_s15 + $0x198] sm:$0xff] }
  0xb0   : > { %889 = vmatprep.subr.bf16.mxu0 %v5053_v19  ;;  %v6012_v19 = vld [vmem:[#allocation7 + $0x94] ss:$8 sps:$4 sm:$0xff]   ;;  %v415_v54 = vld [vmem:[%s5895_s15 + $0x160] sm:$0xff]  ;;  %v420_v0 = vld [vmem:[%s5895_s15 + $0x188] sm:$0xff] }
  0xb1   : > { %8917 = vst [vmem:[#allocation30_spill] sm:$0xff] %v6070_v58  ;;  %8918 = vst [vmem:[#allocation31_spill] sm:$0xff] %v6079_v10  ;;  %v417_v55 = vld [vmem:[%s5895_s15 + $0x170] sm:$0xff]  ;;  %v6111_v4 = vpack.c.bf16 %v422_v1, %v420_v0  ;;  %v423_v0 = vld [vmem:[%s5895_s15 + $0x1a0] sm:$0xff] }
  0xb2   : > { %v6109_v3 = vpack.c.bf16 %v417_v55, %v415_v54  ;;  %v6129_v54 = vld [vmem:[#allocation7 + $0xf4] ss:$8 sps:$4 sm:$0xff]   ;;  %v6131_v55 = vld [vmem:[#allocation7 + $0xf0] ss:$8 sps:$4 sm:$0xff]  }
  0xb3   : > { %890 = vmatpush1.bf16.msra.mxu0 %v5055_v20  ;;  %v391_v20 = vld [vmem:[%s5895_s15 + $0xa0] sm:$0xff]  ;;  %8925 = vst [vmem:[#allocation38_spill] sm:$0xff] %v6111_v4  ;;  %v425_v1 = vld [vmem:[%s5895_s15 + $0x1b0] sm:$0xff] }
  0xb4   : > { %891 = vmatprep.subr.bf16.mxu0 %v5056_v21  ;;  %v393_v21 = vld [vmem:[%s5895_s15 + $0xb0] sm:$0xff]  ;;  %8924 = vst [vmem:[#allocation37_spill] sm:$0xff] %v6109_v3 }
  0xb7   : > { %892 = vmatpush1.bf16.msra.mxu0 %v5058_v22  ;;  %v6019_v22 = vld [vmem:[#allocation7 + $0x90] ss:$8 sps:$4 sm:$0xff]  }
  0xb8   : > { %893 = vmatprep.subr.bf16.mxu0 %v5059_v23  ;;  %v396_v23 = vld [vmem:[%s5895_s15 + $0xc8] sm:$0xff] }
  0xbb   : > { %894 = vmatpush1.bf16.msra.mxu0 %v5061_v24  ;;  %v398_v24 = vld [vmem:[%s5895_s15 + $0xd8] sm:$0xff] }
  0xbc   : > { %895 = vmatprep.subr.bf16.mxu0 %v5062_v25  ;;  %v6024_v25 = vld [vmem:[#allocation7 + $0xa4] ss:$8 sps:$4 sm:$0xff]  }
  0xbf   : > { %896 = vmatpush1.bf16.msra.mxu0 %v5064_v26  ;;  %v6026_v26 = vpack.c.bf16 %v393_v21, %v391_v20  ;;  %v412_v20 = vld [vmem:[%s5895_s15 + $0x148] sm:$0xff]  ;;  %v414_v21 = vld [vmem:[%s5895_s15 + $0x158] sm:$0xff] }
  0xc0   : > { %897 = vmatprep.subr.bf16.mxu0 %v5065_v27  ;;  %v6028_v27 = vpack.c.bf16 %v398_v24, %v396_v23  ;;  %v6089_v23 = vpack.c.bf16 %v409_v14, %v407_v13  ;;  %v6091_v24 = vpack.c.bf16 %v414_v21, %v412_v20  ;;  %v6113_v13 = vld [vmem:[#allocation7 + $0xe0] ss:$8 sps:$4 sm:$0xff]   ;;  %v6115_v14 = vld [vmem:[#allocation7 + $0xe4] ss:$8 sps:$4 sm:$0xff]   ;;  %v421_v21 = vld [vmem:[%s5895_s15 + $0x190] sm:$0xff] }
  0xc1   : > { %8912 = vst [vmem:[#allocation25_spill] sm:$0xff] %v6026_v26  ;;  %v419_v20 = vld [vmem:[%s5895_s15 + $0x180] sm:$0xff] }
  0xc2   : > { %8913 = vst [vmem:[#allocation26_spill] sm:$0xff] %v6028_v27  ;;  %8920 = vst [vmem:[#allocation33_spill] sm:$0xff] %v6089_v23 }
  0xc3   : > { %898 = vmatpush1.bf16.msra.mxu0 %v5067_v28  ;;  %v6031_v28 = vld [vmem:[#allocation7 + $0xa0] ss:$8 sps:$4 sm:$0xff]   ;;  %8921 = vst [vmem:[#allocation34_spill] sm:$0xff] %v6091_v24 }
  0xc4   : > { %899 = vmatprep.subr.bf16.mxu0 %v5068_v29  ;;  %v6034_v29 = vld [vmem:[#allocation7 + $0xb4] ss:$8 sps:$4 sm:$0xff]  }
  0xc7   : > { %900 = vmatpush1.bf16.msra.mxu0 %v5070_v30  ;;  %v395_v30 = vld [vmem:[%s5895_s15 + $0xc0] sm:$0xff] }
  0xc8   : > { %901 = vmatprep.subr.bf16.mxu0 %v5071_v31  ;;  %v397_v31 = vld [vmem:[%s5895_s15 + $0xd0] sm:$0xff] }
  0xc9   : > { %v6048_v36 = vpack.c.bf16 %v397_v31, %v395_v30  ;;  %v411_v30 = vld [vmem:[%s5895_s15 + $0x140] sm:$0xff]  ;;  %v413_v31 = vld [vmem:[%s5895_s15 + $0x150] sm:$0xff] }
  0xca   : > { %v6099_v45 = vpack.c.bf16 %v413_v31, %v411_v30  ;;  %v424_v30 = vld [vmem:[%s5895_s15 + $0x1a8] sm:$0xff]  ;;  %v426_v31 = vld [vmem:[%s5895_s15 + $0x1b8] sm:$0xff] }
  0xcb   : > { %902 = vmatpush1.bf16.msra.mxu0 %v5073_v32  ;;  %v6041_v32 = vld [vmem:[#allocation7 + $0xb0] ss:$8 sps:$4 sm:$0xff]   ;;  %8914 = vst [vmem:[#allocation27_spill] sm:$0xff] %v6048_v36 }
  0xcc   : > { %903 = vmatprep.subr.bf16.mxu0 %v5074_v33  ;;  %v400_v33 = vld [vmem:[%s5895_s15 + $0xe8] sm:$0xff]  ;;  %8922 = vst [vmem:[#allocation35_spill] sm:$0xff] %v6099_v45 }
  0xcf   : > { %904 = vmatpush1.bf16.msra.mxu0 %v5076_v34  ;;  %v402_v34 = vld [vmem:[%s5895_s15 + $0xf8] sm:$0xff] }
  0xd0   : > { %1771 = vmatprep.subr.bf16.mxu0 %v5915_v39  ;;  %v6050_v37 = vpack.c.bf16 %v402_v34, %v400_v33  ;;  %v416_v33 = vld [vmem:[%s5895_s15 + $0x168] sm:$0xff]  ;;  %v418_v34 = vld [vmem:[%s5895_s15 + $0x178] sm:$0xff] }
  0xd1   : > { %v6101_v47 = vpack.c.bf16 %v418_v34, %v416_v33  ;;  %v6125_v33 = vpack.c.bf16 %v421_v21, %v419_v20  ;;  %v6127_v34 = vpack.c.bf16 %v426_v31, %v424_v30  ;;  %v428_v20 = vld [vmem:[%s5895_s15 + $0x1c8] sm:$0xff]  ;;  %v430_v21 = vld [vmem:[%s5895_s15 + $0x1d8] sm:$0xff]  ;;  %v6142_v30 = vpack.c.bf16 %v425_v1, %v423_v0  ;;  %v433_v0 = vld [vmem:[%s5895_s15 + $0x1f0] sm:$0xff] }
  0xd2   : > { %906 = vmatmul.mubr.bf16.vlgmr.msra.gmra.mrb[0].mxu0 %v5917_v40  ;;  %8915 = vst [vmem:[#allocation28_spill] sm:$0xff] %v6050_v37  ;;  %v6144_v31 = vpack.c.bf16 %v430_v21, %v428_v20  ;;  %v533_v20 = vlaneseq }
  0xd3   : > { %915 = vmatprep.mubr.bf16.mxu0 %v5919_v41  ;;  %1772 = vmatpush1.bf16.msra.mxu0 %v5921_v42  ;;  %8923 = vst [vmem:[#allocation36_spill] sm:$0xff] %v6101_v47  ;;  %8926 = vst [vmem:[#allocation39_spill] sm:$0xff] %v6125_v33 }
  0xd4   : > { %1773 = vmatprep.subr.bf16.mxu0 %v5924_v43  ;;  %8927 = vst [vmem:[#allocation40_spill] sm:$0xff] %v6127_v34  ;;  %8928 = vst [vmem:[#allocation41_spill] sm:$0xff] %v6142_v30  ;;  %v6163_v21 = vshrl.u32 %v533_v20, 7 }
  0xd5   : > { %8929 = vst [vmem:[#allocation42_spill] sm:$0xff] %v6144_v31 }
  0xd6   : > { %8933 = vst [vmem:[#allocation46_spill] sm:$0xff] %v6163_v21 }
  0xd7   : > { %1774 = vmatpush1.bf16.msra.mxu0 %v5928_v46 }
  0xd8   : > { %1775 = vmatprep.subr.bf16.mxu0 %v5933_v49 }
  0xda   : > { %916 = vmatmul.mubr.bf16.gmra.mrb[4].mxu0 %v5940_v51 }
  0xdb   : > { %925 = vmatprep.mubr.bf16.mxu0 %v5944_v53  ;;  %1776 = vmatpush1.bf16.msra.mxu0 %v5938_v50 }
  0xdc   : > { %1777 = vmatprep.subr.bf16.mxu0 %v5942_v52 }
  0xdf   : > { %1778 = vmatpush1.bf16.msra.mxu0 %v5950_v56 }
  0xe0   : > { %1779 = vmatprep.subr.bf16.mxu0 %v5955_v59 }
  0xe2   : > { %926 = vmatmul.mubr.bf16.gmra.mrb[8].mxu0 %v5962_v61 }
  0xe3   : > { %935 = vmatprep.mubr.bf16.mxu0 %v5966_v63  ;;  %1780 = vmatpush1.bf16.msra.mxu0 %v5960_v60 }
  0xe4   : > { %1781 = vmatprep.subr.bf16.mxu0 %v5964_v62 }
  0xe7   : > { %1782 = vmatpush1.bf16.msra.mxu0 %v5972_v2 }
  0xe8   : > { %1783 = vmatprep.subr.bf16.mxu0 %v5980_v5 }
  0xea   : > { %936 = vmatmul.mubr.bf16.gmra.mrb[12].mxu0 %v5982_v6 }
  0xeb   : > { %945 = vmatprep.mubr.bf16.mxu0 %v5984_v7  ;;  %1784 = vmatpush1.bf16.msra.mxu0 %v5987_v8 }
  0xec   : > { %1785 = vmatprep.subr.bf16.mxu0 %v5990_v9 }
  0xef   : > { %1786 = vmatpush1.bf16.msra.mxu0 %v5997_v12 }
  0xf0   : > { %1787 = vmatprep.subr.bf16.mxu0 %v6002_v15 }
  0xf2   : > { %946 = vmatmul.mubr.bf16.gmra.mrb[16].mxu0 %v6004_v16 }
  0xf3   : > { %955 = vmatprep.mubr.bf16.mxu0 %v6006_v17  ;;  %1788 = vmatpush1.bf16.msra.mxu0 %v6009_v18 }
  0xf4   : > { %1789 = vmatprep.subr.bf16.mxu0 %v6012_v19 }
  0xf7   : > { %1790 = vmatpush1.bf16.msra.mxu0 %v6019_v22 }
  0xf8   : > { %1791 = vmatprep.subr.bf16.mxu0 %v6024_v25 }
  0xfa   : > { %956 = vmatmul.mubr.bf16.gmra.mrb[20].mxu0 %v6026_v26 }
  0xfb   : > { %965 = vmatprep.mubr.bf16.mxu0 %v6028_v27  ;;  %1792 = vmatpush1.bf16.msra.mxu0 %v6031_v28 }
  0xfc   : > { %1793 = vmatprep.subr.bf16.mxu0 %v6034_v29 }
  0xff   : > { %1794 = vmatpush1.bf16.msra.mxu0 %v6041_v32 }
 0x100   : > { %1795 = vmatprep.subr.bf16.mxu0 %v6046_v35 }
 0x102   : > { %966 = vmatmul.mubr.bf16.gmra.mrb[24].mxu0 %v6048_v36 }
 0x103   : > { %975 = vmatprep.mubr.bf16.mxu0 %v6050_v37  ;;  %1796 = vmatpush1.bf16.msra.mxu0 %v6053_v38 }
 0x104   : > { %1797 = vmatprep.subr.bf16.mxu0 %v6056_v44 }
 0x107   : > { %1798 = vmatpush1.bf16.msra.mxu0 %v6063_v48 }
 0x108   : > { %1799 = vmatprep.subr.bf16.mxu0 %v6115_v14 }
 0x10a   : > { %976 = vmatmul.mubr.bf16.gmra.mrb[28].mxu0 %v6068_v57 }
 0x10b   : > { %985 = vmatprep.mubr.bf16.mxu0 %v6070_v58  ;;  %1800 = vmatpush1.bf16.msra.mxu0 %v6113_v13 }
 0x10c   : > { %1801 = vmatprep.subr.bf16.mxu0 %v6129_v54 }
 0x10f   : > { %1802 = vmatpush1.bf16.msra.mxu0 %v6131_v55 }
 0x110   : > { %1964 = vmatprep.subr.bf16.mxu0 %v5915_v39  ;;  %v431_v39 = vld [vmem:[%s5895_s15 + $0x1e0] sm:$0xff] }
 0x111   : > { %v6160_v1 = vpack.c.bf16 %v433_v0, %v431_v39 }
 0x112   : > { %986 = vmatmul.mubr.bf16.gmra.mrb[32].mxu0 %v6079_v10 }
 0x113   : > { %995 = vmatprep.mubr.bf16.mxu0 %v6081_v11  ;;  %8932 = vst [vmem:[#allocation45_spill] sm:$0xff] %v6160_v1 }
 0x11a   : > { %996 = vmatmul.mubr.bf16.gmra.mrb[36].mxu0 %v6089_v23 }
 0x11b   : > { %1005 = vmatprep.mubr.bf16.mxu0 %v6091_v24 }
 0x122   : > { %1006 = vmatmul.mubr.bf16.gmra.mrb[40].mxu0 %v6099_v45 }
 0x123   : > { %1015 = vmatprep.mubr.bf16.mxu0 %v6101_v47 }
 0x12a   : > { %1016 = vmatmul.mubr.bf16.gmra.mrb[44].mxu0 %v6109_v3  ;;  %v434_v3 = vld [vmem:[%s5895_s15 + $0x1f8] sm:$0xff] }
 0x12b   : > { %1025 = vmatprep.mubr.bf16.mxu0 %v6111_v4  ;;  %v432_v4 = vld [vmem:[%s5895_s15 + $0x1e8] sm:$0xff] }
 0x12c   : > { %v6154_v45 = vpack.c.bf16 %v434_v3, %v432_v4  ;;  %v531_v3 = vld [vmem:[%s8725_s2] sm:$0xf]  ;;  %v6172_v4 = vsub.s32 1, %v6163_v21 }
 0x12e   : > { %8931 = vst [vmem:[#allocation44_spill] sm:$0xff] %v6154_v45  ;;  %8935 = vst [vmem:[#allocation48_spill] sm:$0xff] %v6172_v4 }
 0x132   : > { %1026 = vmatmul.mubr.bf16.gmra.mrb[48].mxu0 %v6125_v33  ;;  %v427_v33 = vld [vmem:[%s5895_s15 + $0x1c0] sm:$0xff] }
 0x133   : > { %1035 = vmatprep.mubr.bf16.mxu0 %v6127_v34  ;;  %v429_v34 = vld [vmem:[%s5895_s15 + $0x1d0] sm:$0xff]  ;;  %s4554_s15 = sshll.u32 %s8546_s21, 4  ;;  %s8676_s15 = int_to_ptr.vmem [resolvable:$true] %s4554_s15 }
 0x134   : > { %v6152_v47 = vpack.c.bf16 %v429_v34, %v427_v33  ;;  %v6178_v34 = vrot.slane %v531_v3, %v6172_v4  ;;  %s5559_s23 = scalar_lea.vmem %s8676_s15, 8192  ;;  %p5566_p12 = scmp.lt.s32.totalorder %s8676_s15, %s5564_s22 }
 0x135   : > { %p5560_p10 = scmp.ne.s32.totalorder %s8676_s15, %s5559_s23  ;;  %p5567_p1 = scmp.lt.s32.totalorder %s5565_s20, %s5559_s23 }
 0x136   : > { %8930 = vst [vmem:[#allocation43_spill] sm:$0xff] %v6152_v47 }
 0x137   : > { %p5561_p3 = pnand %p5560_p10, %p5838_p5  ;;  %p5568_p2 = por %p5567_p1, %p5566_p12 }
 0x139   : > { %p5562_p7 = pneg %p5561_p3 }
 0x13a   : > { %1036 = vmatmul.mubr.bf16.gmra.mrb[52].mxu0 %v6142_v30 }
 0x13b   : > { %1045 = vmatprep.mubr.bf16.mxu0 %v6144_v31  ;;  %v6166_v31 = vsub.s32 0, %v6163_v21  ;;  %p5569_p4 = pnand %p5568_p2, %p5562_p7 }
 0x13d   : > { %8934 = vst [vmem:[#allocation47_spill] sm:$0xff] %v6166_v31  ;;  %v6175_v33 = vrot.slane %v531_v3, %v6166_v31 }
 0x142   : > { %1046 = vmatmul.mubr.bf16.gmra.mrb[56].mxu0 %v6152_v47 }
 0x143   : > { %1055 = vmatprep.mubr.bf16.mxu0 %v6154_v45 }
 0x14a   : > { %1056 = vmatmul.mubr.bf16.gmra.mrb[60].mxu0 %v6160_v1 }
 0x1a5   : > { %v907_v39 = vpop.f32.mrb[0].mxu0 }
 0x1a6   : > { %v908_v0 = vadd.f32 %v907_v39, %v6175_v33  ;;  %v909_v20 = vpop.f32.mrb[1].mxu0 }
 0x1a7   : > { %v910_v1 = vadd.f32 %v909_v20, %v6178_v34  ;;  %v911_v45 = vpop.f32.mrb[2].mxu0 }
 0x1a8   : > { %v912_v47 = vadd.f32 %v911_v45, %v6175_v33  ;;  %v913_v30 = vpop.f32.mrb[3].mxu0  ;;  %v1259_v21 = vmax.f32 %v908_v0, 0.0 }
 0x1a9   : > { %v914_v24 = vadd.f32 %v913_v30, %v6178_v34  ;;  %v1260_v11 = vmax.f32 %v910_v1, 0.0 }
 0x1aa   : > { %v1263_v23 = vmax.f32 %v912_v47, 0.0 }
 0x1ab   : > { %v1264_v10 = vmax.f32 %v914_v24, 0.0 }
 0x1ac   : > { %v6184_v58 = vpack.c.bf16 %v1263_v23, %v1259_v21 }
 0x1ad   : > { %v6186_v3 = vpack.c.bf16 %v1264_v10, %v1260_v11  ;;  %v917_v57 = vpop.f32.mrb[4].mxu0 }
 0x1ae   : > { %v1451_v39 = vunpack.c.l.bf16 %v6184_v58  ;;  %v1453_v4 = vunpack.c.h.bf16 %v6184_v58  ;;  %v918_v20 = vadd.f32 %v917_v57, %v6175_v33  ;;  %v919_v31 = vpop.f32.mrb[5].mxu0 }
 0x1af   : > { %v1452_v45 = vunpack.c.l.bf16 %v6186_v3  ;;  %v1454_v30 = vunpack.c.h.bf16 %v6186_v3  ;;  %v920_v47 = vadd.f32 %v919_v31, %v6178_v34  ;;  %v921_v1 = vpop.f32.mrb[6].mxu0 }
 0x1b0   : > { %v1515_v24 = vsub.f32 %v1259_v21, %v1451_v39  ;;  %v1517_v0 = vsub.f32 %v1263_v23, %v1453_v4  ;;  %v922_v37 = vadd.f32 %v921_v1, %v6175_v33  ;;  %v923_v36 = vpop.f32.mrb[7].mxu0  ;;  %v1267_v7 = vmax.f32 %v918_v20, 0.0 }
 0x1b1   : > { %v1518_v27 = vsub.f32 %v1264_v10, %v1454_v30  ;;  %v924_v26 = vadd.f32 %v923_v36, %v6178_v34  ;;  %v1516_v17 = vsub.f32 %v1260_v11, %v1452_v45  ;;  %v1268_v6 = vmax.f32 %v920_v47, 0.0 }
 0x1b2   : > { %v1579_v16 = vpack.c.bf16 %v1517_v0, %v1515_v24  ;;  %v1271_v57 = vmax.f32 %v922_v37, 0.0 }
 0x1b3   : > { %v1272_v63 = vmax.f32 %v924_v26, 0.0  ;;  %v1580_v61 = vpack.c.bf16 %v1518_v27, %v1516_v17 }
 0x1b4   : > { %v6196_v53 = vpack.c.bf16 %v1271_v57, %v1267_v7 }
 0x1b5   : > { %v6198_v51 = vpack.c.bf16 %v1272_v63, %v1268_v6  ;;  %v927_v31 = vpop.f32.mrb[8].mxu0  ;;  %1803 = vmatprep.mubr.bf16.mxu0 %v1580_v61 }
 0x1b6   : > { %v1455_v23 = vunpack.c.l.bf16 %v6196_v53  ;;  %v1457_v21 = vunpack.c.h.bf16 %v6196_v53  ;;  %v928_v10 = vadd.f32 %v927_v31, %v6175_v33  ;;  %v929_v36 = vpop.f32.mrb[9].mxu0  ;;  %1804 = vmatmul.mubr.bf16.vlgmr.msra.gmra.mrb[64].mxu0 %v1579_v16 }
 0x1b7   : > { %v1456_v11 = vunpack.c.l.bf16 %v6198_v51  ;;  %v1458_v37 = vunpack.c.h.bf16 %v6198_v51  ;;  %v930_v17 = vadd.f32 %v929_v36, %v6178_v34  ;;  %1965 = vmatpush1.bf16.msra.mxu0 %v5921_v42  ;;  %v931_v26 = vpop.f32.mrb[10].mxu0 }
 0x1b8   : > { %v1521_v27 = vsub.f32 %v1271_v57, %v1457_v21  ;;  %v932_v61 = vadd.f32 %v931_v26, %v6175_v33  ;;  %v933_v4 = vpop.f32.mrb[11].mxu0  ;;  %1966 = vmatprep.subr.bf16.mxu0 %v5924_v43  ;;  %v1519_v39 = vsub.f32 %v1267_v7, %v1455_v23  ;;  %v1275_v30 = vmax.f32 %v928_v10, 0.0 }
 0x1b9   : > { %v1522_v20 = vsub.f32 %v1272_v63, %v1458_v37  ;;  %v934_v45 = vadd.f32 %v933_v4, %v6178_v34  ;;  %v1520_v16 = vsub.f32 %v1268_v6, %v1456_v11  ;;  %v1276_v24 = vmax.f32 %v930_v17, 0.0 }
 0x1ba   : > { %v1279_v47 = vmax.f32 %v932_v61, 0.0  ;;  %v1581_v1 = vpack.c.bf16 %v1521_v27, %v1519_v39 }
 0x1bb   : > { %v1280_v0 = vmax.f32 %v934_v45, 0.0  ;;  %v1582_v31 = vpack.c.bf16 %v1522_v20, %v1520_v16  ;;  %1967 = vmatpush1.bf16.msra.mxu0 %v5928_v46 }
 0x1bc   : > { %v6211_v42 = vpack.c.bf16 %v1279_v47, %v1275_v30  ;;  %1968 = vmatprep.subr.bf16.mxu0 %v5933_v49 }
 0x1bd   : > { %v6214_v57 = vpack.c.bf16 %v1280_v0, %v1276_v24  ;;  %v937_v43 = vpop.f32.mrb[12].mxu0  ;;  %1813 = vmatprep.mubr.bf16.mxu0 %v1582_v31 }
 0x1be   : > { %v1459_v63 = vunpack.c.l.bf16 %v6211_v42  ;;  %v1461_v6 = vunpack.c.h.bf16 %v6211_v42  ;;  %v938_v7 = vadd.f32 %v937_v43, %v6175_v33  ;;  %v939_v23 = vpop.f32.mrb[13].mxu0  ;;  %1814 = vmatmul.mubr.bf16.gmra.mrb[68].mxu0 %v1581_v1 }
 0x1bf   : > { %v1460_v21 = vunpack.c.l.bf16 %v6214_v57  ;;  %v1462_v46 = vunpack.c.h.bf16 %v6214_v57  ;;  %v940_v10 = vadd.f32 %v939_v23, %v6178_v34  ;;  %v941_v36 = vpop.f32.mrb[14].mxu0  ;;  %1969 = vmatpush1.bf16.msra.mxu0 %v5938_v50 }
 0x1c0   : > { %v1525_v49 = vsub.f32 %v1279_v47, %v1461_v6  ;;  %v942_v11 = vadd.f32 %v941_v36, %v6175_v33  ;;  %v943_v37 = vpop.f32.mrb[15].mxu0  ;;  %v1523_v17 = vsub.f32 %v1275_v30, %v1459_v63  ;;  %1970 = vmatprep.subr.bf16.mxu0 %v5942_v52  ;;  %v1283_v4 = vmax.f32 %v938_v7, 0.0 }
 0x1c1   : > { %v1526_v26 = vsub.f32 %v1280_v0, %v1462_v46  ;;  %v944_v27 = vadd.f32 %v943_v37, %v6178_v34  ;;  %v1524_v61 = vsub.f32 %v1276_v24, %v1460_v21  ;;  %v1284_v45 = vmax.f32 %v940_v10, 0.0 }
 0x1c2   : > { %v1287_v39 = vmax.f32 %v942_v11, 0.0  ;;  %v1583_v20 = vpack.c.bf16 %v1525_v49, %v1523_v17 }
 0x1c3   : > { %v1288_v16 = vmax.f32 %v944_v27, 0.0  ;;  %v1584_v1 = vpack.c.bf16 %v1526_v26, %v1524_v61  ;;  %1971 = vmatpush1.bf16.msra.mxu0 %v5950_v56 }
 0x1c4   : > { %v6227_v50 = vpack.c.bf16 %v1287_v39, %v1283_v4  ;;  %1972 = vmatprep.subr.bf16.mxu0 %v5955_v59 }
 0x1c5   : > { %v6230_v47 = vpack.c.bf16 %v1288_v16, %v1284_v45  ;;  %v947_v30 = vpop.f32.mrb[16].mxu0  ;;  %1823 = vmatprep.mubr.bf16.mxu0 %v1584_v1 }
 0x1c6   : > { %v1463_v52 = vunpack.c.l.bf16 %v6227_v50  ;;  %v1465_v24 = vunpack.c.h.bf16 %v6227_v50  ;;  %v948_v0 = vadd.f32 %v947_v30, %v6175_v33  ;;  %v949_v31 = vpop.f32.mrb[17].mxu0  ;;  %1824 = vmatmul.mubr.bf16.gmra.mrb[72].mxu0 %v1583_v20 }
 0x1c7   : > { %v1464_v43 = vunpack.c.l.bf16 %v6230_v47  ;;  %v1466_v56 = vunpack.c.h.bf16 %v6230_v47  ;;  %v950_v63 = vadd.f32 %v949_v31, %v6178_v34  ;;  %v951_v6 = vpop.f32.mrb[18].mxu0  ;;  %1973 = vmatpush1.bf16.msra.mxu0 %v5960_v60 }
 0x1c8   : > { %v1529_v59 = vsub.f32 %v1287_v39, %v1465_v24  ;;  %v952_v7 = vadd.f32 %v951_v6, %v6175_v33  ;;  %v953_v23 = vpop.f32.mrb[19].mxu0  ;;  %v1527_v21 = vsub.f32 %v1283_v4, %v1463_v52  ;;  %1974 = vmatprep.subr.bf16.mxu0 %v5964_v62  ;;  %v1291_v49 = vmax.f32 %v948_v0, 0.0 }
 0x1c9   : > { %v1530_v46 = vsub.f32 %v1288_v16, %v1466_v56  ;;  %v954_v10 = vadd.f32 %v953_v23, %v6178_v34  ;;  %v1528_v36 = vsub.f32 %v1284_v45, %v1464_v43  ;;  %v1292_v17 = vmax.f32 %v950_v63, 0.0 }
 0x1ca   : > { %v1295_v11 = vmax.f32 %v952_v7, 0.0  ;;  %v1585_v37 = vpack.c.bf16 %v1529_v59, %v1527_v21 }
 0x1cb   : > { %v1296_v26 = vmax.f32 %v954_v10, 0.0  ;;  %v1586_v27 = vpack.c.bf16 %v1530_v46, %v1528_v36  ;;  %1975 = vmatpush1.bf16.msra.mxu0 %v5972_v2 }
 0x1cc   : > { %v6243_v60 = vpack.c.bf16 %v1295_v11, %v1291_v49  ;;  %1976 = vmatprep.subr.bf16.mxu0 %v5980_v5 }
 0x1cd   : > { %v6246_v61 = vpack.c.bf16 %v1296_v26, %v1292_v17  ;;  %v957_v4 = vpop.f32.mrb[20].mxu0  ;;  %1833 = vmatprep.mubr.bf16.mxu0 %v1586_v27 }
 0x1ce   : > { %v1467_v62 = vunpack.c.l.bf16 %v6243_v60  ;;  %v1469_v39 = vunpack.c.h.bf16 %v6243_v60  ;;  %v958_v20 = vadd.f32 %v957_v4, %v6175_v33  ;;  %v959_v45 = vpop.f32.mrb[21].mxu0  ;;  %1834 = vmatmul.mubr.bf16.gmra.mrb[76].mxu0 %v1585_v37 }
 0x1cf   : > { %v1468_v16 = vunpack.c.l.bf16 %v6246_v61  ;;  %v1470_v2 = vunpack.c.h.bf16 %v6246_v61  ;;  %v960_v1 = vadd.f32 %v959_v45, %v6178_v34  ;;  %v961_v30 = vpop.f32.mrb[22].mxu0  ;;  %1977 = vmatpush1.bf16.msra.mxu0 %v5987_v8 }
 0x1d0   : > { %v1533_v5 = vsub.f32 %v1295_v11, %v1469_v39  ;;  %v962_v52 = vadd.f32 %v961_v30, %v6175_v33  ;;  %v963_v24 = vpop.f32.mrb[23].mxu0  ;;  %v1531_v0 = vsub.f32 %v1291_v49, %v1467_v62  ;;  %1978 = vmatprep.subr.bf16.mxu0 %v5990_v9  ;;  %v1299_v63 = vmax.f32 %v958_v20, 0.0 }
 0x1d1   : > { %v1534_v31 = vsub.f32 %v1296_v26, %v1470_v2  ;;  %v964_v43 = vadd.f32 %v963_v24, %v6178_v34  ;;  %v1532_v56 = vsub.f32 %v1292_v17, %v1468_v16  ;;  %v1300_v7 = vmax.f32 %v960_v1, 0.0 }
 0x1d2   : > { %v1303_v6 = vmax.f32 %v962_v52, 0.0  ;;  %v1587_v59 = vpack.c.bf16 %v1533_v5, %v1531_v0 }
 0x1d3   : > { %v1304_v23 = vmax.f32 %v964_v43, 0.0  ;;  %v1588_v21 = vpack.c.bf16 %v1534_v31, %v1532_v56  ;;  %1979 = vmatpush1.bf16.msra.mxu0 %v5997_v12 }
 0x1d4   : > { %v6259_v8 = vpack.c.bf16 %v1303_v6, %v1299_v63  ;;  %1980 = vmatprep.subr.bf16.mxu0 %v6002_v15 }
 0x1d5   : > { %v6262_v46 = vpack.c.bf16 %v1304_v23, %v1300_v7  ;;  %v967_v10 = vpop.f32.mrb[24].mxu0  ;;  %1843 = vmatprep.mubr.bf16.mxu0 %v1588_v21 }
 0x1d6   : > { %v1471_v9 = vunpack.c.l.bf16 %v6259_v8  ;;  %v1473_v36 = vunpack.c.h.bf16 %v6259_v8  ;;  %v968_v49 = vadd.f32 %v967_v10, %v6175_v33  ;;  %v969_v11 = vpop.f32.mrb[25].mxu0  ;;  %1844 = vmatmul.mubr.bf16.gmra.mrb[80].mxu0 %v1587_v59 }
 0x1d7   : > { %v1472_v37 = vunpack.c.l.bf16 %v6262_v46  ;;  %v1474_v12 = vunpack.c.h.bf16 %v6262_v46  ;;  %v970_v17 = vadd.f32 %v969_v11, %v6178_v34  ;;  %v971_v26 = vpop.f32.mrb[26].mxu0  ;;  %1981 = vmatpush1.bf16.msra.mxu0 %v6009_v18 }
 0x1d8   : > { %v1537_v15 = vsub.f32 %v1303_v6, %v1473_v36  ;;  %v972_v27 = vadd.f32 %v971_v26, %v6175_v33  ;;  %v973_v4 = vpop.f32.mrb[27].mxu0  ;;  %v1535_v62 = vsub.f32 %v1299_v63, %v1471_v9  ;;  %1982 = vmatprep.subr.bf16.mxu0 %v6012_v19  ;;  %v1307_v16 = vmax.f32 %v968_v49, 0.0 }
 0x1d9   : > { %v1538_v39 = vsub.f32 %v1304_v23, %v1474_v12  ;;  %v974_v20 = vadd.f32 %v973_v4, %v6178_v34  ;;  %v1536_v45 = vsub.f32 %v1300_v7, %v1472_v37  ;;  %v1308_v30 = vmax.f32 %v970_v17, 0.0 }
 0x1da   : > { %v1311_v2 = vmax.f32 %v972_v27, 0.0  ;;  %v1589_v1 = vpack.c.bf16 %v1537_v15, %v1535_v62 }
 0x1db   : > { %v1312_v5 = vmax.f32 %v974_v20, 0.0  ;;  %v1590_v52 = vpack.c.bf16 %v1538_v39, %v1536_v45  ;;  %1983 = vmatpush1.bf16.msra.mxu0 %v6019_v22 }
 0x1dc   : > { %v6275_v18 = vpack.c.bf16 %v1311_v2, %v1307_v16  ;;  %1984 = vmatprep.subr.bf16.mxu0 %v6024_v25 }
 0x1dd   : > { %v6278_v24 = vpack.c.bf16 %v1312_v5, %v1308_v30  ;;  %v977_v0 = vpop.f32.mrb[28].mxu0  ;;  %1853 = vmatprep.mubr.bf16.mxu0 %v1590_v52 }
 0x1de   : > { %v1475_v19 = vunpack.c.l.bf16 %v6275_v18  ;;  %v1477_v31 = vunpack.c.h.bf16 %v6275_v18  ;;  %v978_v43 = vadd.f32 %v977_v0, %v6175_v33  ;;  %v979_v56 = vpop.f32.mrb[29].mxu0  ;;  %1854 = vmatmul.mubr.bf16.gmra.mrb[84].mxu0 %v1589_v1 }
 0x1df   : > { %v1476_v63 = vunpack.c.l.bf16 %v6278_v24  ;;  %v1478_v22 = vunpack.c.h.bf16 %v6278_v24  ;;  %v980_v6 = vadd.f32 %v979_v56, %v6178_v34  ;;  %v981_v59 = vpop.f32.mrb[30].mxu0  ;;  %1985 = vmatpush1.bf16.msra.mxu0 %v6031_v28 }
 0x1e0   : > { %v1541_v25 = vsub.f32 %v1311_v2, %v1477_v31  ;;  %v982_v7 = vadd.f32 %v981_v59, %v6175_v33  ;;  %v983_v23 = vpop.f32.mrb[31].mxu0  ;;  %v1539_v21 = vsub.f32 %v1307_v16, %v1475_v19  ;;  %1986 = vmatprep.subr.bf16.mxu0 %v6034_v29  ;;  %v1315_v49 = vmax.f32 %v978_v43, 0.0 }
 0x1e1   : > { %v1542_v10 = vsub.f32 %v1312_v5, %v1478_v22  ;;  %v984_v9 = vadd.f32 %v983_v23, %v6178_v34  ;;  %v1540_v36 = vsub.f32 %v1308_v30, %v1476_v63  ;;  %v1316_v12 = vmax.f32 %v980_v6, 0.0 }
 0x1e2   : > { %v1319_v11 = vmax.f32 %v982_v7, 0.0  ;;  %v1591_v37 = vpack.c.bf16 %v1541_v25, %v1539_v21 }
 0x1e3   : > { %v1320_v17 = vmax.f32 %v984_v9, 0.0  ;;  %v1592_v26 = vpack.c.bf16 %v1542_v10, %v1540_v36  ;;  %1987 = vmatpush1.bf16.msra.mxu0 %v6041_v32 }
 0x1e4   : > { %v6291_v28 = vpack.c.bf16 %v1319_v11, %v1315_v49  ;;  %1988 = vmatprep.subr.bf16.mxu0 %v6046_v35 }
 0x1e5   : > { %v6294_v15 = vpack.c.bf16 %v1320_v17, %v1316_v12  ;;  %v987_v27 = vpop.f32.mrb[32].mxu0  ;;  %1863 = vmatprep.mubr.bf16.mxu0 %v1592_v26 }
 0x1e6   : > { %v1479_v29 = vunpack.c.l.bf16 %v6291_v28  ;;  %v1481_v4 = vunpack.c.h.bf16 %v6291_v28  ;;  %v988_v62 = vadd.f32 %v987_v27, %v6175_v33  ;;  %v989_v39 = vpop.f32.mrb[33].mxu0  ;;  %1864 = vmatmul.mubr.bf16.gmra.mrb[88].mxu0 %v1591_v37 }
 0x1e7   : > { %v1480_v20 = vunpack.c.l.bf16 %v6294_v15  ;;  %v1482_v32 = vunpack.c.h.bf16 %v6294_v15  ;;  %v990_v45 = vadd.f32 %v989_v39, %v6178_v34  ;;  %v991_v16 = vpop.f32.mrb[34].mxu0  ;;  %1989 = vmatpush1.bf16.msra.mxu0 %v6053_v38 }
 0x1e8   : > { %v1545_v35 = vsub.f32 %v1319_v11, %v1481_v4  ;;  %v992_v2 = vadd.f32 %v991_v16, %v6175_v33  ;;  %v993_v1 = vpop.f32.mrb[35].mxu0  ;;  %v1543_v30 = vsub.f32 %v1315_v49, %v1479_v29  ;;  %1990 = vmatprep.subr.bf16.mxu0 %v6056_v44  ;;  %v1323_v19 = vmax.f32 %v988_v62, 0.0 }
 0x1e9   : > { %v1546_v5 = vsub.f32 %v1320_v17, %v1482_v32  ;;  %v994_v52 = vadd.f32 %v993_v1, %v6178_v34  ;;  %v1544_v0 = vsub.f32 %v1316_v12, %v1480_v20  ;;  %v1324_v56 = vmax.f32 %v990_v45, 0.0 }
 0x1ea   : > { %v1327_v31 = vmax.f32 %v992_v2, 0.0  ;;  %v1593_v43 = vpack.c.bf16 %v1545_v35, %v1543_v30 }
 0x1eb   : > { %v1328_v63 = vmax.f32 %v994_v52, 0.0  ;;  %v1594_v22 = vpack.c.bf16 %v1546_v5, %v1544_v0  ;;  %1991 = vmatpush1.bf16.msra.mxu0 %v6063_v48 }
 0x1ec   : > { %v6307_v38 = vpack.c.bf16 %v1327_v31, %v1323_v19  ;;  %1992 = vmatprep.subr.bf16.mxu0 %v6115_v14 }
 0x1ed   : > { %v6310_v6 = vpack.c.bf16 %v1328_v63, %v1324_v56  ;;  %v997_v59 = vpop.f32.mrb[36].mxu0  ;;  %1873 = vmatprep.mubr.bf16.mxu0 %v1594_v22 }
 0x1ee   : > { %v1483_v44 = vunpack.c.l.bf16 %v6307_v38  ;;  %v1485_v25 = vunpack.c.h.bf16 %v6307_v38  ;;  %v998_v7 = vadd.f32 %v997_v59, %v6175_v33  ;;  %v999_v23 = vpop.f32.mrb[37].mxu0  ;;  %1874 = vmatmul.mubr.bf16.gmra.mrb[92].mxu0 %v1593_v43 }
 0x1ef   : > { %v1484_v21 = vunpack.c.l.bf16 %v6310_v6  ;;  %v1486_v48 = vunpack.c.h.bf16 %v6310_v6  ;;  %v1000_v10 = vadd.f32 %v999_v23, %v6178_v34  ;;  %v1001_v9 = vpop.f32.mrb[38].mxu0  ;;  %1993 = vmatpush1.bf16.msra.mxu0 %v6113_v13 }
 0x1f0   : > { %v1549_v14 = vsub.f32 %v1327_v31, %v1485_v25  ;;  %v1002_v36 = vadd.f32 %v1001_v9, %v6175_v33  ;;  %v1003_v49 = vpop.f32.mrb[39].mxu0  ;;  %v1547_v11 = vsub.f32 %v1323_v19, %v1483_v44  ;;  %1994 = vmatprep.subr.bf16.mxu0 %v6129_v54  ;;  %v1331_v26 = vmax.f32 %v998_v7, 0.0 }
 0x1f1   : > { %v1550_v37 = vsub.f32 %v1328_v63, %v1486_v48  ;;  %v1004_v12 = vadd.f32 %v1003_v49, %v6178_v34  ;;  %v1548_v17 = vsub.f32 %v1324_v56, %v1484_v21  ;;  %v1332_v4 = vmax.f32 %v1000_v10, 0.0 }
 0x1f2   : > { %v1335_v27 = vmax.f32 %v1002_v36, 0.0  ;;  %v1595_v29 = vpack.c.bf16 %v1549_v14, %v1547_v11 }
 0x1f3   : > { %v1336_v62 = vmax.f32 %v1004_v12, 0.0  ;;  %v1596_v39 = vpack.c.bf16 %v1550_v37, %v1548_v17  ;;  %1995 = vmatpush1.bf16.msra.mxu0 %v6131_v55 }
 0x1f4   : > { %v6323_v13 = vpack.c.bf16 %v1335_v27, %v1331_v26 }
 0x1f5   : > { %v6325_v20 = vpack.c.bf16 %v1336_v62, %v1332_v4  ;;  %v1007_v32 = vpop.f32.mrb[40].mxu0  ;;  %1883 = vmatprep.mubr.bf16.mxu0 %v1596_v39 }
 0x1f6   : > { %v1487_v54 = vunpack.c.l.bf16 %v6323_v13  ;;  %v1489_v45 = vunpack.c.h.bf16 %v6323_v13  ;;  %v1008_v16 = vadd.f32 %v1007_v32, %v6175_v33  ;;  %v1009_v35 = vpop.f32.mrb[41].mxu0  ;;  %1884 = vmatmul.mubr.bf16.gmra.mrb[96].mxu0 %v1595_v29 }
 0x1f7   : > { %v1488_v2 = vunpack.c.l.bf16 %v6325_v20  ;;  %v1490_v1 = vunpack.c.h.bf16 %v6325_v20  ;;  %v1010_v55 = vadd.f32 %v1009_v35, %v6178_v34  ;;  %v1011_v30 = vpop.f32.mrb[42].mxu0 }
 0x1f8   : > { %v1553_v5 = vsub.f32 %v1335_v27, %v1489_v45  ;;  %v1012_v52 = vadd.f32 %v1011_v30, %v6175_v33  ;;  %v1013_v0 = vpop.f32.mrb[43].mxu0  ;;  %v1551_v19 = vsub.f32 %v1331_v26, %v1487_v54  ;;  %v1339_v63 = vmax.f32 %v1008_v16, 0.0 }
 0x1f9   : > { %v1554_v31 = vsub.f32 %v1336_v62, %v1490_v1  ;;  %v1014_v43 = vadd.f32 %v1013_v0, %v6178_v34  ;;  %v1552_v56 = vsub.f32 %v1332_v4, %v1488_v2  ;;  %v1340_v44 = vmax.f32 %v1010_v55, 0.0 }
 0x1fa   : > { %v1343_v22 = vmax.f32 %v1012_v52, 0.0  ;;  %v1597_v59 = vpack.c.bf16 %v1553_v5, %v1551_v19 }
 0x1fb   : > { %v1344_v25 = vmax.f32 %v1014_v43, 0.0  ;;  %v1598_v7 = vpack.c.bf16 %v1554_v31, %v1552_v56 }
 0x1fc   : > { %v6335_v23 = vpack.c.bf16 %v1343_v22, %v1339_v63 }
 0x1fd   : > { %v6337_v21 = vpack.c.bf16 %v1344_v25, %v1340_v44  ;;  %v1017_v48 = vpop.f32.mrb[44].mxu0  ;;  %1893 = vmatprep.mubr.bf16.mxu0 %v1598_v7 }
 0x1fe   : > { %v1491_v10 = vunpack.c.l.bf16 %v6335_v23  ;;  %v1493_v9 = vunpack.c.h.bf16 %v6335_v23  ;;  %v1018_v14 = vadd.f32 %v1017_v48, %v6175_v33  ;;  %v1019_v36 = vpop.f32.mrb[45].mxu0  ;;  %1894 = vmatmul.mubr.bf16.gmra.mrb[100].mxu0 %v1597_v59 }
 0x1ff   : > { %v1492_v49 = vunpack.c.l.bf16 %v6337_v21  ;;  %v1494_v11 = vunpack.c.h.bf16 %v6337_v21  ;;  %v1020_v37 = vadd.f32 %v1019_v36, %v6178_v34  ;;  %v1021_v12 = vpop.f32.mrb[46].mxu0 }
 0x200   : > { %v1557_v17 = vsub.f32 %v1343_v22, %v1493_v9  ;;  %v1022_v26 = vadd.f32 %v1021_v12, %v6175_v33  ;;  %v1023_v27 = vpop.f32.mrb[47].mxu0  ;;  %v1555_v29 = vsub.f32 %v1339_v63, %v1491_v10  ;;  %v1347_v32 = vmax.f32 %v1018_v14, 0.0 }
 0x201   : > { %v1558_v4 = vsub.f32 %v1344_v25, %v1494_v11  ;;  %v1024_v62 = vadd.f32 %v1023_v27, %v6178_v34  ;;  %v1556_v39 = vsub.f32 %v1340_v44, %v1492_v49  ;;  %v1348_v16 = vmax.f32 %v1020_v37, 0.0 }
 0x202   : > { %v1351_v54 = vmax.f32 %v1022_v26, 0.0  ;;  %v1599_v45 = vpack.c.bf16 %v1557_v17, %v1555_v29 }
 0x203   : > { %v1352_v35 = vmax.f32 %v1024_v62, 0.0  ;;  %v1600_v2 = vpack.c.bf16 %v1558_v4, %v1556_v39 }
 0x204   : > { %v6347_v1 = vpack.c.bf16 %v1351_v54, %v1347_v32 }
 0x205   : > { %v6349_v55 = vpack.c.bf16 %v1352_v35, %v1348_v16  ;;  %v1027_v30 = vpop.f32.mrb[48].mxu0  ;;  %1903 = vmatprep.mubr.bf16.mxu0 %v1600_v2 }
 0x206   : > { %v1495_v5 = vunpack.c.l.bf16 %v6347_v1  ;;  %v1497_v52 = vunpack.c.h.bf16 %v6347_v1  ;;  %v1028_v0 = vadd.f32 %v1027_v30, %v6175_v33  ;;  %v1029_v19 = vpop.f32.mrb[49].mxu0  ;;  %1904 = vmatmul.mubr.bf16.gmra.mrb[104].mxu0 %v1599_v45 }
 0x207   : > { %v1496_v31 = vunpack.c.l.bf16 %v6349_v55  ;;  %v1498_v43 = vunpack.c.h.bf16 %v6349_v55  ;;  %v1030_v56 = vadd.f32 %v1029_v19, %v6178_v34  ;;  %v1031_v63 = vpop.f32.mrb[50].mxu0 }
 0x208   : > { %v1561_v22 = vsub.f32 %v1351_v54, %v1497_v52  ;;  %v1032_v59 = vadd.f32 %v1031_v63, %v6175_v33  ;;  %v1033_v44 = vpop.f32.mrb[51].mxu0  ;;  %v1559_v25 = vsub.f32 %v1347_v32, %v1495_v5  ;;  %v1355_v9 = vmax.f32 %v1028_v0, 0.0 }
 0x209   : > { %v1562_v7 = vsub.f32 %v1352_v35, %v1498_v43  ;;  %v1034_v48 = vadd.f32 %v1033_v44, %v6178_v34  ;;  %v1560_v10 = vsub.f32 %v1348_v16, %v1496_v31  ;;  %v1356_v49 = vmax.f32 %v1030_v56, 0.0 }
 0x20a   : > { %v1359_v14 = vmax.f32 %v1032_v59, 0.0  ;;  %v1601_v36 = vpack.c.bf16 %v1561_v22, %v1559_v25 }
 0x20b   : > { %v1360_v11 = vmax.f32 %v1034_v48, 0.0  ;;  %v1602_v37 = vpack.c.bf16 %v1562_v7, %v1560_v10 }
 0x20c   : > { %v6359_v12 = vpack.c.bf16 %v1359_v14, %v1355_v9 }
 0x20d   : > { %v6361_v17 = vpack.c.bf16 %v1360_v11, %v1356_v49  ;;  %v1037_v26 = vpop.f32.mrb[52].mxu0  ;;  %1913 = vmatprep.mubr.bf16.mxu0 %v1602_v37 }
 0x20e   : > { %v1499_v27 = vunpack.c.l.bf16 %v6359_v12  ;;  %v1501_v29 = vunpack.c.h.bf16 %v6359_v12  ;;  %v1038_v4 = vadd.f32 %v1037_v26, %v6175_v33  ;;  %v1039_v62 = vpop.f32.mrb[53].mxu0  ;;  %1914 = vmatmul.mubr.bf16.gmra.mrb[108].mxu0 %v1601_v36 }
 0x20f   : > { %v1500_v39 = vunpack.c.l.bf16 %v6361_v17  ;;  %v1502_v32 = vunpack.c.h.bf16 %v6361_v17  ;;  %v1040_v54 = vadd.f32 %v1039_v62, %v6178_v34  ;;  %v1041_v45 = vpop.f32.mrb[54].mxu0 }
 0x210   : > { %v1565_v16 = vsub.f32 %v1359_v14, %v1501_v29  ;;  %v1042_v35 = vadd.f32 %v1041_v45, %v6175_v33  ;;  %v1043_v2 = vpop.f32.mrb[55].mxu0  ;;  %v1563_v30 = vsub.f32 %v1355_v9, %v1499_v27  ;;  %v1363_v19 = vmax.f32 %v1038_v4, 0.0 }
 0x211   : > { %v1566_v5 = vsub.f32 %v1360_v11, %v1502_v32  ;;  %v1044_v52 = vadd.f32 %v1043_v2, %v6178_v34  ;;  %v1564_v0 = vsub.f32 %v1356_v49, %v1500_v39  ;;  %v1364_v56 = vmax.f32 %v1040_v54, 0.0 }
 0x212   : > { %v1367_v31 = vmax.f32 %v1042_v35, 0.0  ;;  %v1603_v43 = vpack.c.bf16 %v1565_v16, %v1563_v30 }
 0x213   : > { %v1368_v63 = vmax.f32 %v1044_v52, 0.0  ;;  %v1604_v22 = vpack.c.bf16 %v1566_v5, %v1564_v0 }
 0x214   : > { %v6371_v59 = vpack.c.bf16 %v1367_v31, %v1363_v19 }
 0x215   : > { %v6373_v44 = vpack.c.bf16 %v1368_v63, %v1364_v56  ;;  %v1047_v25 = vpop.f32.mrb[56].mxu0  ;;  %1923 = vmatprep.mubr.bf16.mxu0 %v1604_v22 }
 0x216   : > { %v1503_v7 = vunpack.c.l.bf16 %v6371_v59  ;;  %v1505_v48 = vunpack.c.h.bf16 %v6371_v59  ;;  %v1048_v10 = vadd.f32 %v1047_v25, %v6175_v33  ;;  %v1049_v9 = vpop.f32.mrb[57].mxu0  ;;  %1924 = vmatmul.mubr.bf16.gmra.mrb[112].mxu0 %v1603_v43 }
 0x217   : > { %v1504_v14 = vunpack.c.l.bf16 %v6373_v44  ;;  %v1506_v36 = vunpack.c.h.bf16 %v6373_v44  ;;  %v1050_v49 = vadd.f32 %v1049_v9, %v6178_v34  ;;  %v1051_v11 = vpop.f32.mrb[58].mxu0 }
 0x218   : > { %v1569_v37 = vsub.f32 %v1367_v31, %v1505_v48  ;;  %v1052_v26 = vadd.f32 %v1051_v11, %v6175_v33  ;;  %v1053_v27 = vpop.f32.mrb[59].mxu0  ;;  %v1567_v29 = vsub.f32 %v1363_v19, %v1503_v7  ;;  %v1371_v32 = vmax.f32 %v1048_v10, 0.0 }
 0x219   : > { %v1570_v4 = vsub.f32 %v1368_v63, %v1506_v36  ;;  %v1054_v62 = vadd.f32 %v1053_v27, %v6178_v34  ;;  %v1568_v39 = vsub.f32 %v1364_v56, %v1504_v14  ;;  %v1372_v16 = vmax.f32 %v1050_v49, 0.0 }
 0x21a   : > { %v1375_v54 = vmax.f32 %v1052_v26, 0.0  ;;  %v1605_v45 = vpack.c.bf16 %v1569_v37, %v1567_v29 }
 0x21b   : > { %v1376_v35 = vmax.f32 %v1054_v62, 0.0  ;;  %v1606_v2 = vpack.c.bf16 %v1570_v4, %v1568_v39 }
 0x21c   : > { %v6383_v30 = vpack.c.bf16 %v1375_v54, %v1371_v32 }
 0x21d   : > { %v6385_v5 = vpack.c.bf16 %v1376_v35, %v1372_v16  ;;  %v1057_v52 = vpop.f32.mrb[60].mxu0  ;;  %1933 = vmatprep.mubr.bf16.mxu0 %v1606_v2 }
 0x21e   : > { %v1507_v0 = vunpack.c.l.bf16 %v6383_v30  ;;  %v1509_v19 = vunpack.c.h.bf16 %v6383_v30  ;;  %v1058_v31 = vadd.f32 %v1057_v52, %v6175_v33  ;;  %v1059_v43 = vpop.f32.mrb[61].mxu0  ;;  %1934 = vmatmul.mubr.bf16.gmra.mrb[116].mxu0 %v1605_v45 }
 0x21f   : > { %v1508_v56 = vunpack.c.l.bf16 %v6385_v5  ;;  %v1510_v63 = vunpack.c.h.bf16 %v6385_v5  ;;  %v1060_v22 = vadd.f32 %v1059_v43, %v6178_v34  ;;  %v1061_v25 = vpop.f32.mrb[62].mxu0  ;;  %v8936_v43 = vld [vmem:[#allocation17_spill] sm:$0xff] }
 0x220   : > { %v1573_v7 = vsub.f32 %v1375_v54, %v1509_v19  ;;  %v1062_v48 = vadd.f32 %v1061_v25, %v6175_v33  ;;  %v1063_v10 = vpop.f32.mrb[63].mxu0  ;;  %v1571_v9 = vsub.f32 %v1371_v32, %v1507_v0  ;;  %v1379_v11 = vmax.f32 %v1058_v31, 0.0  ;;  %v5170_v19 = vld [vmem:[#allocation5 + $0x1ec] ss:$16 sps:$4 sm:$0xff]   ;;  %v5172_v31 = vld [vmem:[#allocation5 + $0x1e8] ss:$16 sps:$4 sm:$0xff]  }
 0x221   : > { %v1574_v14 = vsub.f32 %v1376_v35, %v1510_v63  ;;  %v1064_v36 = vadd.f32 %v1063_v10, %v6178_v34  ;;  %v1572_v49 = vsub.f32 %v1372_v16, %v1508_v56  ;;  %v1380_v27 = vmax.f32 %v1060_v22, 0.0  ;;  %v8937_v56 = vld [vmem:[#allocation18_spill] sm:$0xff]  ;;  %v8938_v63 = vld [vmem:[#allocation19_spill] sm:$0xff]  ;;  %v8939_v22 = vld [vmem:[#allocation20_spill] sm:$0xff] }
 0x222   : > { %v1383_v37 = vmax.f32 %v1062_v48, 0.0  ;;  %v1607_v26 = vpack.c.bf16 %v1573_v7, %v1571_v9  ;;  %v8940_v25 = vld [vmem:[#allocation21_spill] sm:$0xff]  ;;  %v8941_v7 = vld [vmem:[#allocation22_spill] sm:$0xff]  ;;  %v8942_v48 = vld [vmem:[#allocation23_spill] sm:$0xff] }
 0x223   : > { %v1384_v29 = vmax.f32 %v1064_v36, 0.0  ;;  %v1608_v4 = vpack.c.bf16 %v1574_v14, %v1572_v49  ;;  %v8943_v10 = vld [vmem:[#allocation24_spill] sm:$0xff]  ;;  %v8944_v9 = vld [vmem:[#allocation25_spill] sm:$0xff]  ;;  %v8946_v14 = vld [vmem:[#allocation27_spill] sm:$0xff] }
 0x224   : > { %v6395_v62 = vpack.c.bf16 %v1383_v37, %v1379_v11  ;;  %v8947_v36 = vld [vmem:[#allocation28_spill] sm:$0xff]  ;;  %v8948_v49 = vld [vmem:[#allocation47_spill] sm:$0xff] }
 0x225   : > { %v6397_v39 = vpack.c.bf16 %v1384_v29, %v1380_v27  ;;  %1943 = vmatprep.mubr.bf16.mxu0 %v1608_v4 }
 0x226   : > { %v1511_v54 = vunpack.c.l.bf16 %v6395_v62  ;;  %v1513_v33 = vunpack.c.h.bf16 %v6395_v62  ;;  %1944 = vmatmul.mubr.bf16.gmra.mrb[120].mxu0 %v1607_v26 }
 0x227   : > { %v1512_v32 = vunpack.c.l.bf16 %v6397_v39  ;;  %v1514_v34 = vunpack.c.h.bf16 %v6397_v39 }
 0x228   : > { %v1577_v45 = vsub.f32 %v1383_v37, %v1513_v33  ;;  %v1575_v16 = vsub.f32 %v1379_v11, %v1511_v54  ;;  %v8949_v37 = vld [vmem:[#allocation48_spill] sm:$0xff]  ;;  %v8950_v33 = vld [vmem:[#allocation29_spill] sm:$0xff] }
 0x229   : > { %v1578_v35 = vsub.f32 %v1384_v29, %v1514_v34  ;;  %v1576_v2 = vsub.f32 %v1380_v27, %v1512_v32 }
 0x22a   : > { %v1609_v52 = vpack.c.bf16 %v1577_v45, %v1575_v16  ;;  %v8951_v16 = vld [vmem:[#allocation30_spill] sm:$0xff] }
 0x22b   : > { %v1610_v0 = vpack.c.bf16 %v1578_v35, %v1576_v2 }
 0x22d   : > { %1953 = vmatprep.mubr.bf16.mxu0 %v1610_v0 }
 0x22e   : > { %1954 = vmatmul.mubr.bf16.gmra.mrb[124].mxu0 %v1609_v52 }
 0x22f   : > { %1996 = vmatprep.mubr.bf16.mxu0 %v6186_v3  ;;  %v5130_v3 = vld [vmem:[#allocation5 + $0x28] ss:$16 sps:$4 sm:$0xff]  }
 0x236   : > { %1997 = vmatmul.mubr.bf16.vlgmr.msra.gmra.mrb[64].mxu0 %v6184_v58  ;;  %v5128_v58 = vld [vmem:[#allocation5 + $0x2c] ss:$16 sps:$4 sm:$0xff]  }
 0x237   : > { %2006 = vmatprep.mubr.bf16.mxu0 %v6198_v51  ;;  %v5125_v51 = vld [vmem:[#allocation5 + $0xc] ss:$16 sps:$4 sm:$0xff]  }
 0x238   : > { %1066 = vmatprep.subr.bf16.mxu1 %v5125_v51 }
 0x23e   : > { %2007 = vmatmul.mubr.bf16.gmra.mrb[68].mxu0 %v6196_v53  ;;  %v5127_v53 = vld [vmem:[#allocation5 + $0x8] ss:$16 sps:$4 sm:$0xff]  }
 0x23f   : > { %2016 = vmatprep.mubr.bf16.mxu0 %v6214_v57  ;;  %1067 = vmatpush1.bf16.msra.mxu1 %v5127_v53  ;;  %v5133_v57 = vld [vmem:[#allocation5 + $0x48] ss:$16 sps:$4 sm:$0xff]  }
 0x240   : > { %1068 = vmatprep.subr.bf16.mxu1 %v5128_v58 }
 0x243   : > { %1069 = vmatpush1.bf16.msra.mxu1 %v5130_v3  ;;  %v8952_v3 = vld [vmem:[#allocation31_spill] sm:$0xff] }
 0x246   : > { %2017 = vmatmul.mubr.bf16.gmra.mrb[72].mxu0 %v6211_v42  ;;  %v5131_v42 = vld [vmem:[#allocation5 + $0x4c] ss:$16 sps:$4 sm:$0xff]  }
 0x247   : > { %2026 = vmatprep.mubr.bf16.mxu0 %v6230_v47  ;;  %1070 = vmatprep.subr.bf16.mxu1 %v5131_v42  ;;  %v5136_v47 = vld [vmem:[#allocation5 + $0x68] ss:$16 sps:$4 sm:$0xff]  }
 0x248   : > { %1071 = vmatpush1.bf16.msra.mxu1 %v5133_v57 }
 0x24e   : > { %2027 = vmatmul.mubr.bf16.gmra.mrb[76].mxu0 %v6227_v50  ;;  %v5134_v50 = vld [vmem:[#allocation5 + $0x6c] ss:$16 sps:$4 sm:$0xff]  }
 0x24f   : > { %2036 = vmatprep.mubr.bf16.mxu0 %v6246_v61  ;;  %1072 = vmatprep.subr.bf16.mxu1 %v5134_v50  ;;  %v5139_v61 = vld [vmem:[#allocation5 + $0x88] ss:$16 sps:$4 sm:$0xff]  }
 0x250   : > { %1073 = vmatpush1.bf16.msra.mxu1 %v5136_v47  ;;  %v8953_v47 = vld [vmem:[#allocation32_spill] sm:$0xff] }
 0x256   : > { %2037 = vmatmul.mubr.bf16.gmra.mrb[80].mxu0 %v6243_v60  ;;  %v5137_v60 = vld [vmem:[#allocation5 + $0x8c] ss:$16 sps:$4 sm:$0xff]  }
 0x257   : > { %2046 = vmatprep.mubr.bf16.mxu0 %v6262_v46  ;;  %1074 = vmatprep.subr.bf16.mxu1 %v5137_v60  ;;  %v5142_v46 = vld [vmem:[#allocation5 + $0xa8] ss:$16 sps:$4 sm:$0xff]  }
 0x258   : > { %1075 = vmatpush1.bf16.msra.mxu1 %v5139_v61 }
 0x25e   : > { %2047 = vmatmul.mubr.bf16.gmra.mrb[84].mxu0 %v6259_v8  ;;  %v5140_v8 = vld [vmem:[#allocation5 + $0xac] ss:$16 sps:$4 sm:$0xff]  }
 0x25f   : > { %2056 = vmatprep.mubr.bf16.mxu0 %v6278_v24  ;;  %1076 = vmatprep.subr.bf16.mxu1 %v5140_v8  ;;  %v5145_v24 = vld [vmem:[#allocation5 + $0xc8] ss:$16 sps:$4 sm:$0xff]  }
 0x260   : > { %1077 = vmatpush1.bf16.msra.mxu1 %v5142_v46 }
 0x266   : > { %2057 = vmatmul.mubr.bf16.gmra.mrb[88].mxu0 %v6275_v18  ;;  %v5143_v18 = vld [vmem:[#allocation5 + $0xcc] ss:$16 sps:$4 sm:$0xff]  }
 0x267   : > { %2066 = vmatprep.mubr.bf16.mxu0 %v6294_v15  ;;  %1078 = vmatprep.subr.bf16.mxu1 %v5143_v18  ;;  %v5148_v15 = vld [vmem:[#allocation5 + $0xe8] ss:$16 sps:$4 sm:$0xff]  }
 0x268   : > { %1079 = vmatpush1.bf16.msra.mxu1 %v5145_v24 }
 0x26e   : > { %2067 = vmatmul.mubr.bf16.gmra.mrb[92].mxu0 %v6291_v28  ;;  %v5146_v28 = vld [vmem:[#allocation5 + $0xec] ss:$16 sps:$4 sm:$0xff]  }
 0x26f   : > { %2076 = vmatprep.mubr.bf16.mxu0 %v6310_v6  ;;  %1080 = vmatprep.subr.bf16.mxu1 %v5146_v28  ;;  %v5151_v6 = vld [vmem:[#allocation5 + $0x108] ss:$16 sps:$4 sm:$0xff]  }
 0x270   : > { %1081 = vmatpush1.bf16.msra.mxu1 %v5148_v15 }
 0x276   : > { %2077 = vmatmul.mubr.bf16.gmra.mrb[96].mxu0 %v6307_v38  ;;  %v5149_v38 = vld [vmem:[#allocation5 + $0x10c] ss:$16 sps:$4 sm:$0xff]  }
 0x277   : > { %2086 = vmatprep.mubr.bf16.mxu0 %v6325_v20  ;;  %1082 = vmatprep.subr.bf16.mxu1 %v5149_v38  ;;  %v5154_v20 = vld [vmem:[#allocation5 + $0x128] ss:$16 sps:$4 sm:$0xff]   ;;  %v8954_v38 = vld [vmem:[#allocation33_spill] sm:$0xff] }
 0x278   : > { %1083 = vmatpush1.bf16.msra.mxu1 %v5151_v6 }
 0x27e   : > { %2087 = vmatmul.mubr.bf16.gmra.mrb[100].mxu0 %v6323_v13  ;;  %v5152_v13 = vld [vmem:[#allocation5 + $0x12c] ss:$16 sps:$4 sm:$0xff]  }
 0x27f   : > { %2096 = vmatprep.mubr.bf16.mxu0 %v6337_v21  ;;  %1084 = vmatprep.subr.bf16.mxu1 %v5152_v13  ;;  %v5157_v21 = vld [vmem:[#allocation5 + $0x148] ss:$16 sps:$4 sm:$0xff]  }
 0x280   : > { %1085 = vmatpush1.bf16.msra.mxu1 %v5154_v20  ;;  %v8955_v20 = vld [vmem:[#allocation34_spill] sm:$0xff] }
 0x286   : > { %2097 = vmatmul.mubr.bf16.gmra.mrb[104].mxu0 %v6335_v23  ;;  %v5155_v23 = vld [vmem:[#allocation5 + $0x14c] ss:$16 sps:$4 sm:$0xff]  }
 0x287   : > { %2106 = vmatprep.mubr.bf16.mxu0 %v6349_v55  ;;  %1086 = vmatprep.subr.bf16.mxu1 %v5155_v23  ;;  %v5160_v55 = vld [vmem:[#allocation5 + $0x168] ss:$16 sps:$4 sm:$0xff]  }
 0x288   : > { %1087 = vmatpush1.bf16.msra.mxu1 %v5157_v21 }
 0x28e   : > { %2107 = vmatmul.mubr.bf16.gmra.mrb[108].mxu0 %v6347_v1  ;;  %v5158_v1 = vld [vmem:[#allocation5 + $0x16c] ss:$16 sps:$4 sm:$0xff]  }
 0x28f   : > { %2116 = vmatprep.mubr.bf16.mxu0 %v6361_v17  ;;  %1088 = vmatprep.subr.bf16.mxu1 %v5158_v1  ;;  %v5163_v17 = vld [vmem:[#allocation5 + $0x188] ss:$16 sps:$4 sm:$0xff]  }
 0x290   : > { %1089 = vmatpush1.bf16.msra.mxu1 %v5160_v55 }
 0x296   : > { %2117 = vmatmul.mubr.bf16.gmra.mrb[112].mxu0 %v6359_v12  ;;  %v5161_v12 = vld [vmem:[#allocation5 + $0x18c] ss:$16 sps:$4 sm:$0xff]  }
 0x297   : > { %2126 = vmatprep.mubr.bf16.mxu0 %v6373_v44  ;;  %1090 = vmatprep.subr.bf16.mxu1 %v5161_v12  ;;  %v5166_v44 = vld [vmem:[#allocation5 + $0x1a8] ss:$16 sps:$4 sm:$0xff]  }
 0x298   : > { %1091 = vmatpush1.bf16.msra.mxu1 %v5163_v17 }
 0x29e   : > { %2127 = vmatmul.mubr.bf16.gmra.mrb[116].mxu0 %v6371_v59  ;;  %v5164_v59 = vld [vmem:[#allocation5 + $0x1ac] ss:$16 sps:$4 sm:$0xff]  }
 0x29f   : > { %2136 = vmatprep.mubr.bf16.mxu0 %v6385_v5  ;;  %1092 = vmatprep.subr.bf16.mxu1 %v5164_v59  ;;  %v5169_v5 = vld [vmem:[#allocation5 + $0x1c8] ss:$16 sps:$4 sm:$0xff]  }
 0x2a0   : > { %1093 = vmatpush1.bf16.msra.mxu1 %v5166_v44 }
 0x2a6   : > { %2137 = vmatmul.mubr.bf16.gmra.mrb[120].mxu0 %v6383_v30  ;;  %v5167_v30 = vld [vmem:[#allocation5 + $0x1cc] ss:$16 sps:$4 sm:$0xff]  }
 0x2a7   : > { %2146 = vmatprep.mubr.bf16.mxu0 %v6397_v39  ;;  %1094 = vmatprep.subr.bf16.mxu1 %v5167_v30  ;;  %v8956_v30 = vld [vmem:[#allocation35_spill] sm:$0xff] }
 0x2a8   : > { %1095 = vmatpush1.bf16.msra.mxu1 %v5169_v5 }
 0x2a9   : > { %1096 = vmatprep.subr.bf16.mxu1 %v5170_v19 }
 0x2ac   : > { %1097 = vmatpush1.bf16.msra.mxu1 %v5172_v31  ;;  %v8957_v31 = vld [vmem:[#allocation36_spill] sm:$0xff] }
 0x2ae   : > { %2147 = vmatmul.mubr.bf16.gmra.mrb[124].mxu0 %v6395_v62 }
 0x2af   : > { %1099 = vmatmul.mubr.bf16.vlgmr.msra.gmra.mrb[0].mxu1 %v5917_v40  ;;  %v8945_v40 = vld [vmem:[#allocation26_spill] sm:$0xff] }
 0x2b0   : > { %1108 = vmatprep.mubr.bf16.mxu1 %v5919_v41  ;;  %v2157_v41 = vld [vmem:[%s8727_s4] sm:$0x3] }
 0x2b1   : > { %v6453_v11 = vrot.slane %v2157_v41, %v8948_v49  ;;  %v6456_v26 = vrot.slane %v2157_v41, %v8949_v37 }
 0x2b7   : > { %1109 = vmatmul.mubr.bf16.gmra.mrb[4].mxu1 %v8936_v43 }
 0x2b8   : > { %1118 = vmatprep.mubr.bf16.mxu1 %v8937_v56 }
 0x2bf   : > { %1119 = vmatmul.mubr.bf16.gmra.mrb[8].mxu1 %v8938_v63 }
 0x2c0   : > { %1128 = vmatprep.mubr.bf16.mxu1 %v8939_v22 }
 0x2c7   : > { %1129 = vmatmul.mubr.bf16.gmra.mrb[12].mxu1 %v8940_v25 }
 0x2c8   : > { %1138 = vmatprep.mubr.bf16.mxu1 %v8941_v7 }
 0x2cf   : > { %1139 = vmatmul.mubr.bf16.gmra.mrb[16].mxu1 %v8942_v48 }
 0x2d0   : > { %1148 = vmatprep.mubr.bf16.mxu1 %v8943_v10 }
 0x2d7   : > { %1149 = vmatmul.mubr.bf16.gmra.mrb[20].mxu1 %v8944_v9  ;;  %v8958_v9 = vld [vmem:[#allocation37_spill] sm:$0xff] }
 0x2d8   : > { %1158 = vmatprep.mubr.bf16.mxu1 %v8945_v40 }
 0x2df   : > { %1159 = vmatmul.mubr.bf16.gmra.mrb[24].mxu1 %v8946_v14  ;;  %v8959_v14 = vld [vmem:[#allocation38_spill] sm:$0xff] }
 0x2e0   : > { %1168 = vmatprep.mubr.bf16.mxu1 %v8947_v36 }
 0x2e7   : > { %1169 = vmatmul.mubr.bf16.gmra.mrb[28].mxu1 %v8950_v33 }
 0x2e8   : > { %1178 = vmatprep.mubr.bf16.mxu1 %v8951_v16 }
 0x2ef   : > { %1179 = vmatmul.mubr.bf16.gmra.mrb[32].mxu1 %v8952_v3 }
 0x2f0   : > { %1188 = vmatprep.mubr.bf16.mxu1 %v8953_v47 }
 0x2f7   : > { %1189 = vmatmul.mubr.bf16.gmra.mrb[36].mxu1 %v8954_v38 }
 0x2f8   : > { %1198 = vmatprep.mubr.bf16.mxu1 %v8955_v20  ;;  %v8963_v20 = vld [vmem:[#allocation42_spill] sm:$0xff] }
 0x2ff   : > { %1199 = vmatmul.mubr.bf16.gmra.mrb[40].mxu1 %v8956_v30 }
 0x300   : > { %1208 = vmatprep.mubr.bf16.mxu1 %v8957_v31 }
 0x307   : > { %1209 = vmatmul.mubr.bf16.gmra.mrb[44].mxu1 %v8958_v9 }
 0x308   : > { %1218 = vmatprep.mubr.bf16.mxu1 %v8959_v14 }
 0x309   : > { %v1998_v27 = vpop.f32.mrb[64].mxu0 }
 0x30a   : > { %v6459_v29 = vadd.f32 %v6453_v11, %v1998_v27  ;;  %v2000_v4 = vpop.f32.mrb[65].mxu0 }
 0x30b   : > { %v6462_v62 = vadd.f32 %v6456_v26, %v2000_v4  ;;  %v2002_v39 = vpop.f32.mrb[66].mxu0 }
 0x30c   : > { %v2004_v54 = vpop.f32.mrb[67].mxu0  ;;  %v6466_v32 = vadd.f32 %v6453_v11, %v2002_v39 }
 0x30d   : > { %v6469_v34 = vadd.f32 %v6456_v26, %v2004_v54  ;;  %v2233_v45 = vmax.f32 %v6459_v29, %v6462_v62 }
 0x30f   : > { %2234 = vmax.xlane.f32.xlu0 %v2233_v45  ;;  %v2236_v2 = vmax.f32 %v6466_v32, %v6469_v34 }
 0x311   : > { %v2008_v35 = vpop.f32.mrb[68].mxu0 }
 0x312   : > { %v6477_v52 = vadd.f32 %v6453_v11, %v2008_v35  ;;  %v2010_v0 = vpop.f32.mrb[69].mxu0  ;;  %v8960_v35 = vld [vmem:[#allocation39_spill] sm:$0xff] }
 0x313   : > { %v6480_v51 = vadd.f32 %v6456_v26, %v2010_v0  ;;  %2237 = vmax.xlane.f32.xlu0 %v2236_v2  ;;  %v2012_v53 = vpop.f32.mrb[70].mxu0  ;;  %1219 = vmatmul.mubr.bf16.gmra.mrb[48].mxu1 %v8960_v35 }
 0x314   : > { %v2014_v58 = vpop.f32.mrb[71].mxu0  ;;  %v6484_v42 = vadd.f32 %v6453_v11, %v2012_v53  ;;  %v8961_v53 = vld [vmem:[#allocation40_spill] sm:$0xff] }
 0x315   : > { %v6487_v57 = vadd.f32 %v6456_v26, %v2014_v58  ;;  %v2239_v50 = vmax.f32 %v6477_v52, %v6480_v51  ;;  %1228 = vmatprep.mubr.bf16.mxu1 %v8961_v53 }
 0x317   : > { %2240 = vmax.xlane.f32.xlu1 %v2239_v50  ;;  %v2242_v61 = vmax.f32 %v6484_v42, %v6487_v57 }
 0x319   : > { %v2018_v60 = vpop.f32.mrb[72].mxu0 }
 0x31a   : > { %v6495_v8 = vadd.f32 %v6453_v11, %v2018_v60  ;;  %v2020_v46 = vpop.f32.mrb[73].mxu0 }
 0x31b   : > { %v6498_v18 = vadd.f32 %v6456_v26, %v2020_v46  ;;  %2243 = vmax.xlane.f32.xlu1 %v2242_v61  ;;  %v2022_v24 = vpop.f32.mrb[74].mxu0 }
 0x31c   : > { %v6501_v28 = vadd.f32 %v6453_v11, %v2022_v24  ;;  %v2024_v15 = vpop.f32.mrb[75].mxu0 }
 0x31d   : > { %v6505_v6 = vadd.f32 %v6456_v26, %v2024_v15  ;;  %v2245_v13 = vmax.f32 %v6495_v8, %v6498_v18  ;;  %v8962_v15 = vld [vmem:[#allocation41_spill] sm:$0xff] }
 0x31e   : > { %1229 = vmatmul.mubr.bf16.gmra.mrb[52].mxu1 %v8962_v15 }
 0x31f   : > { %2246 = vmax.xlane.f32.xlu0 %v2245_v13  ;;  %v2248_v23 = vmax.f32 %v6501_v28, %v6505_v6  ;;  %1238 = vmatprep.mubr.bf16.mxu1 %v8963_v20 }
 0x321   : > { %2249 = vmax.xlane.f32.xlu1 %v2248_v23  ;;  %v2028_v21 = vpop.f32.mrb[76].mxu0 }
 0x322   : > { %v6513_v1 = vadd.f32 %v6453_v11, %v2028_v21  ;;  %v2030_v55 = vpop.f32.mrb[77].mxu0 }
 0x323   : > { %v6516_v12 = vadd.f32 %v6456_v26, %v2030_v55  ;;  %v2032_v17 = vpop.f32.mrb[78].mxu0 }
 0x324   : > { %v6519_v59 = vadd.f32 %v6453_v11, %v2032_v17  ;;  %v2034_v44 = vpop.f32.mrb[79].mxu0 }
 0x325   : > { %v6523_v5 = vadd.f32 %v6456_v26, %v2034_v44  ;;  %v2251_v19 = vmax.f32 %v6513_v1, %v6516_v12 }
 0x327   : > { %2252 = vmax.xlane.f32.xlu0 %v2251_v19  ;;  %v2254_v43 = vmax.f32 %v6519_v59, %v6523_v5 }
 0x329   : > { %2255 = vmax.xlane.f32.xlu1 %v2254_v43  ;;  %v2038_v56 = vpop.f32.mrb[80].mxu0  ;;  %v8964_v43 = vld [vmem:[#allocation43_spill] sm:$0xff] }
 0x32a   : > { %v6531_v63 = vadd.f32 %v6453_v11, %v2038_v56  ;;  %v2040_v22 = vpop.f32.mrb[81].mxu0  ;;  %1239 = vmatmul.mubr.bf16.gmra.mrb[56].mxu1 %v8964_v43 }
 0x32b   : > { %v6534_v25 = vadd.f32 %v6456_v26, %v2040_v22  ;;  %v2042_v7 = vpop.f32.mrb[82].mxu0 }
 0x32c   : > { %v6537_v48 = vadd.f32 %v6453_v11, %v2042_v7  ;;  %v2044_v10 = vpop.f32.mrb[83].mxu0  ;;  %v8966_v7 = vld [vmem:[#allocation44_spill] sm:$0xff] }
 0x32d   : > { %v6541_v40 = vadd.f32 %v6456_v26, %v2044_v10  ;;  %v2257_v41 = vmax.f32 %v6531_v63, %v6534_v25  ;;  %1248 = vmatprep.mubr.bf16.mxu1 %v8966_v7 }
 0x32f   : > { %2258 = vmax.xlane.f32.xlu0 %v2257_v41  ;;  %v2260_v36 = vmax.f32 %v6537_v48, %v6541_v40 }
 0x331   : > { %2261 = vmax.xlane.f32.xlu1 %v2260_v36  ;;  %v2048_v27 = vpop.f32.mrb[84].mxu0 }
 0x332   : > { %v6549_v4 = vadd.f32 %v6453_v11, %v2048_v27  ;;  %v2050_v39 = vpop.f32.mrb[85].mxu0 }
 0x333   : > { %v6552_v54 = vadd.f32 %v6456_v26, %v2050_v39  ;;  %v2052_v33 = vpop.f32.mrb[86].mxu0 }
 0x334   : > { %v6555_v45 = vadd.f32 %v6453_v11, %v2052_v33  ;;  %v2054_v16 = vpop.f32.mrb[87].mxu0 }
 0x335   : > { %v6559_v2 = vadd.f32 %v6456_v26, %v2054_v16  ;;  %v2263_v0 = vmax.f32 %v6549_v4, %v6552_v54  ;;  %v8970_v16 = vld [vmem:[#allocation45_spill] sm:$0xff] }
 0x336   : > { %1249 = vmatmul.mubr.bf16.gmra.mrb[60].mxu1 %v8970_v16 }
 0x337   : > { %2264 = vmax.xlane.f32.xlu0 %v2263_v0  ;;  %v2266_v58 = vmax.f32 %v6555_v45, %v6559_v2 }
 0x339   : > { %2267 = vmax.xlane.f32.xlu1 %v2266_v58  ;;  %v2058_v3 = vpop.f32.mrb[88].mxu0 }
 0x33a   : > { %v6567_v50 = vadd.f32 %v6453_v11, %v2058_v3  ;;  %v2060_v47 = vpop.f32.mrb[89].mxu0 }
 0x33b   : > { %v6570_v60 = vadd.f32 %v6456_v26, %v2060_v47  ;;  %v2062_v61 = vpop.f32.mrb[90].mxu0 }
 0x33c   : > { %v6573_v46 = vadd.f32 %v6453_v11, %v2062_v61  ;;  %v2064_v24 = vpop.f32.mrb[91].mxu0 }
 0x33d   : > { %v6577_v38 = vadd.f32 %v6456_v26, %v2064_v24  ;;  %v2269_v13 = vmax.f32 %v6567_v50, %v6570_v60 }
 0x33f   : > { %2270 = vmax.xlane.f32.xlu0 %v2269_v13  ;;  %v2272_v23 = vmax.f32 %v6573_v46, %v6577_v38 }
 0x341   : > { %2273 = vmax.xlane.f32.xlu1 %v2272_v23  ;;  %v2068_v21 = vpop.f32.mrb[92].mxu0 }
 0x342   : > { %v6585_v55 = vadd.f32 %v6453_v11, %v2068_v21  ;;  %v2070_v17 = vpop.f32.mrb[93].mxu0 }
 0x343   : > { %v6588_v44 = vadd.f32 %v6456_v26, %v2070_v17  ;;  %v2072_v30 = vpop.f32.mrb[94].mxu0 }
 0x344   : > { %v6591_v19 = vadd.f32 %v6453_v11, %v2072_v30  ;;  %v2074_v31 = vpop.f32.mrb[95].mxu0 }
 0x345   : > { %v6595_v56 = vadd.f32 %v6456_v26, %v2074_v31  ;;  %v2275_v22 = vmax.f32 %v6585_v55, %v6588_v44 }
 0x347   : > { %8965 = vst [vmem:[#allocation17_spill] sm:$0xff] %v6595_v56  ;;  %2276 = vmax.xlane.f32.xlu0 %v2275_v22  ;;  %v2278_v10 = vmax.f32 %v6591_v19, %v6595_v56 }
 0x349   : > { %2279 = vmax.xlane.f32.xlu1 %v2278_v10  ;;  %v2078_v9 = vpop.f32.mrb[96].mxu0 }
 0x34a   : > { %v6603_v41 = vadd.f32 %v6453_v11, %v2078_v9  ;;  %v2080_v14 = vpop.f32.mrb[97].mxu0 }
 0x34b   : > { %v6606_v36 = vadd.f32 %v6456_v26, %v2080_v14  ;;  %v2082_v27 = vpop.f32.mrb[98].mxu0 }
 0x34c   : > { %8967 = vst [vmem:[#allocation18_spill] sm:$0xff] %v6603_v41  ;;  %v6609_v39 = vadd.f32 %v6453_v11, %v2082_v27  ;;  %v2084_v33 = vpop.f32.mrb[99].mxu0 }
 0x34d   : > { %8968 = vst [vmem:[#allocation19_spill] sm:$0xff] %v6606_v36  ;;  %v6613_v35 = vadd.f32 %v6456_v26, %v2084_v33  ;;  %v2281_v0 = vmax.f32 %v6603_v41, %v6606_v36  ;;  %v5188_v36 = vld [vmem:[#allocation8 + $0x50] ss:$8 sps:$4 sm:$0xff]  }
 0x34e   : > { %8969 = vst [vmem:[#allocation20_spill] sm:$0xff] %v6609_v39 }
 0x34f   : > { %8971 = vst [vmem:[#allocation21_spill] sm:$0xff] %v6613_v35  ;;  %2282 = vmax.xlane.f32.xlu0 %v2281_v0  ;;  %v2284_v53 = vmax.f32 %v6609_v39, %v6613_v35  ;;  %v5190_v35 = vld [vmem:[#allocation8 + $0x54] ss:$8 sps:$4 sm:$0xff]  }
 0x351   : > { %2285 = vmax.xlane.f32.xlu1 %v2284_v53  ;;  %v2088_v58 = vpop.f32.mrb[100].mxu0 }
 0x352   : > { %v6620_v3 = vadd.f32 %v6453_v11, %v2088_v58  ;;  %v2090_v47 = vpop.f32.mrb[101].mxu0 }
 0x353   : > { %v6623_v61 = vadd.f32 %v6456_v26, %v2090_v47  ;;  %v2092_v24 = vpop.f32.mrb[102].mxu0 }
 0x354   : > { %8972 = vst [vmem:[#allocation22_spill] sm:$0xff] %v6620_v3  ;;  %v6626_v15 = vadd.f32 %v6453_v11, %v2092_v24  ;;  %v2094_v13 = vpop.f32.mrb[103].mxu0 }
 0x355   : > { %8973 = vst [vmem:[#allocation23_spill] sm:$0xff] %v6623_v61  ;;  %v6629_v20 = vadd.f32 %v6456_v26, %v2094_v13  ;;  %v2287_v23 = vmax.f32 %v6620_v3, %v6623_v61  ;;  %v5187_v61 = vld [vmem:[#allocation8 + $0x44] ss:$8 sps:$4 sm:$0xff]   ;;  %v5185_v3 = vld [vmem:[#allocation8 + $0x40] ss:$8 sps:$4 sm:$0xff]  }
 0x356   : > { %8974 = vst [vmem:[#allocation24_spill] sm:$0xff] %v6626_v15 }
 0x357   : > { %8975 = vst [vmem:[#allocation25_spill] sm:$0xff] %v6629_v20  ;;  %2288 = vmax.xlane.f32.xlu0 %v2287_v23  ;;  %v2290_v21 = vmax.f32 %v6626_v15, %v6629_v20  ;;  %v5184_v20 = vld [vmem:[#allocation8 + $0x34] ss:$8 sps:$4 sm:$0xff]   ;;  %v5182_v15 = vld [vmem:[#allocation8 + $0x30] ss:$8 sps:$4 sm:$0xff]  }
 0x359   : > { %2291 = vmax.xlane.f32.xlu1 %v2290_v21  ;;  %v2098_v17 = vpop.f32.mrb[104].mxu0 }
 0x35a   : > { %v6636_v30 = vadd.f32 %v6453_v11, %v2098_v17  ;;  %v2100_v31 = vpop.f32.mrb[105].mxu0 }
 0x35b   : > { %v6639_v43 = vadd.f32 %v6456_v26, %v2100_v31  ;;  %v2102_v22 = vpop.f32.mrb[106].mxu0 }
 0x35c   : > { %8976 = vst [vmem:[#allocation26_spill] sm:$0xff] %v6636_v30  ;;  %v6642_v7 = vadd.f32 %v6453_v11, %v2102_v22  ;;  %v2104_v10 = vpop.f32.mrb[107].mxu0 }
 0x35d   : > { %8977 = vst [vmem:[#allocation27_spill] sm:$0xff] %v6639_v43  ;;  %v6645_v9 = vadd.f32 %v6456_v26, %v2104_v10  ;;  %v2293_v14 = vmax.f32 %v6636_v30, %v6639_v43  ;;  %v5181_v43 = vld [vmem:[#allocation8 + $0x24] ss:$8 sps:$4 sm:$0xff]   ;;  %v5179_v30 = vld [vmem:[#allocation8 + $0x20] ss:$8 sps:$4 sm:$0xff]  }
 0x35e   : > { %8978 = vst [vmem:[#allocation28_spill] sm:$0xff] %v6642_v7 }
 0x35f   : > { %8979 = vst [vmem:[#allocation29_spill] sm:$0xff] %v6645_v9  ;;  %2294 = vmax.xlane.f32.xlu0 %v2293_v14  ;;  %v2296_v27 = vmax.f32 %v6642_v7, %v6645_v9  ;;  %v5178_v9 = vld [vmem:[#allocation8 + $0x14] ss:$8 sps:$4 sm:$0xff]   ;;  %v5176_v7 = vld [vmem:[#allocation8 + $0x10] ss:$8 sps:$4 sm:$0xff]  }
 0x361   : > { %2297 = vmax.xlane.f32.xlu1 %v2296_v27  ;;  %v2108_v33 = vpop.f32.mrb[108].mxu0 }
 0x362   : > { %v6652_v16 = vadd.f32 %v6453_v11, %v2108_v33  ;;  %v2110_v0 = vpop.f32.mrb[109].mxu0 }
 0x363   : > { %v6655_v53 = vadd.f32 %v6456_v26, %v2110_v0  ;;  %v2112_v58 = vpop.f32.mrb[110].mxu0 }
 0x364   : > { %8980 = vst [vmem:[#allocation30_spill] sm:$0xff] %v6652_v16  ;;  %v6658_v47 = vadd.f32 %v6453_v11, %v2112_v58  ;;  %v2114_v24 = vpop.f32.mrb[111].mxu0 }
 0x365   : > { %8981 = vst [vmem:[#allocation31_spill] sm:$0xff] %v6655_v53  ;;  %v6661_v13 = vadd.f32 %v6456_v26, %v2114_v24  ;;  %v2299_v23 = vmax.f32 %v6652_v16, %v6655_v53  ;;  %v5173_v53 = vld [vmem:[#allocation8] ss:$8 sps:$4 sm:$0xff]   ;;  %v6699_v16 = vld [vmem:[#allocation8 + $0x4] ss:$8 sps:$4 sm:$0xff]  }
 0x366   : > { %8982 = vst [vmem:[#allocation32_spill] sm:$0xff] %v6658_v47  ;;  %8984 = vst [vmem:[#allocation34_spill] sm:$0xff] %v6699_v16  ;;  %3193 = vmatprep.subr.bf16.mxu1 %v6699_v16 }
 0x367   : > { %8983 = vst [vmem:[#allocation33_spill] sm:$0xff] %v6661_v13  ;;  %2300 = vmax.xlane.f32.xlu0 %v2299_v23  ;;  %v2302_v21 = vmax.f32 %v6658_v47, %v6661_v13  ;;  %3194 = vmatpush1.bf16.msra.mxu1 %v5173_v53 }
 0x368   : > { %3195 = vmatprep.subr.bf16.mxu1 %v5178_v9 }
 0x369   : > { %2303 = vmax.xlane.f32.xlu1 %v2302_v21  ;;  %v6667_v17 = vpop.f32.mrb[112].mxu0 }
 0x36a   : > { %v6669_v31 = vpop.f32.mrb[113].mxu0 }
 0x36b   : > { %v6671_v22 = vpop.f32.mrb[114].mxu0  ;;  %3196 = vmatpush1.bf16.msra.mxu1 %v5176_v7  ;;  %v5193_v7 = vld [vmem:[#allocation8 + $0x64] ss:$8 sps:$4 sm:$0xff]  }
 0x36c   : > { %v6673_v10 = vpop.f32.mrb[115].mxu0  ;;  %3197 = vmatprep.subr.bf16.mxu1 %v5181_v43 }
 0x36f   : > { %3198 = vmatpush1.bf16.msra.mxu1 %v5179_v30  ;;  %v5191_v30 = vld [vmem:[#allocation8 + $0x60] ss:$8 sps:$4 sm:$0xff]  }
 0x370   : > { %3199 = vmatprep.subr.bf16.mxu1 %v5184_v20  ;;  %v5196_v20 = vld [vmem:[#allocation8 + $0x74] ss:$8 sps:$4 sm:$0xff]  }
 0x371   : > { %v6675_v14 = vpop.f32.mrb[116].mxu0 }
 0x372   : > { %v6677_v27 = vpop.f32.mrb[117].mxu0 }
 0x373   : > { %v6679_v33 = vpop.f32.mrb[118].mxu0  ;;  %3200 = vmatpush1.bf16.msra.mxu1 %v5182_v15 }
 0x374   : > { %v6681_v0 = vpop.f32.mrb[119].mxu0  ;;  %3201 = vmatprep.subr.bf16.mxu1 %v5187_v61 }
 0x377   : > { %3202 = vmatpush1.bf16.msra.mxu1 %v5185_v3 }
 0x378   : > { %3203 = vmatprep.subr.bf16.mxu1 %v5190_v35 }
 0x379   : > { %v6683_v58 = vpop.f32.mrb[120].mxu0 }
 0x37a   : > { %v6685_v24 = vpop.f32.mrb[121].mxu0 }
 0x37b   : > { %v6687_v23 = vpop.f32.mrb[122].mxu0  ;;  %3204 = vmatpush1.bf16.msra.mxu1 %v5188_v36 }
 0x37c   : > { %v6689_v21 = vpop.f32.mrb[123].mxu0  ;;  %3205 = vmatprep.subr.bf16.mxu1 %v5193_v7 }
 0x37f   : > { %3206 = vmatpush1.bf16.msra.mxu1 %v5191_v30 }
 0x380   : > { %3207 = vmatprep.subr.bf16.mxu1 %v5196_v20 }
 0x381   : > { %v6691_v37 = vpop.f32.mrb[124].mxu0 }
 0x382   : > { %v6693_v49 = vpop.f32.mrb[125].mxu0 }
 0x383   : > { %v6695_v13 = vpop.f32.mrb[126].mxu0 }
 0x384   : > { %v6697_v47 = vpop.f32.mrb[127].mxu0 }
 0x39c   : > { %v2235_v39 = vpop.xlane.xlu0 %2234 }
 0x39d   : > { %v2329_v53 = vsub.f32 %v6459_v29, %v2235_v39  ;;  %v2330_v9 = vsub.f32 %v6462_v62, %v2235_v39  ;;  %v5194_v62 = vld [vmem:[#allocation8 + $0x70] ss:$8 sps:$4 sm:$0xff]  }
 0x39e   : > { %3208 = vmatpush1.bf16.msra.mxu1 %v5194_v62 }
 0x39f   : > { %v2393_v16 = vmul.f32 1.442695, %v2329_v53  ;;  %v2395_v43 = vmul.f32 1.442695, %v2330_v9 }
 0x3a0   : > { %v2238_v41 = vpop.xlane.xlu0 %2237 }
 0x3a1   : > { %5221 = vpow2.f32 %v2393_v16  ;;  %v2331_v15 = vsub.f32 %v6466_v32, %v2238_v41  ;;  %v2332_v61 = vsub.f32 %v6469_v34, %v2238_v41 }
 0x3a2   : > { %5223 = vpow2.f32 %v2395_v43 }
 0x3a3   : > { %v2397_v3 = vmul.f32 1.442695, %v2331_v15  ;;  %v2399_v56 = vmul.f32 1.442695, %v2332_v61 }
 0x3a4   : > { %v2241_v29 = vpop.xlane.xlu1 %2240 }
 0x3a5   : > { %5225 = vpow2.f32 %v2397_v3  ;;  %v2333_v39 = vsub.f32 %v6477_v52, %v2241_v29  ;;  %v2334_v35 = vsub.f32 %v6480_v51, %v2241_v29  ;;  %v6716_v52 = vadd.f32 %v6453_v11, %v6667_v17 }
 0x3a6   : > { %5227 = vpow2.f32 %v2399_v56  ;;  %v6720_v51 = vadd.f32 %v6456_v26, %v6669_v31 }
 0x3a7   : > { %v2401_v36 = vmul.f32 1.442695, %v2333_v39  ;;  %v2403_v16 = vmul.f32 1.442695, %v2334_v35  ;;  %8987 = vst [vmem:[#allocation37_spill] sm:$0xff] %v6716_v52 }
 0x3a8   : > { %v2244_v32 = vpop.xlane.xlu1 %2243  ;;  %8988 = vst [vmem:[#allocation38_spill] sm:$0xff] %v6720_v51  ;;  %v2305_v62 = vmax.f32 %v6716_v52, %v6720_v51 }
 0x3a9   : > { %5229 = vpow2.f32 %v2401_v36  ;;  %v2335_v34 = vsub.f32 %v6484_v42, %v2244_v32  ;;  %v2336_v41 = vsub.f32 %v6487_v57, %v2244_v32  ;;  %v6754_v36 = vadd.f32 %v6456_v26, %v6677_v27 }
 0x3aa   : > { %5231 = vpow2.f32 %v2403_v16 }
 0x3ab   : > { %v6710_v53 = vpop.eup %5221  ;;  %v2405_v9 = vmul.f32 1.442695, %v2335_v34  ;;  %v2407_v7 = vmul.f32 1.442695, %v2336_v41  ;;  %8996 = vst [vmem:[#allocation49_spill] sm:$0xff] %v6754_v36 }
 0x3ac   : > { %8985 = vst [vmem:[#allocation35_spill] sm:$0xff] %v6710_v53  ;;  %v6712_v43 = vpop.eup %5223  ;;  %v2247_v56 = vpop.xlane.xlu0 %2246 }
 0x3ad   : > { %8986 = vst [vmem:[#allocation36_spill] sm:$0xff] %v6712_v43  ;;  %5233 = vpow2.f32 %v2405_v9  ;;  %v2337_v42 = vsub.f32 %v6495_v8, %v2247_v56  ;;  %v2338_v57 = vsub.f32 %v6498_v18, %v2247_v56  ;;  %v2521_v30 = vadd.f32 %v6712_v43, %v6710_v53 }
 0x3ae   : > { %5235 = vpow2.f32 %v2407_v7  ;;  %v2250_v15 = vpop.xlane.xlu1 %2249  ;;  %v6734_v8 = vadd.f32 %v6453_v11, %v6671_v22  ;;  %v6738_v18 = vadd.f32 %v6456_v26, %v6673_v10  ;;  %v6750_v10 = vadd.f32 %v6453_v11, %v6675_v14 }
 0x3af   : > { %v6726_v61 = vpop.eup %5225  ;;  %v2409_v20 = vmul.f32 1.442695, %v2337_v42  ;;  %v2411_v17 = vmul.f32 1.442695, %v2338_v57  ;;  %v2339_v3 = vsub.f32 %v6501_v28, %v2250_v15  ;;  %v2340_v31 = vsub.f32 %v6505_v6, %v2250_v15  ;;  %2522 = vadd.xlane.f32.xlu0 %v2521_v30 }
 0x3b0   : > { %8989 = vst [vmem:[#allocation39_spill] sm:$0xff] %v6726_v61  ;;  %v6730_v29 = vpop.eup %5227  ;;  %8991 = vst [vmem:[#allocation41_spill] sm:$0xff] %v6734_v8  ;;  %v2308_v9 = vmax.f32 %v6734_v8, %v6738_v18  ;;  %v6774_v30 = vadd.f32 %v6456_v26, %v6681_v0  ;;  %v2311_v15 = vmax.f32 %v6750_v10, %v6754_v36 }
 0x3b1   : > { %8990 = vst [vmem:[#allocation40_spill] sm:$0xff] %v6730_v29  ;;  %8992 = vst [vmem:[#allocation42_spill] sm:$0xff] %v6738_v18  ;;  %5237 = vpow2.f32 %v2409_v20  ;;  %v2413_v39 = vmul.f32 1.442695, %v2339_v3  ;;  %v2415_v35 = vmul.f32 1.442695, %v2340_v31  ;;  %v2524_v28 = vadd.f32 %v6730_v29, %v6726_v61 }
 0x3b2   : > { %5239 = vpow2.f32 %v2411_v17  ;;  %8995 = vst [vmem:[#allocation45_spill] sm:$0xff] %v6750_v10  ;;  %9000 = vst [vmem:[#allocation53_spill] sm:$0xff] %v6774_v30  ;;  %v6786_v0 = vadd.f32 %v6453_v11, %v6683_v58  ;;  %v6790_v3 = vadd.f32 %v6456_v26, %v6685_v24 }
 0x3b3   : > { %v6744_v6 = vpop.eup %5229  ;;  %5241 = vpow2.f32 %v2413_v39  ;;  %2525 = vadd.xlane.f32.xlu1 %v2524_v28  ;;  %2306 = vmax.xlane.f32.xlu0 %v2305_v62  ;;  %v5199_v62 = vld [vmem:[#allocation8 + $0x84] ss:$8 sps:$4 sm:$0xff]  }
 0x3b4   : > { %8993 = vst [vmem:[#allocation43_spill] sm:$0xff] %v6744_v6  ;;  %v6746_v22 = vpop.eup %5231  ;;  %5243 = vpow2.f32 %v2415_v35  ;;  %v2253_v16 = vpop.xlane.xlu0 %2252  ;;  %9003 = vst [vmem:[#allocation56_spill] sm:$0xff] %v6786_v0  ;;  %3209 = vmatprep.subr.bf16.mxu1 %v5199_v62 }
 0x3b5   : > { %8994 = vst [vmem:[#allocation44_spill] sm:$0xff] %v6746_v22  ;;  %v2341_v32 = vsub.f32 %v6513_v1, %v2253_v16  ;;  %v2342_v34 = vsub.f32 %v6516_v12, %v2253_v16  ;;  %v2527_v41 = vadd.f32 %v6746_v22, %v6744_v6  ;;  %v6770_v12 = vadd.f32 %v6453_v11, %v6679_v33 }
 0x3b6   : > { %v2256_v7 = vpop.xlane.xlu1 %2255  ;;  %9004 = vst [vmem:[#allocation57_spill] sm:$0xff] %v6790_v3 }
 0x3b7   : > { %v6762_v56 = vpop.eup %5233  ;;  %v2417_v14 = vmul.f32 1.442695, %v2341_v32  ;;  %v2419_v42 = vmul.f32 1.442695, %v2342_v34  ;;  %v2343_v27 = vsub.f32 %v6519_v59, %v2256_v7  ;;  %v2344_v57 = vsub.f32 %v6523_v5, %v2256_v7  ;;  %2528 = vadd.xlane.f32.xlu0 %v2527_v41  ;;  %2309 = vmax.xlane.f32.xlu1 %v2308_v9  ;;  %8999 = vst [vmem:[#allocation52_spill] sm:$0xff] %v6770_v12 }
 0x3b8   : > { %8997 = vst [vmem:[#allocation50_spill] sm:$0xff] %v6762_v56  ;;  %v6766_v1 = vpop.eup %5235  ;;  %v2314_v58 = vmax.f32 %v6770_v12, %v6774_v30  ;;  %v5197_v32 = vld [vmem:[#allocation8 + $0x80] ss:$8 sps:$4 sm:$0xff]  }
 0x3b9   : > { %8998 = vst [vmem:[#allocation51_spill] sm:$0xff] %v6766_v1  ;;  %5245 = vpow2.f32 %v2417_v14  ;;  %v2421_v20 = vmul.f32 1.442695, %v2343_v27  ;;  %v2423_v59 = vmul.f32 1.442695, %v2344_v57  ;;  %v2530_v5 = vadd.f32 %v6766_v1, %v6762_v56  ;;  %3210 = vmatpush1.bf16.msra.mxu1 %v5197_v32 }
 0x3ba   : > { %5247 = vpow2.f32 %v2419_v42  ;;  %v2317_v42 = vmax.f32 %v6786_v0, %v6790_v3  ;;  %v5202_v27 = vld [vmem:[#allocation8 + $0x94] ss:$8 sps:$4 sm:$0xff]   ;;  %v5203_v32 = vld [vmem:[#allocation8 + $0xa0] ss:$8 sps:$4 sm:$0xff]  }
 0x3bb   : > { %v6780_v17 = vpop.eup %5237  ;;  %5249 = vpow2.f32 %v2421_v20  ;;  %2531 = vadd.xlane.f32.xlu1 %v2530_v5  ;;  %2312 = vmax.xlane.f32.xlu0 %v2311_v15  ;;  %v5200_v15 = vld [vmem:[#allocation8 + $0x90] ss:$8 sps:$4 sm:$0xff]   ;;  %v6822_v20 = vadd.f32 %v6453_v11, %v6691_v37 }
 0x3bc   : > { %9001 = vst [vmem:[#allocation54_spill] sm:$0xff] %v6780_v17  ;;  %v6782_v33 = vpop.eup %5239  ;;  %5251 = vpow2.f32 %v2423_v59  ;;  %v2259_v31 = vpop.xlane.xlu0 %2258  ;;  %3211 = vmatprep.subr.bf16.mxu1 %v5202_v27  ;;  %v6826_v59 = vadd.f32 %v6456_v26, %v6693_v49 }
 0x3bd   : > { %9002 = vst [vmem:[#allocation55_spill] sm:$0xff] %v6782_v33  ;;  %v6792_v39 = vpop.eup %5241  ;;  %v2345_v35 = vsub.f32 %v6531_v63, %v2259_v31  ;;  %v2346_v28 = vsub.f32 %v6534_v25, %v2259_v31  ;;  %v2533_v16 = vadd.f32 %v6782_v33, %v6780_v17  ;;  %v6806_v63 = vadd.f32 %v6453_v11, %v6687_v23 }
 0x3be   : > { %9005 = vst [vmem:[#allocation58_spill] sm:$0xff] %v6792_v39  ;;  %v6800_v34 = vpop.eup %5243  ;;  %v2262_v24 = vpop.xlane.xlu1 %2261  ;;  %v6810_v25 = vadd.f32 %v6456_v26, %v6689_v21  ;;  %9011 = vst [vmem:[#allocation64_spill] sm:$0xff] %v6822_v20  ;;  %3212 = vmatpush1.bf16.msra.mxu1 %v5200_v15 }
 0x3bf   : > { %9006 = vst [vmem:[#allocation59_spill] sm:$0xff] %v6800_v34  ;;  %v2425_v41 = vmul.f32 1.442695, %v2345_v35  ;;  %v2427_v9 = vmul.f32 1.442695, %v2346_v28  ;;  %v2347_v7 = vsub.f32 %v6537_v48, %v2262_v24  ;;  %v2348_v14 = vsub.f32 %v6541_v40, %v2262_v24  ;;  %2534 = vadd.xlane.f32.xlu0 %v2533_v16  ;;  %2315 = vmax.xlane.f32.xlu1 %v2314_v58 }
 0x3c0   : > { %9007 = vst [vmem:[#allocation60_spill] sm:$0xff] %v6806_v63  ;;  %9008 = vst [vmem:[#allocation61_spill] sm:$0xff] %v6810_v25  ;;  %v2536_v40 = vadd.f32 %v6800_v34, %v6792_v39  ;;  %v2320_v37 = vmax.f32 %v6806_v63, %v6810_v25  ;;  %v5205_v16 = vld [vmem:[#allocation8 + $0xa4] ss:$8 sps:$4 sm:$0xff]  }
 0x3c1   : > { %5253 = vpow2.f32 %v2425_v41  ;;  %v2429_v57 = vmul.f32 1.442695, %v2347_v7  ;;  %v2431_v48 = vmul.f32 1.442695, %v2348_v14  ;;  %9012 = vst [vmem:[#allocation65_spill] sm:$0xff] %v6826_v59  ;;  %v2323_v14 = vmax.f32 %v6822_v20, %v6826_v59  ;;  %3213 = vmatprep.subr.bf16.mxu1 %v5205_v16 }
 0x3c2   : > { %5255 = vpow2.f32 %v2427_v9  ;;  %3214 = vmatpush1.bf16.msra.mxu1 %v5203_v32 }
 0x3c3   : > { %v6816_v23 = vpop.eup %5245  ;;  %5257 = vpow2.f32 %v2429_v57  ;;  %2537 = vadd.xlane.f32.xlu1 %v2536_v40  ;;  %2318 = vmax.xlane.f32.xlu0 %v2317_v42  ;;  %v5206_v57 = vld [vmem:[#allocation8 + $0xb0] ss:$8 sps:$4 sm:$0xff]  }
 0x3c4   : > { %9009 = vst [vmem:[#allocation62_spill] sm:$0xff] %v6816_v23  ;;  %v6818_v21 = vpop.eup %5247  ;;  %5259 = vpow2.f32 %v2431_v48  ;;  %v2265_v5 = vpop.xlane.xlu0 %2264 }
 0x3c5   : > { %9010 = vst [vmem:[#allocation63_spill] sm:$0xff] %v6818_v21  ;;  %v6828_v31 = vpop.eup %5249  ;;  %v2349_v62 = vsub.f32 %v6549_v4, %v2265_v5  ;;  %v2350_v35 = vsub.f32 %v6552_v54, %v2265_v5  ;;  %v2539_v28 = vadd.f32 %v6818_v21, %v6816_v23  ;;  %v6842_v4 = vadd.f32 %v6453_v11, %v6695_v13 }
 0x3c6   : > { %9013 = vst [vmem:[#allocation66_spill] sm:$0xff] %v6828_v31  ;;  %v6836_v58 = vpop.eup %5251  ;;  %v2268_v49 = vpop.xlane.xlu1 %2267  ;;  %v6846_v54 = vadd.f32 %v6456_v26, %v6697_v47 }
 0x3c7   : > { %9014 = vst [vmem:[#allocation67_spill] sm:$0xff] %v6836_v58  ;;  %v2433_v24 = vmul.f32 1.442695, %v2349_v62  ;;  %v2435_v41 = vmul.f32 1.442695, %v2350_v35  ;;  %v2351_v9 = vsub.f32 %v6555_v45, %v2268_v49  ;;  %v2352_v7 = vsub.f32 %v6559_v2, %v2268_v49  ;;  %2540 = vadd.xlane.f32.xlu0 %v2539_v28  ;;  %2321 = vmax.xlane.f32.xlu1 %v2320_v37 }
 0x3c8   : > { %9015 = vst [vmem:[#allocation68_spill] sm:$0xff] %v6842_v4  ;;  %9016 = vst [vmem:[#allocation69_spill] sm:$0xff] %v6846_v54  ;;  %v2542_v45 = vadd.f32 %v6836_v58, %v6828_v31  ;;  %v5208_v2 = vld [vmem:[#allocation8 + $0xb4] ss:$8 sps:$4 sm:$0xff]   ;;  %v2326_v5 = vmax.f32 %v6842_v4, %v6846_v54  ;;  %v5211_v62 = vld [vmem:[#allocation8 + $0xc4] ss:$8 sps:$4 sm:$0xff]  }
 0x3c9   : > { %5261 = vpow2.f32 %v2433_v24  ;;  %v2437_v42 = vmul.f32 1.442695, %v2351_v9  ;;  %v2439_v27 = vmul.f32 1.442695, %v2352_v7  ;;  %3215 = vmatprep.subr.bf16.mxu1 %v5208_v2  ;;  %v5209_v37 = vld [vmem:[#allocation8 + $0xc0] ss:$8 sps:$4 sm:$0xff]  }
 0x3ca   : > { %5263 = vpow2.f32 %v2435_v41  ;;  %3216 = vmatpush1.bf16.msra.mxu1 %v5206_v57  ;;  %v5214_v9 = vld [vmem:[#allocation8 + $0xd4] ss:$8 sps:$4 sm:$0xff]   ;;  %v5212_v7 = vld [vmem:[#allocation8 + $0xd0] ss:$8 sps:$4 sm:$0xff]  }
 0x3cb   : > { %v6852_v11 = vpop.eup %5253  ;;  %5265 = vpow2.f32 %v2437_v42  ;;  %2543 = vadd.xlane.f32.xlu1 %v2542_v45  ;;  %2324 = vmax.xlane.f32.xlu0 %v2323_v14 }
 0x3cc   : > { %9017 = vst [vmem:[#allocation70_spill] sm:$0xff] %v6852_v11  ;;  %v6854_v26 = vpop.eup %5255  ;;  %5267 = vpow2.f32 %v2439_v27  ;;  %v2271_v47 = vpop.xlane.xlu0 %2270  ;;  %3217 = vmatprep.subr.bf16.mxu1 %v5211_v62  ;;  %v9025_v62 = vld [vmem:[#allocation17_spill] sm:$0xff] }
 0x3cd   : > { %9018 = vst [vmem:[#allocation71_spill] sm:$0xff] %v6854_v26  ;;  %v6856_v13 = vpop.eup %5257  ;;  %v2353_v48 = vsub.f32 %v6567_v50, %v2271_v47  ;;  %v2354_v40 = vsub.f32 %v6570_v60, %v2271_v47  ;;  %v2545_v15 = vadd.f32 %v6854_v26, %v6852_v11  ;;  %v9061_v26 = vld [vmem:[#allocation48_spill] sm:$0xff] }
 0x3ce   : > { %9019 = vst [vmem:[#allocation72_spill] sm:$0xff] %v6856_v13  ;;  %v6864_v35 = vpop.eup %5259  ;;  %v2274_v28 = vpop.xlane.xlu1 %2273  ;;  %3218 = vmatpush1.bf16.msra.mxu1 %v5209_v37  ;;  %v5215_v37 = vld [vmem:[#allocation8 + $0xe0] ss:$8 sps:$4 sm:$0xff]  }
 0x3cf   : > { %9020 = vst [vmem:[#allocation73_spill] sm:$0xff] %v6864_v35  ;;  %v2441_v16 = vmul.f32 1.442695, %v2353_v48  ;;  %v2443_v49 = vmul.f32 1.442695, %v2354_v40  ;;  %v2355_v32 = vsub.f32 %v6573_v46, %v2274_v28  ;;  %v2356_v50 = vsub.f32 %v6577_v38, %v2274_v28  ;;  %2546 = vadd.xlane.f32.xlu0 %v2545_v15  ;;  %2327 = vmax.xlane.f32.xlu1 %v2326_v5 }
 0x3d0   : > { %v2548_v41 = vadd.f32 %v6864_v35, %v6856_v13  ;;  %3219 = vmatprep.subr.bf16.mxu1 %v5214_v9  ;;  %v5217_v48 = vld [vmem:[#allocation8 + $0xe4] ss:$8 sps:$4 sm:$0xff]   ;;  %v9060_v35 = vld [vmem:[#allocation47_spill] sm:$0xff] }
 0x3d1   : > { %5269 = vpow2.f32 %v2441_v16  ;;  %v2445_v60 = vmul.f32 1.442695, %v2355_v32  ;;  %v2447_v24 = vmul.f32 1.442695, %v2356_v50  ;;  %v5218_v50 = vld [vmem:[#allocation8 + $0xf0] ss:$8 sps:$4 sm:$0xff]  }
 0x3d2   : > { %5271 = vpow2.f32 %v2443_v49  ;;  %3220 = vmatpush1.bf16.msra.mxu1 %v5212_v7  ;;  %v5220_v49 = vld [vmem:[#allocation8 + $0xf4] ss:$8 sps:$4 sm:$0xff]  }
 0x3d3   : > { %v6870_v14 = vpop.eup %5261  ;;  %5273 = vpow2.f32 %v2445_v60  ;;  %2549 = vadd.xlane.f32.xlu1 %v2548_v41  ;;  %3221 = vmatprep.subr.bf16.mxu1 %v5217_v48  ;;  %v9029_v41 = vld [vmem:[#allocation18_spill] sm:$0xff]  ;;  %v9030_v7 = vld [vmem:[#allocation19_spill] sm:$0xff] }
 0x3d4   : > { %9021 = vst [vmem:[#allocation74_spill] sm:$0xff] %v6870_v14  ;;  %v6872_v46 = vpop.eup %5263  ;;  %5275 = vpow2.f32 %v2447_v24  ;;  %v2277_v38 = vpop.xlane.xlu0 %2276 }
 0x3d5   : > { %9022 = vst [vmem:[#allocation75_spill] sm:$0xff] %v6872_v46  ;;  %v6874_v42 = vpop.eup %5265  ;;  %v2357_v27 = vsub.f32 %v6585_v55, %v2277_v38  ;;  %v2358_v45 = vsub.f32 %v6588_v44, %v2277_v38  ;;  %v2551_v2 = vadd.f32 %v6872_v46, %v6870_v14 }
 0x3d6   : > { %9023 = vst [vmem:[#allocation76_spill] sm:$0xff] %v6874_v42  ;;  %v6880_v57 = vpop.eup %5267  ;;  %v2280_v47 = vpop.xlane.xlu1 %2279  ;;  %3222 = vmatpush1.bf16.msra.mxu1 %v5215_v37 }
 0x3d7   : > { %9024 = vst [vmem:[#allocation77_spill] sm:$0xff] %v6880_v57  ;;  %v2449_v40 = vmul.f32 1.442695, %v2357_v27  ;;  %v2451_v15 = vmul.f32 1.442695, %v2358_v45  ;;  %v2359_v5 = vsub.f32 %v6591_v19, %v2280_v47  ;;  %v2360_v28 = vsub.f32 %v9025_v62, %v2280_v47  ;;  %2552 = vadd.xlane.f32.xlu0 %v2551_v2  ;;  %3223 = vmatprep.subr.bf16.mxu1 %v5220_v49  ;;  %v9032_v47 = vld [vmem:[#allocation34_spill] sm:$0xff] }
 0x3d8   : > { %v2554_v55 = vadd.f32 %v6880_v57, %v6874_v42  ;;  %v9034_v62 = vld [vmem:[#allocation21_spill] sm:$0xff] }
 0x3d9   : > { %5277 = vpow2.f32 %v2449_v40  ;;  %v2453_v44 = vmul.f32 1.442695, %v2359_v5  ;;  %v2455_v16 = vmul.f32 1.442695, %v2360_v28  ;;  %v9059_v57 = vld [vmem:[#allocation33_spill] sm:$0xff] }
 0x3da   : > { %5279 = vpow2.f32 %v2451_v15  ;;  %2555 = vadd.xlane.f32.xlu1 %v2554_v55  ;;  %3224 = vmatpush1.bf16.msra.mxu1 %v5218_v50  ;;  %v9033_v15 = vld [vmem:[#allocation20_spill] sm:$0xff] }
 0x3db   : > { %v6886_v32 = vpop.eup %5269  ;;  %5281 = vpow2.f32 %v2453_v44  ;;  %3386 = vmatprep.subr.bf16.mxu1 %v9032_v47 }
 0x3dc   : > { %9026 = vst [vmem:[#allocation17_spill] sm:$0xff] %v6886_v32  ;;  %v6888_v19 = vpop.eup %5271  ;;  %5283 = vpow2.f32 %v2455_v16  ;;  %v2283_v60 = vpop.xlane.xlu0 %2282 }
 0x3dd   : > { %9027 = vst [vmem:[#allocation78_spill] sm:$0xff] %v6888_v19  ;;  %v6890_v24 = vpop.eup %5273  ;;  %v2361_v9 = vsub.f32 %v9029_v41, %v2283_v60  ;;  %v2362_v38 = vsub.f32 %v9030_v7, %v2283_v60  ;;  %v2557_v27 = vadd.f32 %v6888_v19, %v6886_v32  ;;  %v9038_v41 = vld [vmem:[#allocation22_spill] sm:$0xff]  ;;  %v9039_v7 = vld [vmem:[#allocation23_spill] sm:$0xff] }
 0x3de   : > { %9028 = vst [vmem:[#allocation79_spill] sm:$0xff] %v6890_v24  ;;  %v6896_v45 = vpop.eup %5275  ;;  %v2286_v2 = vpop.xlane.xlu1 %2285 }
 0x3df   : > { %9031 = vst [vmem:[#allocation18_spill] sm:$0xff] %v6896_v45  ;;  %v2457_v48 = vmul.f32 1.442695, %v2361_v9  ;;  %v2459_v40 = vmul.f32 1.442695, %v2362_v38  ;;  %v2363_v5 = vsub.f32 %v9033_v15, %v2286_v2  ;;  %v2364_v28 = vsub.f32 %v9034_v62, %v2286_v2  ;;  %2558 = vadd.xlane.f32.xlu0 %v2557_v27  ;;  %v9041_v15 = vld [vmem:[#allocation24_spill] sm:$0xff] }
 0x3e0   : > { %v2560_v37 = vadd.f32 %v6896_v45, %v6890_v24  ;;  %v9042_v62 = vld [vmem:[#allocation25_spill] sm:$0xff] }
 0x3e1   : > { %5285 = vpow2.f32 %v2457_v48  ;;  %v2461_v55 = vmul.f32 1.442695, %v2363_v5  ;;  %v2463_v44 = vmul.f32 1.442695, %v2364_v28  ;;  %v9051_v24 = vld [vmem:[#allocation29_spill] sm:$0xff] }
 0x3e2   : > { %5287 = vpow2.f32 %v2459_v40  ;;  %2561 = vadd.xlane.f32.xlu1 %v2560_v37 }
 0x3e3   : > { %v6903_v16 = vpop.eup %5277  ;;  %5289 = vpow2.f32 %v2461_v55  ;;  %v1100_v55 = vpop.f32.mrb[0].mxu1 }
 0x3e4   : > { %9035 = vst [vmem:[#allocation19_spill] sm:$0xff] %v6903_v16  ;;  %v6905_v49 = vpop.eup %5279  ;;  %5291 = vpow2.f32 %v2463_v44  ;;  %v2289_v50 = vpop.xlane.xlu0 %2288 }
 0x3e5   : > { %9036 = vst [vmem:[#allocation34_spill] sm:$0xff] %v6905_v49  ;;  %v6907_v60 = vpop.eup %5281  ;;  %v2365_v9 = vsub.f32 %v9038_v41, %v2289_v50  ;;  %v2366_v38 = vsub.f32 %v9039_v7, %v2289_v50  ;;  %v2563_v27 = vadd.f32 %v6905_v49, %v6903_v16  ;;  %v1102_v7 = vpop.f32.mrb[1].mxu1  ;;  %v9047_v16 = vld [vmem:[#allocation26_spill] sm:$0xff] }
 0x3e6   : > { %9037 = vst [vmem:[#allocation20_spill] sm:$0xff] %v6907_v60  ;;  %v6913_v2 = vpop.eup %5283  ;;  %v2292_v47 = vpop.xlane.xlu1 %2291 }
 0x3e7   : > { %9040 = vst [vmem:[#allocation21_spill] sm:$0xff] %v6913_v2  ;;  %v2465_v48 = vmul.f32 1.442695, %v2365_v9  ;;  %v2467_v40 = vmul.f32 1.442695, %v2366_v38  ;;  %v2367_v5 = vsub.f32 %v9041_v15, %v2292_v47  ;;  %v2368_v28 = vsub.f32 %v9042_v62, %v2292_v47  ;;  %2564 = vadd.xlane.f32.xlu0 %v2563_v27  ;;  %v9045_v15 = vld [vmem:[#allocation46_spill] sm:$0xff] }
 0x3e8   : > { %v2566_v37 = vadd.f32 %v6913_v2, %v6907_v60  ;;  %v543_v47 = vsub.s32 2, %v9045_v15  ;;  %v547_v27 = vsub.s32 3, %v9045_v15 }
 0x3e9   : > { %5293 = vpow2.f32 %v2465_v48  ;;  %v2469_v44 = vmul.f32 1.442695, %v2367_v5  ;;  %v2471_v50 = vmul.f32 1.442695, %v2368_v28  ;;  %v9048_v5 = vld [vmem:[#allocation27_spill] sm:$0xff] }
 0x3ea   : > { %5295 = vpow2.f32 %v2467_v40  ;;  %2567 = vadd.xlane.f32.xlu1 %v2566_v37 }
 0x3eb   : > { %v6919_v41 = vpop.eup %5285  ;;  %5297 = vpow2.f32 %v2469_v44 }
 0x3ec   : > { %9043 = vst [vmem:[#allocation22_spill] sm:$0xff] %v6919_v41  ;;  %v6921_v9 = vpop.eup %5287  ;;  %5299 = vpow2.f32 %v2471_v50  ;;  %v2295_v38 = vpop.xlane.xlu0 %2294  ;;  %v9050_v50 = vld [vmem:[#allocation28_spill] sm:$0xff] }
 0x3ed   : > { %9044 = vst [vmem:[#allocation23_spill] sm:$0xff] %v6921_v9  ;;  %v6925_v62 = vpop.eup %5289  ;;  %v2369_v48 = vsub.f32 %v9047_v16, %v2295_v38  ;;  %v2370_v28 = vsub.f32 %v9048_v5, %v2295_v38  ;;  %v2569_v40 = vadd.f32 %v6921_v9, %v6919_v41  ;;  %v5413_v16 = vld [vmem:[%s8725_s2] sm:$0xf]  ;;  %v1104_v41 = vpop.f32.mrb[2].mxu1 }
 0x3ee   : > { %9046 = vst [vmem:[#allocation24_spill] sm:$0xff] %v6925_v62  ;;  %v6931_v37 = vpop.eup %5291  ;;  %v2298_v44 = vpop.xlane.xlu1 %2297  ;;  %v6940_v38 = vrot.slane %v5413_v16, %v543_v47  ;;  %v6942_v5 = vrot.slane %v5413_v16, %v547_v27 }
 0x3ef   : > { %9049 = vst [vmem:[#allocation25_spill] sm:$0xff] %v6931_v37  ;;  %v2473_v60 = vmul.f32 1.442695, %v2369_v48  ;;  %v2475_v2 = vmul.f32 1.442695, %v2370_v28  ;;  %v2371_v49 = vsub.f32 %v9050_v50, %v2298_v44  ;;  %v2372_v32 = vsub.f32 %v9051_v24, %v2298_v44  ;;  %2570 = vadd.xlane.f32.xlu0 %v2569_v40  ;;  %v1106_v9 = vpop.f32.mrb[3].mxu1 }
 0x3f0   : > { %v2572_v15 = vadd.f32 %v6931_v37, %v6925_v62  ;;  %v1110_v24 = vpop.f32.mrb[4].mxu1  ;;  %v6949_v47 = vadd.f32 %v1100_v55, %v6940_v38  ;;  %v6952_v27 = vadd.f32 %v1102_v7, %v6942_v5  ;;  %v6966_v7 = vadd.f32 %v1104_v41, %v6940_v38 }
 0x3f1   : > { %5301 = vpow2.f32 %v2473_v60  ;;  %v2477_v48 = vmul.f32 1.442695, %v2371_v49  ;;  %v2479_v28 = vmul.f32 1.442695, %v2372_v32  ;;  %v1112_v44 = vpop.f32.mrb[5].mxu1  ;;  %v9055_v60 = vld [vmem:[#allocation30_spill] sm:$0xff]  ;;  %v6969_v19 = vadd.f32 %v1106_v9, %v6942_v5 }
 0x3f2   : > { %5303 = vpow2.f32 %v2475_v2  ;;  %2573 = vadd.xlane.f32.xlu1 %v2572_v15  ;;  %v1114_v49 = vpop.f32.mrb[6].mxu1  ;;  %v9056_v15 = vld [vmem:[#allocation31_spill] sm:$0xff] }
 0x3f3   : > { %v6944_v40 = vpop.eup %5293  ;;  %5305 = vpow2.f32 %v2477_v48  ;;  %v1116_v37 = vpop.f32.mrb[7].mxu1  ;;  %v9071_v21 = vmax.f32 %v6969_v19, 0.0 }
 0x3f4   : > { %9052 = vst [vmem:[#allocation46_spill] sm:$0xff] %v6944_v40  ;;  %v6946_v50 = vpop.eup %5295  ;;  %5307 = vpow2.f32 %v2479_v28  ;;  %v2301_v62 = vpop.xlane.xlu0 %2300  ;;  %v3579_v28 = vld [vmem:[%s8728_s5] ss:$2 sm:$0x3] }
 0x3f5   : > { %9053 = vst [vmem:[#allocation26_spill] sm:$0xff] %v6946_v50  ;;  %v6954_v32 = vpop.eup %5297  ;;  %v2373_v2 = vsub.f32 %v9055_v60, %v2301_v62  ;;  %v2374_v16 = vsub.f32 %v9056_v15, %v2301_v62  ;;  %v2575_v48 = vadd.f32 %v6946_v50, %v6944_v40  ;;  %v6972_v60 = vadd.f32 %v1110_v24, %v6940_v38  ;;  %v1120_v62 = vpop.f32.mrb[8].mxu1  ;;  %v9058_v50 = vld [vmem:[#allocation32_spill] sm:$0xff] }
 0x3f6   : > { %9054 = vst [vmem:[#allocation27_spill] sm:$0xff] %v6954_v32  ;;  %v6963_v55 = vpop.eup %5299  ;;  %v2304_v45 = vpop.xlane.xlu1 %2303  ;;  %v6980_v9 = vrot.slane %v3579_v28, %v9060_v35 }
 0x3f7   : > { %9057 = vst [vmem:[#allocation28_spill] sm:$0xff] %v6963_v55  ;;  %v2481_v15 = vmul.f32 1.442695, %v2373_v2  ;;  %v2483_v40 = vmul.f32 1.442695, %v2374_v16  ;;  %v2375_v42 = vsub.f32 %v9058_v50, %v2304_v45  ;;  %v2376_v14 = vsub.f32 %v9059_v57, %v2304_v45  ;;  %2576 = vadd.xlane.f32.xlu0 %v2575_v48  ;;  %v1122_v46 = vpop.f32.mrb[9].mxu1 }
 0x3f8   : > { %v2578_v13 = vadd.f32 %v6963_v55, %v6954_v32  ;;  %v1124_v11 = vpop.f32.mrb[10].mxu1  ;;  %v6984_v50 = vrot.slane %v3579_v28, %v9061_v26  ;;  %v6988_v48 = vadd.f32 %v1112_v44, %v6942_v5  ;;  %v7004_v44 = vadd.f32 %v1122_v46, %v6942_v5 }
 0x3f9   : > { %5309 = vpow2.f32 %v2481_v15  ;;  %v2485_v2 = vmul.f32 1.442695, %v2375_v42  ;;  %v2487_v16 = vmul.f32 1.442695, %v2376_v14  ;;  %v1126_v57 = vpop.f32.mrb[11].mxu1  ;;  %v6995_v14 = vadd.f32 %v1114_v49, %v6940_v38 }
 0x3fa   : > { %5311 = vpow2.f32 %v2483_v40  ;;  %2579 = vadd.xlane.f32.xlu1 %v2578_v13  ;;  %v1130_v41 = vpop.f32.mrb[12].mxu1  ;;  %v7001_v40 = vadd.f32 %v1120_v62, %v6940_v38  ;;  %v9065_v49 = vmax.f32 %v6949_v47, 0.0  ;;  %v7017_v62 = vadd.f32 %v1116_v37, %v6942_v5 }
 0x3fb   : > { %v6990_v32 = vpop.eup %5301  ;;  %5313 = vpow2.f32 %v2485_v2  ;;  %v1132_v28 = vpop.f32.mrb[13].mxu1  ;;  %v9068_v31 = vmax.f32 %v6972_v60, 0.0  ;;  %v3594_v39 = vmul.f32 %v6984_v50, %v9071_v21  ;;  %v7036_v17 = vadd.f32 %v1124_v11, %v6940_v38 }
 0x3fc   : > { %9062 = vst [vmem:[#allocation29_spill] sm:$0xff] %v6990_v32  ;;  %v6997_v15 = vpop.eup %5303  ;;  %5315 = vpow2.f32 %v2487_v16  ;;  %v1134_v2 = vpop.f32.mrb[14].mxu1  ;;  %v3591_v24 = vmul.f32 %v6980_v9, %v9065_v49  ;;  %v9066_v16 = vmax.f32 %v6952_v27, 0.0  ;;  %v7045_v6 = vadd.f32 %v1126_v57, %v6942_v5 }
 0x3fd   : > { %9063 = vst [vmem:[#allocation30_spill] sm:$0xff] %v6997_v15  ;;  %v7006_v45 = vpop.eup %5305  ;;  %v2581_v42 = vadd.f32 %v6997_v15, %v6990_v32  ;;  %v1136_v55 = vpop.f32.mrb[15].mxu1  ;;  %v3595_v23 = vmul.f32 %v6980_v9, %v9068_v31  ;;  %v9069_v32 = vmax.f32 %v6988_v48, 0.0  ;;  %v7048_v21 = vadd.f32 %v1130_v41, %v6940_v38  ;;  %v4801_v41 = vld [vmem:[%s8728_s5 + $0x1] ss:$2 sm:$0x3] }
 0x3fe   : > { %9064 = vst [vmem:[#allocation31_spill] sm:$0xff] %v7006_v45  ;;  %v3592_v13 = vmul.f32 %v6984_v50, %v9066_v16  ;;  %v7019_v46 = vpop.eup %5307  ;;  %v1140_v58 = vpop.f32.mrb[16].mxu1  ;;  %v9070_v16 = vmax.f32 %v6966_v7, 0.0  ;;  %v7051_v11 = vadd.f32 %v1132_v28, %v6942_v5  ;;  %v9077_v57 = vmax.f32 %v6995_v14, 0.0 }
 0x3ff   : > { %9067 = vst [vmem:[#allocation32_spill] sm:$0xff] %v7019_v46  ;;  %v3596_v15 = vmul.f32 %v6984_v50, %v9069_v32  ;;  %2582 = vadd.xlane.f32.xlu0 %v2581_v42  ;;  %v2584_v49 = vadd.f32 %v7019_v46, %v7006_v45  ;;  %v1142_v31 = vpop.f32.mrb[17].mxu1  ;;  %v9081_v56 = vmax.f32 %v7017_v62, 0.0  ;;  %v7085_v54 = vadd.f32 %v1136_v55, %v6942_v5 }
 0x400   : > { %v3593_v37 = vmul.f32 %v6980_v9, %v9070_v16  ;;  %v1144_v33 = vpop.f32.mrb[18].mxu1  ;;  %v7042_v46 = vadd.f32 %v3592_v13, %v3591_v24  ;;  %v3597_v28 = vmul.f32 %v6980_v9, %v9077_v57  ;;  %v7098_v55 = vrot.slane %v4801_v41, %v9060_v35 }
 0x401   : > { %2585 = vadd.xlane.f32.xlu1 %v2584_v49  ;;  %v1146_v16 = vpop.f32.mrb[19].mxu1  ;;  %v7053_v34 = vadd.f32 %v3596_v15, %v3595_v23  ;;  %v9078_v23 = vmax.f32 %v7001_v40, 0.0  ;;  %v3598_v57 = vmul.f32 %v6984_v50, %v9081_v56  ;;  %v7108_v22 = vadd.f32 %v1142_v31, %v6942_v5 }
 0x402   : > { %9072 = vst [vmem:[#allocation33_spill] sm:$0xff] %v7042_v46  ;;  %v1150_v32 = vpop.f32.mrb[20].mxu1  ;;  %v7058_v45 = vadd.f32 %v3594_v39, %v3593_v37  ;;  %v7075_v37 = vadd.f32 %v1134_v2, %v6940_v38  ;;  %v9086_v31 = vmax.f32 %v7045_v6, 0.0  ;;  %v9109_v53 = vmax.f32 %v7017_v62, 0.0 }
 0x403   : > { %9073 = vst [vmem:[#allocation47_spill] sm:$0xff] %v7053_v34  ;;  %v7055_v42 = vpop.eup %5309  ;;  %v1152_v24 = vpop.f32.mrb[21].mxu1  ;;  %v3599_v15 = vmul.f32 %v6980_v9, %v9078_v23  ;;  %v9079_v34 = vmax.f32 %v7004_v44, 0.0  ;;  %v7088_v23 = vadd.f32 %v1140_v58, %v6940_v38  ;;  %v7101_v58 = vrot.slane %v4801_v41, %v9061_v26 }
 0x404   : > { %9074 = vst [vmem:[#allocation48_spill] sm:$0xff] %v7055_v42  ;;  %9075 = vst [vmem:[#allocation80_spill] sm:$0xff] %v7058_v45  ;;  %v7060_v13 = vpop.eup %5311  ;;  %v1154_v49 = vpop.f32.mrb[22].mxu1  ;;  %v3602_v20 = vmul.f32 %v6984_v50, %v9086_v31  ;;  %v9089_v31 = vmax.f32 %v6949_v47, 0.0 }
 0x405   : > { %9076 = vst [vmem:[#allocation81_spill] sm:$0xff] %v7060_v13  ;;  %v3600_v39 = vmul.f32 %v6984_v50, %v9079_v34  ;;  %v7077_v45 = vpop.eup %5313  ;;  %v2587_v46 = vadd.f32 %v7060_v13, %v7055_v42  ;;  %v1156_v34 = vpop.f32.mrb[23].mxu1  ;;  %v9083_v13 = vmax.f32 %v7036_v17, 0.0  ;;  %v9093_v47 = vmax.f32 %v7088_v23, 0.0 }
 0x406   : > { %9080 = vst [vmem:[#allocation82_spill] sm:$0xff] %v7077_v45  ;;  %v7090_v4 = vpop.eup %5315  ;;  %v1160_v42 = vpop.f32.mrb[24].mxu1 }
 0x407   : > { %9082 = vst [vmem:[#allocation83_spill] sm:$0xff] %v7090_v4  ;;  %2588 = vadd.xlane.f32.xlu0 %v2587_v46  ;;  %v2590_v56 = vadd.f32 %v7090_v4, %v7077_v45  ;;  %v3601_v59 = vmul.f32 %v6980_v9, %v9083_v13  ;;  %v1162_v2 = vpop.f32.mrb[25].mxu1  ;;  %v7111_v46 = vadd.f32 %v1144_v33, %v6940_v38  ;;  %v9087_v33 = vmax.f32 %v7048_v21, 0.0 }
 0x408   : > { %v7113_v45 = vadd.f32 %v3600_v39, %v3599_v15  ;;  %v1164_v35 = vpop.f32.mrb[26].mxu1  ;;  %v7117_v4 = vadd.f32 %v3598_v57, %v3597_v28  ;;  %v7120_v13 = vadd.f32 %v1146_v16, %v6942_v5  ;;  %v9088_v39 = vmax.f32 %v7051_v11, 0.0 }
 0x409   : > { %2591 = vadd.xlane.f32.xlu1 %v2590_v56  ;;  %v1166_v1 = vpop.f32.mrb[27].mxu1  ;;  %v3603_v15 = vmul.f32 %v6980_v9, %v9087_v33  ;;  %v7133_v57 = vadd.f32 %v1150_v32, %v6940_v38  ;;  %v7136_v16 = vadd.f32 %v1152_v24, %v6942_v5  ;;  %v9090_v33 = vmax.f32 %v6952_v27, 0.0 }
 0x40a   : > { %9084 = vst [vmem:[#allocation84_spill] sm:$0xff] %v7113_v45  ;;  %9085 = vst [vmem:[#allocation85_spill] sm:$0xff] %v7117_v4  ;;  %v3604_v56 = vmul.f32 %v6984_v50, %v9088_v39  ;;  %v1170_v28 = vpop.f32.mrb[28].mxu1  ;;  %v7141_v4 = vmul.f32 %v7098_v55, %v9089_v31  ;;  %v9091_v39 = vmax.f32 %v7075_v37, 0.0  ;;  %v9092_v24 = vmax.f32 %v7085_v54, 0.0 }
 0x40b   : > { %v1172_v26 = vpop.f32.mrb[29].mxu1  ;;  %v7146_v45 = vmul.f32 %v7101_v58, %v9090_v33  ;;  %v3607_v31 = vmul.f32 %v6980_v9, %v9093_v47  ;;  %v9094_v27 = vmax.f32 %v7108_v22, 0.0  ;;  %v7167_v3 = vadd.f32 %v3602_v20, %v3601_v59 }
 0x40c   : > { %v3605_v41 = vmul.f32 %v6980_v9, %v9091_v39  ;;  %v1174_v25 = vpop.f32.mrb[30].mxu1  ;;  %v3606_v63 = vmul.f32 %v6984_v50, %v9092_v24  ;;  %v7163_v39 = vadd.f32 %v1154_v49, %v6940_v38  ;;  %v7165_v32 = vadd.f32 %v3604_v56, %v3603_v15 }
 0x40d   : > { %v3608_v33 = vmul.f32 %v6984_v50, %v9094_v27  ;;  %v1176_v61 = vpop.f32.mrb[31].mxu1  ;;  %9096 = vst [vmem:[#allocation87_spill] sm:$0xff] %v7167_v3  ;;  %v7170_v24 = vadd.f32 %v1156_v34, %v6942_v5  ;;  %v9097_v47 = vmax.f32 %v6966_v7, 0.0  ;;  %v9098_v27 = vmax.f32 %v6969_v19, 0.0 }
 0x40e   : > { %9095 = vst [vmem:[#allocation86_spill] sm:$0xff] %v7165_v32  ;;  %v1180_v0 = vpop.f32.mrb[32].mxu1  ;;  %v9099_v59 = vmax.f32 %v6972_v60, 0.0  ;;  %v9100_v7 = vmax.f32 %v6988_v48, 0.0  ;;  %v9101_v19 = vmax.f32 %v7111_v46, 0.0  ;;  %v7201_v15 = vadd.f32 %v1162_v2, %v6942_v5 }
 0x40f   : > { %v7175_v43 = vmul.f32 %v7098_v55, %v9097_v47  ;;  %v7180_v29 = vmul.f32 %v7101_v58, %v9098_v27  ;;  %v1182_v20 = vpop.f32.mrb[33].mxu1  ;;  %v7198_v27 = vadd.f32 %v1160_v42, %v6940_v38  ;;  %v7204_v60 = vadd.f32 %v1164_v35, %v6940_v38 }
 0x410   : > { %v7187_v34 = vmul.f32 %v7098_v55, %v9099_v59  ;;  %v7192_v56 = vmul.f32 %v7101_v58, %v9100_v7  ;;  %v3609_v47 = vmul.f32 %v6980_v9, %v9101_v19  ;;  %v1184_v49 = vpop.f32.mrb[34].mxu1  ;;  %v7206_v59 = vadd.f32 %v3608_v33, %v3607_v31 }
 0x411   : > { %v7208_v48 = vadd.f32 %v3606_v63, %v3605_v41  ;;  %v1186_v7 = vpop.f32.mrb[35].mxu1  ;;  %v9104_v3 = vmax.f32 %v7120_v13, 0.0  ;;  %v9105_v30 = vmax.f32 %v7133_v57, 0.0  ;;  %v9106_v31 = vmax.f32 %v7136_v16, 0.0 }
 0x412   : > { %9102 = vst [vmem:[#allocation88_spill] sm:$0xff] %v7206_v59  ;;  %v1190_v2 = vpop.f32.mrb[36].mxu1  ;;  %v7224_v33 = vadd.f32 %v1166_v1, %v6942_v5  ;;  %v9107_v19 = vmax.f32 %v6995_v14, 0.0  ;;  %v9111_v1 = vmax.f32 %v7001_v40, 0.0  ;;  %v9113_v14 = vmax.f32 %v7004_v44, 0.0 }
 0x413   : > { %9103 = vst [vmem:[#allocation89_spill] sm:$0xff] %v7208_v48  ;;  %v3610_v32 = vmul.f32 %v6984_v50, %v9104_v3  ;;  %v3611_v35 = vmul.f32 %v6980_v9, %v9105_v30  ;;  %v3612_v63 = vmul.f32 %v6984_v50, %v9106_v31  ;;  %v1192_v3 = vpop.f32.mrb[37].mxu1  ;;  %v7234_v48 = vmul.f32 %v7101_v58, %v9109_v53 }
 0x414   : > { %v7229_v42 = vmul.f32 %v7098_v55, %v9107_v19  ;;  %v7237_v30 = vadd.f32 %v1170_v28, %v6940_v38  ;;  %v7240_v31 = vadd.f32 %v1172_v26, %v6942_v5  ;;  %v1194_v41 = vpop.f32.mrb[38].mxu1  ;;  %v7245_v59 = vmul.f32 %v7098_v55, %v9111_v1 }
 0x415   : > { %9110 = vst [vmem:[#allocation91_spill] sm:$0xff] %v7234_v48  ;;  %v7250_v19 = vmul.f32 %v7101_v58, %v9113_v14  ;;  %v7254_v62 = vadd.f32 %v1174_v25, %v6940_v38  ;;  %v1196_v28 = vpop.f32.mrb[39].mxu1  ;;  %v9115_v26 = vmax.f32 %v7163_v39, 0.0  ;;  %v9116_v40 = vmax.f32 %v7170_v24, 0.0 }
 0x416   : > { %9108 = vst [vmem:[#allocation90_spill] sm:$0xff] %v7229_v42  ;;  %9112 = vst [vmem:[#allocation92_spill] sm:$0xff] %v7245_v59  ;;  %v9117_v36 = vmax.f32 %v7198_v27, 0.0  ;;  %v9118_v14 = vmax.f32 %v7201_v15, 0.0  ;;  %v1200_v10 = vpop.f32.mrb[40].mxu1  ;;  %v7269_v18 = vadd.f32 %v3612_v63, %v3611_v35  ;;  %v7271_v8 = vadd.f32 %v3610_v32, %v3609_v47 }
 0x417   : > { %9114 = vst [vmem:[#allocation93_spill] sm:$0xff] %v7250_v19  ;;  %v3613_v12 = vmul.f32 %v6980_v9, %v9115_v26  ;;  %v3614_v1 = vmul.f32 %v6984_v50, %v9116_v40  ;;  %v7274_v26 = vadd.f32 %v1176_v61, %v6942_v5  ;;  %v1202_v51 = vpop.f32.mrb[41].mxu1  ;;  %v9121_v40 = vmax.f32 %v7036_v17, 0.0 }
 0x418   : > { %v3615_v44 = vmul.f32 %v6980_v9, %v9117_v36  ;;  %v3616_v53 = vmul.f32 %v6984_v50, %v9118_v14  ;;  %9119 = vst [vmem:[#allocation94_spill] sm:$0xff] %v7269_v18  ;;  %9120 = vst [vmem:[#allocation95_spill] sm:$0xff] %v7271_v8  ;;  %v9123_v36 = vmax.f32 %v7045_v6, 0.0  ;;  %v1204_v32 = vpop.f32.mrb[42].mxu1  ;;  %v9125_v47 = vmax.f32 %v7048_v21, 0.0 }
 0x419   : > { %v7279_v52 = vmul.f32 %v7098_v55, %v9121_v40  ;;  %v9127_v17 = vmax.f32 %v7204_v60, 0.0  ;;  %v7298_v6 = vadd.f32 %v1180_v0, %v6940_v38  ;;  %v7301_v25 = vadd.f32 %v1182_v20, %v6942_v5 }
 0x41a   : > { %v7284_v14 = vmul.f32 %v7101_v58, %v9123_v36  ;;  %v7291_v61 = vmul.f32 %v7098_v55, %v9125_v47  ;;  %v1206_v36 = vpop.f32.mrb[43].mxu1  ;;  %v7304_v35 = vadd.f32 %v1184_v49, %v6940_v38  ;;  %v7306_v21 = vadd.f32 %v3616_v53, %v3615_v44 }
 0x41b   : > { %9122 = vst [vmem:[#allocation96_spill] sm:$0xff] %v7279_v52  ;;  %v3617_v63 = vmul.f32 %v6980_v9, %v9127_v17  ;;  %v7308_v47 = vadd.f32 %v3614_v1, %v3613_v12  ;;  %v1210_v8 = vpop.f32.mrb[44].mxu1  ;;  %v9130_v18 = vmax.f32 %v7224_v33, 0.0  ;;  %v9131_v49 = vmax.f32 %v7237_v30, 0.0 }
 0x41c   : > { %9124 = vst [vmem:[#allocation97_spill] sm:$0xff] %v7284_v14  ;;  %9126 = vst [vmem:[#allocation98_spill] sm:$0xff] %v7291_v61  ;;  %v7316_v14 = vadd.f32 %v1186_v7, %v6942_v5  ;;  %v1212_v20 = vpop.f32.mrb[45].mxu1  ;;  %v9132_v12 = vmax.f32 %v7240_v31, 0.0  ;;  %v9133_v0 = vmax.f32 %v7051_v11, 0.0  ;;  %v7344_v44 = vadd.f32 %v1192_v3, %v6942_v5 }
 0x41d   : > { %9128 = vst [vmem:[#allocation99_spill] sm:$0xff] %v7306_v21  ;;  %9129 = vst [vmem:[#allocation100_spill] sm:$0xff] %v7308_v47  ;;  %v3618_v17 = vmul.f32 %v6984_v50, %v9130_v18  ;;  %v3619_v53 = vmul.f32 %v6980_v9, %v9131_v49  ;;  %v7326_v18 = vadd.f32 %v1190_v2, %v6940_v38  ;;  %v1214_v40 = vpop.f32.mrb[46].mxu1  ;;  %v9135_v47 = vmax.f32 %v7075_v37, 0.0 }
 0x41e   : > { %v3620_v1 = vmul.f32 %v6984_v50, %v9132_v12  ;;  %v7331_v7 = vmul.f32 %v7101_v58, %v9133_v0  ;;  %v9137_v49 = vmax.f32 %v7085_v54, 0.0  ;;  %v1216_v2 = vpop.f32.mrb[47].mxu1  ;;  %v9139_v52 = vmax.f32 %v7088_v23, 0.0 }
 0x41f   : > { %v7336_v21 = vmul.f32 %v7098_v55, %v9135_v47  ;;  %v9141_v0 = vmax.f32 %v7254_v62, 0.0  ;;  %v7356_v54 = vadd.f32 %v1194_v41, %v6940_v38  ;;  %v9142_v3 = vmax.f32 %v7274_v26, 0.0 }
 0x420   : > { %9134 = vst [vmem:[#allocation101_spill] sm:$0xff] %v7331_v7  ;;  %v7341_v12 = vmul.f32 %v7101_v58, %v9137_v49  ;;  %v7349_v11 = vmul.f32 %v7098_v55, %v9139_v52  ;;  %v7358_v49 = vpop.f32.mrb[48].mxu1  ;;  %v9143_v23 = vmax.f32 %v7298_v6, 0.0  ;;  %v7371_v7 = vadd.f32 %v3620_v1, %v3619_v53 }
 0x421   : > { %9136 = vst [vmem:[#allocation102_spill] sm:$0xff] %v7336_v21  ;;  %v3621_v37 = vmul.f32 %v6980_v9, %v9141_v0  ;;  %v9144_v21 = vmax.f32 %v7301_v25, 0.0  ;;  %v1222_v47 = vpop.f32.mrb[49].mxu1  ;;  %v7373_v61 = vadd.f32 %v3618_v17, %v3617_v63  ;;  %v7376_v48 = vadd.f32 %v1196_v28, %v6942_v5 }
 0x422   : > { %9138 = vst [vmem:[#allocation103_spill] sm:$0xff] %v7341_v12  ;;  %9140 = vst [vmem:[#allocation104_spill] sm:$0xff] %v7349_v11  ;;  %v3622_v12 = vmul.f32 %v6984_v50, %v9142_v3  ;;  %v3623_v52 = vmul.f32 %v6980_v9, %v9143_v23  ;;  %v1224_v3 = vpop.f32.mrb[50].mxu1  ;;  %v9147_v42 = vmax.f32 %v7108_v22, 0.0  ;;  %v9151_v41 = vmax.f32 %v7120_v13, 0.0 }
 0x423   : > { %v3624_v11 = vmul.f32 %v6984_v50, %v9144_v21  ;;  %9145 = vst [vmem:[#allocation105_spill] sm:$0xff] %v7371_v7  ;;  %9146 = vst [vmem:[#allocation106_spill] sm:$0xff] %v7373_v61  ;;  %v9149_v21 = vmax.f32 %v7111_v46, 0.0  ;;  %v1226_v28 = vpop.f32.mrb[51].mxu1  ;;  %v9153_v17 = vmax.f32 %v7304_v35, 0.0  ;;  %v7400_v46 = vadd.f32 %v1200_v10, %v6940_v38 }
 0x424   : > { %v7381_v23 = vmul.f32 %v7101_v58, %v9147_v42  ;;  %v7391_v53 = vmul.f32 %v7101_v58, %v9151_v41  ;;  %v7403_v13 = vadd.f32 %v1202_v51, %v6942_v5  ;;  %v7406_v41 = vadd.f32 %v1204_v32, %v6940_v38 }
 0x425   : > { %v7386_v0 = vmul.f32 %v7098_v55, %v9149_v21  ;;  %v3625_v22 = vmul.f32 %v6980_v9, %v9153_v17  ;;  %v1230_v21 = vpop.f32.mrb[52].mxu1  ;;  %v7408_v63 = vadd.f32 %v3624_v11, %v3623_v52  ;;  %v7410_v61 = vadd.f32 %v3622_v12, %v3621_v37 }
 0x426   : > { %9148 = vst [vmem:[#allocation107_spill] sm:$0xff] %v7381_v23  ;;  %9152 = vst [vmem:[#allocation109_spill] sm:$0xff] %v7391_v53  ;;  %v1232_v7 = vpop.f32.mrb[53].mxu1  ;;  %v9157_v17 = vmax.f32 %v7316_v14, 0.0  ;;  %v9158_v1 = vmax.f32 %v7326_v18, 0.0  ;;  %v7420_v51 = vadd.f32 %v1206_v36, %v6942_v5  ;;  %v9159_v11 = vmax.f32 %v7344_v44, 0.0 }
 0x427   : > { %9150 = vst [vmem:[#allocation108_spill] sm:$0xff] %v7386_v0  ;;  %9154 = vst [vmem:[#allocation110_spill] sm:$0xff] %v7403_v13  ;;  %v1234_v32 = vpop.f32.mrb[54].mxu1  ;;  %v7427_v52 = vadd.f32 %v1210_v8, %v6940_v38  ;;  %v9162_v36 = vmax.f32 %v7136_v16, 0.0  ;;  %v9166_v8 = vmax.f32 %v7170_v24, 0.0  ;;  %v9169_v16 = vmax.f32 %v7376_v48, 0.0 }
 0x428   : > { %9155 = vst [vmem:[#allocation111_spill] sm:$0xff] %v7408_v63  ;;  %9156 = vst [vmem:[#allocation112_spill] sm:$0xff] %v7410_v61  ;;  %v3626_v42 = vmul.f32 %v6984_v50, %v9157_v17  ;;  %v3627_v10 = vmul.f32 %v6980_v9, %v9158_v1  ;;  %v3628_v12 = vmul.f32 %v6984_v50, %v9159_v11  ;;  %v1236_v61 = vpop.f32.mrb[55].mxu1  ;;  %v9160_v1 = vmax.f32 %v7133_v57, 0.0 }
 0x429   : > { %v7430_v17 = vadd.f32 %v1212_v20, %v6942_v5  ;;  %v7440_v63 = vmul.f32 %v7101_v58, %v9162_v36  ;;  %v9164_v11 = vmax.f32 %v7163_v39, 0.0  ;;  %v7450_v20 = vmul.f32 %v7101_v58, %v9166_v8  ;;  %v7452_v0 = vpop.f32.mrb[56].mxu1 }
 0x42a   : > { %v7435_v53 = vmul.f32 %v7098_v55, %v9160_v1  ;;  %v9168_v57 = vmax.f32 %v7356_v54, 0.0  ;;  %v3630_v36 = vmul.f32 %v6984_v50, %v9169_v16  ;;  %v9170_v24 = vmax.f32 %v7400_v46, 0.0 }
 0x42b   : > { %9163 = vst [vmem:[#allocation114_spill] sm:$0xff] %v7440_v63  ;;  %v7445_v37 = vmul.f32 %v7098_v55, %v9164_v11  ;;  %9167 = vst [vmem:[#allocation116_spill] sm:$0xff] %v7450_v20  ;;  %v7462_v11 = vadd.f32 %v1214_v40, %v6940_v38  ;;  %v9171_v20 = vmax.f32 %v7403_v13, 0.0  ;;  %v7473_v39 = vadd.f32 %v3628_v12, %v3627_v10 }
 0x42c   : > { %9161 = vst [vmem:[#allocation113_spill] sm:$0xff] %v7435_v53  ;;  %v3629_v1 = vmul.f32 %v6980_v9, %v9168_v57  ;;  %v3631_v8 = vmul.f32 %v6980_v9, %v9170_v24  ;;  %v7475_v40 = vadd.f32 %v3626_v42, %v3625_v22  ;;  %v7478_v19 = vadd.f32 %v1216_v2, %v6942_v5 }
 0x42d   : > { %9165 = vst [vmem:[#allocation115_spill] sm:$0xff] %v7445_v37  ;;  %v1242_v37 = vpop.f32.mrb[57].mxu1  ;;  %v3632_v63 = vmul.f32 %v6984_v50, %v9171_v20  ;;  %9172 = vst [vmem:[#allocation117_spill] sm:$0xff] %v7473_v39  ;;  %v9174_v24 = vmax.f32 %v7198_v27, 0.0  ;;  %v9175_v20 = vmax.f32 %v7201_v15, 0.0  ;;  %v9176_v16 = vmax.f32 %v7204_v60, 0.0 }
 0x42e   : > { %v1244_v23 = vpop.f32.mrb[58].mxu1  ;;  %9173 = vst [vmem:[#allocation118_spill] sm:$0xff] %v7475_v40  ;;  %v9177_v22 = vmax.f32 %v7224_v33, 0.0  ;;  %v9179_v27 = vmax.f32 %v7406_v41, 0.0  ;;  %v7507_v60 = vadd.f32 %v7358_v49, %v6940_v38  ;;  %v7513_v33 = vadd.f32 %v1224_v3, %v6940_v38 }
 0x42f   : > { %v1246_v59 = vpop.f32.mrb[59].mxu1  ;;  %v7483_v13 = vmul.f32 %v7098_v55, %v9174_v24  ;;  %v7488_v53 = vmul.f32 %v7101_v58, %v9175_v20  ;;  %v7493_v10 = vmul.f32 %v7098_v55, %v9176_v16  ;;  %v7510_v20 = vadd.f32 %v1222_v47, %v6942_v5 }
 0x430   : > { %v7498_v2 = vmul.f32 %v7101_v58, %v9177_v22  ;;  %v1250_v42 = vpop.f32.mrb[60].mxu1  ;;  %v3633_v12 = vmul.f32 %v6980_v9, %v9179_v27  ;;  %v7515_v22 = vadd.f32 %v3632_v63, %v3631_v8  ;;  %v7517_v57 = vadd.f32 %v3630_v36, %v3629_v1 }
 0x431   : > { %v1252_v16 = vpop.f32.mrb[61].mxu1  ;;  %v9182_v15 = vmax.f32 %v7420_v51, 0.0  ;;  %v9183_v40 = vmax.f32 %v7427_v52, 0.0  ;;  %v9184_v39 = vmax.f32 %v7430_v17, 0.0  ;;  %v7531_v1 = vadd.f32 %v1226_v28, %v6942_v5 }
 0x432   : > { %9178 = vst [vmem:[#allocation119_spill] sm:$0xff] %v7498_v2  ;;  %9180 = vst [vmem:[#allocation120_spill] sm:$0xff] %v7515_v22  ;;  %v1254_v27 = vpop.f32.mrb[62].mxu1  ;;  %v7534_v36 = vadd.f32 %v1230_v21, %v6940_v38  ;;  %v7537_v8 = vadd.f32 %v1232_v7, %v6942_v5  ;;  %v9188_v63 = vmax.f32 %v7254_v62, 0.0  ;;  %v7555_v21 = vadd.f32 %v1234_v32, %v6940_v38 }
 0x433   : > { %9181 = vst [vmem:[#allocation121_spill] sm:$0xff] %v7517_v57  ;;  %v3634_v24 = vmul.f32 %v6984_v50, %v9182_v15  ;;  %v3635_v49 = vmul.f32 %v6980_v9, %v9183_v40  ;;  %v3636_v47 = vmul.f32 %v6984_v50, %v9184_v39  ;;  %v1256_v2 = vpop.f32.mrb[63].mxu1  ;;  %v9185_v40 = vmax.f32 %v7237_v30, 0.0 }
 0x434   : > { %v9186_v39 = vmax.f32 %v7240_v31, 0.0  ;;  %v7552_v28 = vmul.f32 %v7098_v55, %v9188_v63  ;;  %v9190_v7 = vmax.f32 %v7274_v26, 0.0  ;;  %v9194_v63 = vmax.f32 %v7507_v60, 0.0 }
 0x435   : > { %v7542_v15 = vmul.f32 %v7098_v55, %v9185_v40  ;;  %v9192_v40 = vmax.f32 %v7462_v11, 0.0  ;;  %v9195_v22 = vmax.f32 %v7510_v20, 0.0  ;;  %v9198_v62 = vmax.f32 %v7298_v6, 0.0 }
 0x436   : > { %v7547_v3 = vmul.f32 %v7101_v58, %v9186_v39  ;;  %9189 = vst [vmem:[#allocation123_spill] sm:$0xff] %v7552_v28  ;;  %v7560_v30 = vmul.f32 %v7101_v58, %v9190_v7  ;;  %v9193_v39 = vmax.f32 %v7478_v19, 0.0  ;;  %v3639_v32 = vmul.f32 %v6980_v9, %v9194_v63 }
 0x437   : > { %v3637_v31 = vmul.f32 %v6980_v9, %v9192_v40  ;;  %v3640_v26 = vmul.f32 %v6984_v50, %v9195_v22  ;;  %v8857_v40 = vmax.f32 %v7531_v1, 0.0  ;;  %v7578_v28 = vadd.f32 %v3636_v47, %v3635_v49 }
 0x438   : > { %9187 = vst [vmem:[#allocation122_spill] sm:$0xff] %v7547_v3  ;;  %9191 = vst [vmem:[#allocation124_spill] sm:$0xff] %v7560_v30  ;;  %v3638_v57 = vmul.f32 %v6984_v50, %v9193_v39  ;;  %v7580_v3 = vadd.f32 %v3634_v24, %v3633_v12  ;;  %v7583_v39 = vadd.f32 %v1236_v61, %v6942_v5  ;;  %v9199_v22 = vmax.f32 %v7301_v25, 0.0 }
 0x439   : > { %9196 = vst [vmem:[#allocation125_spill] sm:$0xff] %v7578_v28  ;;  %v7588_v63 = vmul.f32 %v7098_v55, %v9198_v62  ;;  %v9200_v30 = vmax.f32 %v7304_v35, 0.0  ;;  %v9201_v61 = vmax.f32 %v7534_v36, 0.0  ;;  %v9202_v6 = vmax.f32 %v7537_v8, 0.0 }
 0x43a   : > { %9197 = vst [vmem:[#allocation126_spill] sm:$0xff] %v7580_v3  ;;  %v7593_v7 = vmul.f32 %v7101_v58, %v9199_v22  ;;  %v7610_v62 = vadd.f32 %v7452_v0, %v6940_v38  ;;  %v7613_v35 = vadd.f32 %v1242_v37, %v6942_v5  ;;  %v7618_v22 = vadd.f32 %v3640_v26, %v3639_v32 }
 0x43b   : > { %v7598_v49 = vmul.f32 %v7098_v55, %v9200_v30  ;;  %v3643_v24 = vmul.f32 %v6980_v9, %v9201_v61  ;;  %v3644_v47 = vmul.f32 %v6984_v50, %v9202_v6  ;;  %v7616_v30 = vadd.f32 %v1244_v23, %v6940_v38 }
 0x43c   : > { %9203 = vst [vmem:[#allocation127_spill] sm:$0xff] %v7618_v22  ;;  %v7620_v12 = vadd.f32 %v3638_v57, %v3637_v31  ;;  %v9205_v61 = vmax.f32 %v7513_v33, 0.0  ;;  %v3642_v25 = vmul.f32 %v6984_v50, %v8857_v40  ;;  %v8858_v0 = vmax.f32 %v7610_v62, 0.0  ;;  %v2523_v28 = vpop.xlane.xlu0 %2522 }
 0x43d   : > { %v7630_v37 = vadd.f32 %v1246_v59, %v6942_v5  ;;  %v7635_v57 = vadd.f32 %v1250_v42, %v6940_v38  ;;  %v7638_v31 = vadd.f32 %v1252_v16, %v6942_v5  ;;  %v9206_v26 = vmax.f32 %v7316_v14, 0.0 }
 0x43e   : > { %9204 = vst [vmem:[#allocation128_spill] sm:$0xff] %v7620_v12  ;;  %v3641_v6 = vmul.f32 %v6980_v9, %v9205_v61  ;;  %v3647_v59 = vmul.f32 %v6980_v9, %v8858_v0  ;;  %v7649_v23 = vadd.f32 %v3644_v47, %v3643_v24  ;;  %v9208_v32 = vmax.f32 %v7326_v18, 0.0 }
 0x43f   : > { %v7643_v61 = vmul.f32 %v7101_v58, %v9206_v26  ;;  %v8859_v40 = vmax.f32 %v7630_v37, 0.0  ;;  %v9210_v16 = vmax.f32 %v7555_v21, 0.0  ;;  %v9211_v26 = vmax.f32 %v7583_v39, 0.0 }
 0x440   : > { %9207 = vst [vmem:[#allocation129_spill] sm:$0xff] %v7649_v23  ;;  %v7654_v42 = vmul.f32 %v7098_v55, %v9208_v32  ;;  %v9212_v22 = vmax.f32 %v7613_v35, 0.0  ;;  %v9213_v24 = vmax.f32 %v7616_v30, 0.0  ;;  %v8862_v32 = vmax.f32 %v7635_v57, 0.0 }
 0x441   : > { %v3645_v14 = vmul.f32 %v6980_v9, %v9210_v16  ;;  %v3646_v12 = vmul.f32 %v6984_v50, %v9211_v26  ;;  %v3650_v18 = vmul.f32 %v6984_v50, %v8859_v40  ;;  %v7673_v23 = vadd.f32 %v3642_v25, %v3641_v6 }
 0x442   : > { %9209 = vst [vmem:[#allocation130_spill] sm:$0xff] %v7654_v42  ;;  %v3648_v0 = vmul.f32 %v6984_v50, %v9212_v22  ;;  %v3649_v47 = vmul.f32 %v6980_v9, %v9213_v24  ;;  %v7676_v26 = vadd.f32 %v1254_v27, %v6940_v38  ;;  %v7679_v3 = vadd.f32 %v1256_v2, %v6942_v5 }
 0x443   : > { %v9214_v24 = vmax.f32 %v7344_v44, 0.0  ;;  %v9215_v40 = vmax.f32 %v7356_v54, 0.0  ;;  %v3651_v38 = vmul.f32 %v6980_v9, %v8862_v32  ;;  %v9216_v5 = vmax.f32 %v7638_v31, 0.0 }
 0x444   : > { %v7681_v22 = vadd.f32 %v3648_v0, %v3647_v59  ;;  %5317 = vrcp.f32 %v2523_v28  ;;  %v8861_v27 = vmax.f32 %v7676_v26, 0.0  ;;  %v8860_v44 = vmax.f32 %v7679_v3, 0.0 }
 0x445   : > { %v7686_v42 = vmul.f32 %v7101_v58, %v9214_v24  ;;  %v7691_v16 = vmul.f32 %v7098_v55, %v9215_v40  ;;  %v3652_v2 = vmul.f32 %v6984_v50, %v9216_v5  ;;  %v7701_v25 = vadd.f32 %v3646_v12, %v3645_v14  ;;  %v9229_v5 = vld [vmem:[#allocation91_spill] sm:$0xff] }
 0x446   : > { %v7705_v54 = vadd.f32 %v3650_v18, %v3649_v47  ;;  %v7709_v40 = vadd.f32 %v7146_v45, %v7141_v4  ;;  %v7713_v0 = vadd.f32 %v7192_v56, %v7187_v34  ;;  %v9222_v59 = vmax.f32 %v7376_v48, 0.0  ;;  %v2526_v45 = vpop.xlane.xlu1 %2525  ;;  %v2307_v34 = vpop.xlane.xlu0 %2306  ;;  %v9225_v48 = vld [vmem:[#allocation92_spill] sm:$0xff]  ;;  %v9226_v18 = vld [vmem:[#allocation93_spill] sm:$0xff] }
 0x447   : > { %9217 = vst [vmem:[#allocation131_spill] sm:$0xff] %v7701_v25  ;;  %v7703_v6 = vadd.f32 %v3652_v2, %v3651_v38  ;;  %v9223_v12 = vmax.f32 %v7400_v46, 0.0  ;;  %v3653_v47 = vmul.f32 %v6980_v9, %v8861_v27  ;;  %v3654_v4 = vmul.f32 %v6984_v50, %v8860_v44  ;;  %v9228_v38 = vld [vmem:[#allocation90_spill] sm:$0xff]  ;;  %v9232_v9 = vld [vmem:[#allocation101_spill] sm:$0xff] }
 0x448   : > { %9219 = vst [vmem:[#allocation133_spill] sm:$0xff] %v7705_v54  ;;  %9220 = vst [vmem:[#allocation134_spill] sm:$0xff] %v7709_v40  ;;  %v7718_v24 = vmul.f32 %v7101_v58, %v9222_v59  ;;  %v7733_v56 = vadd.f32 %v7180_v29, %v7175_v43  ;;  %v7737_v46 = vadd.f32 %v9226_v18, %v9225_v48  ;;  %v9231_v59 = vld [vmem:[#allocation98_spill] sm:$0xff]  ;;  %5319 = vrcp.f32 %v2526_v45  ;;  %v9234_v50 = vld [vmem:[#allocation37_spill] sm:$0xff] }
 0x449   : > { %9218 = vst [vmem:[#allocation132_spill] sm:$0xff] %v7703_v6  ;;  %9221 = vst [vmem:[#allocation135_spill] sm:$0xff] %v7713_v0  ;;  %v7723_v14 = vmul.f32 %v7098_v55, %v9223_v12  ;;  %v7741_v2 = vadd.f32 %v9229_v5, %v9228_v38  ;;  %v7745_v12 = vadd.f32 %v9232_v9, %v9231_v59  ;;  %v9235_v27 = vld [vmem:[#allocation38_spill] sm:$0xff]  ;;  %v9237_v43 = vld [vmem:[#allocation96_spill] sm:$0xff] }
 0x44a   : > { %9224 = vst [vmem:[#allocation136_spill] sm:$0xff] %v7733_v56  ;;  %9227 = vst [vmem:[#allocation92_spill] sm:$0xff] %v7737_v46  ;;  %v2377_v44 = vsub.f32 %v9234_v50, %v2307_v34  ;;  %v2378_v32 = vsub.f32 %v9235_v27, %v2307_v34  ;;  %v7749_v0 = vadd.f32 %v3654_v4, %v3653_v47  ;;  %v9238_v29 = vld [vmem:[#allocation97_spill] sm:$0xff]  ;;  %v9240_v48 = vld [vmem:[#allocation104_spill] sm:$0xff] }
 0x44b   : > { %9230 = vst [vmem:[#allocation93_spill] sm:$0xff] %v7741_v2  ;;  %9233 = vst [vmem:[#allocation90_spill] sm:$0xff] %v7745_v12  ;;  %v7753_v56 = vadd.f32 %v9238_v29, %v9237_v43  ;;  %v9241_v18 = vld [vmem:[#allocation107_spill] sm:$0xff]  ;;  %v9243_v38 = vld [vmem:[#allocation102_spill] sm:$0xff] }
 0x44c   : > { %9236 = vst [vmem:[#allocation91_spill] sm:$0xff] %v7749_v0  ;;  %v7757_v46 = vadd.f32 %v9241_v18, %v9240_v48  ;;  %v9244_v5 = vld [vmem:[#allocation103_spill] sm:$0xff]  ;;  %v9246_v59 = vld [vmem:[#allocation113_spill] sm:$0xff]  ;;  %v9247_v9 = vld [vmem:[#allocation114_spill] sm:$0xff]  ;;  %v2489_v50 = vmul.f32 1.442695, %v2377_v44  ;;  %v7776_v48 = vpop.xlane.xlu0 %2528  ;;  %v2310_v18 = vpop.xlane.xlu1 %2309 }
 0x44d   : > { %9239 = vst [vmem:[#allocation98_spill] sm:$0xff] %v7753_v56  ;;  %v7761_v2 = vadd.f32 %v9244_v5, %v9243_v38  ;;  %v7765_v12 = vadd.f32 %v9247_v9, %v9246_v59  ;;  %v2491_v27 = vmul.f32 1.442695, %v2378_v32  ;;  %v9249_v47 = vld [vmem:[#allocation110_spill] sm:$0xff]  ;;  %v9251_v43 = vld [vmem:[#allocation108_spill] sm:$0xff]  ;;  %v9252_v29 = vld [vmem:[#allocation109_spill] sm:$0xff] }
 0x44e   : > { %9242 = vst [vmem:[#allocation101_spill] sm:$0xff] %v7757_v46  ;;  %v9250_v4 = vmax.f32 %v9249_v47, 0.0  ;;  %v7774_v56 = vadd.f32 %v9252_v29, %v9251_v43  ;;  %v9254_v38 = vmax.f32 %v7406_v41, 0.0  ;;  %v9255_v44 = vmax.f32 %v7420_v51, 0.0  ;;  %v9257_v47 = vld [vmem:[#allocation115_spill] sm:$0xff]  ;;  %v9260_v29 = vld [vmem:[#allocation41_spill] sm:$0xff] }
 0x44f   : > { %9245 = vst [vmem:[#allocation37_spill] sm:$0xff] %v7761_v2  ;;  %9248 = vst [vmem:[#allocation38_spill] sm:$0xff] %v7765_v12  ;;  %v9256_v59 = vmax.f32 %v7427_v52, 0.0  ;;  %5321 = vpow2.f32 %v2489_v50  ;;  %v2379_v41 = vsub.f32 %v9260_v29, %v2310_v18  ;;  %v9262_v12 = vmax.f32 %v7430_v17, 0.0  ;;  %v5318_v17 = vpop.eup %5317  ;;  %v9295_v46 = vld [vmem:[#allocation39_spill] sm:$0xff]  ;;  %v9296_v0 = vld [vmem:[#allocation40_spill] sm:$0xff] }
 0x450   : > { %v7770_v34 = vmul.f32 %v7101_v58, %v9250_v4  ;;  %9253 = vst [vmem:[#allocation96_spill] sm:$0xff] %v7774_v56  ;;  %v7781_v5 = vmul.f32 %v7098_v55, %v9254_v38  ;;  %v7786_v32 = vmul.f32 %v7101_v58, %v9255_v44  ;;  %v9258_v4 = vld [vmem:[#allocation116_spill] sm:$0xff]  ;;  %v9261_v56 = vld [vmem:[#allocation42_spill] sm:$0xff]  ;;  %5323 = vpow2.f32 %v2491_v27  ;;  %v2313_v29 = vpop.xlane.xlu0 %2312 }
 0x451   : > { %v7791_v9 = vmul.f32 %v7098_v55, %v9256_v59  ;;  %v7795_v43 = vadd.f32 %v9258_v4, %v9257_v47  ;;  %v2380_v38 = vsub.f32 %v9261_v56, %v2310_v18  ;;  %v7802_v51 = vmul.f32 %v7101_v58, %v9262_v12 }
 0x452   : > { %v9263_v52 = vmax.f32 %v7462_v11, 0.0  ;;  %v9264_v59 = vmax.f32 %v7478_v19, 0.0  ;;  %v9265_v50 = vmax.f32 %v7507_v60, 0.0  ;;  %5325 = vrcp.f32 %v7776_v48  ;;  %v7825_v19 = vpop.xlane.xlu1 %2531 }
 0x453   : > { %9259 = vst [vmem:[#allocation97_spill] sm:$0xff] %v7795_v43  ;;  %v2493_v12 = vmul.f32 1.442695, %v2379_v41  ;;  %v2495_v27 = vmul.f32 1.442695, %v2380_v38  ;;  %v9266_v11 = vmax.f32 %v7510_v20, 0.0  ;;  %v2649_v4 = vmul.f32 %v5318_v17, %v2523_v28 }
 0x454   : > { %v7807_v44 = vmul.f32 %v7098_v55, %v9263_v52  ;;  %v7812_v47 = vmul.f32 %v7101_v58, %v9264_v59  ;;  %v7817_v56 = vmul.f32 %v7098_v55, %v9265_v50  ;;  %v9267_v52 = vmax.f32 %v7513_v33, 0.0  ;;  %v9269_v41 = vld [vmem:[#allocation119_spill] sm:$0xff]  ;;  %v9271_v20 = vld [vmem:[#allocation45_spill] sm:$0xff] }
 0x455   : > { %v7823_v18 = vmul.f32 %v7101_v58, %v9266_v11  ;;  %v7834_v59 = vadd.f32 %v7488_v53, %v7483_v13  ;;  %v7838_v38 = vadd.f32 %v9269_v41, %v7493_v10  ;;  %5327 = vpow2.f32 %v2493_v12  ;;  %v9272_v28 = vld [vmem:[#allocation49_spill] sm:$0xff]  ;;  %v5320_v12 = vpop.eup %5319  ;;  %v7863_v41 = vpop.xlane.xlu0 %2534 }
 0x456   : > { %v7830_v60 = vmul.f32 %v7098_v55, %v9267_v52  ;;  %v2381_v50 = vsub.f32 %v9271_v20, %v2313_v29  ;;  %v2382_v11 = vsub.f32 %v9272_v28, %v2313_v29  ;;  %v9273_v43 = vmax.f32 %v7531_v1, 0.0  ;;  %v9279_v28 = vld [vmem:[#allocation123_spill] sm:$0xff] }
 0x457   : > { %9268 = vst [vmem:[#allocation104_spill] sm:$0xff] %v7834_v59  ;;  %9270 = vst [vmem:[#allocation107_spill] sm:$0xff] %v7838_v38  ;;  %v2681_v52 = vsub.f32 2.0, %v2649_v4  ;;  %5329 = vpow2.f32 %v2495_v27  ;;  %v9274_v2 = vmax.f32 %v7534_v36, 0.0  ;;  %v9275_v13 = vmax.f32 %v7537_v8, 0.0  ;;  %v9277_v8 = vld [vmem:[#allocation122_spill] sm:$0xff] }
 0x458   : > { %v7845_v33 = vmul.f32 %v7101_v58, %v9273_v43  ;;  %5331 = vrcp.f32 %v7825_v19  ;;  %v2497_v29 = vmul.f32 1.442695, %v2381_v50  ;;  %v2499_v1 = vmul.f32 1.442695, %v2382_v11  ;;  %v9282_v50 = vld [vmem:[#allocation52_spill] sm:$0xff] }
 0x459   : > { %v7850_v53 = vmul.f32 %v7098_v55, %v9274_v2  ;;  %v7855_v10 = vmul.f32 %v7101_v58, %v9275_v13  ;;  %v9276_v43 = vmax.f32 %v7555_v21, 0.0  ;;  %v2713_v27 = vmul.f32 %v5318_v17, %v2681_v52  ;;  %v2316_v2 = vpop.xlane.xlu1 %2315  ;;  %v9280_v13 = vld [vmem:[#allocation124_spill] sm:$0xff]  ;;  %v9283_v21 = vld [vmem:[#allocation53_spill] sm:$0xff] }
 0x45a   : > { %v2650_v36 = vmul.f32 %v5320_v12, %v2526_v45  ;;  %v7867_v20 = vadd.f32 %v9277_v8, %v7542_v15  ;;  %v7871_v38 = vadd.f32 %v9280_v13, %v9279_v28  ;;  %5333 = vpow2.f32 %v2497_v29  ;;  %v7890_v28 = vpop.eup %5321 }
 0x45b   : > { %v7861_v4 = vmul.f32 %v7098_v55, %v9276_v43  ;;  %v2383_v11 = vsub.f32 %v9282_v50, %v2316_v2  ;;  %v2384_v59 = vsub.f32 %v9283_v21, %v2316_v2  ;;  %v9284_v43 = vmax.f32 %v7583_v39, 0.0  ;;  %9287 = vst [vmem:[#allocation113_spill] sm:$0xff] %v7890_v28 }
 0x45c   : > { %9278 = vst [vmem:[#allocation102_spill] sm:$0xff] %v7867_v20  ;;  %9281 = vst [vmem:[#allocation103_spill] sm:$0xff] %v7871_v38  ;;  %v2682_v17 = vsub.f32 2.0, %v2650_v36  ;;  %5335 = vpow2.f32 %v2499_v1  ;;  %v9285_v52 = vmax.f32 %v7610_v62, 0.0  ;;  %v9286_v8 = vmax.f32 %v7613_v35, 0.0  ;;  %v7898_v62 = vpop.eup %5323  ;;  %v9290_v36 = vld [vmem:[#allocation35_spill] sm:$0xff] }
 0x45d   : > { %v7878_v45 = vmul.f32 %v7101_v58, %v9284_v43  ;;  %5337 = vrcp.f32 %v7863_v41  ;;  %v2501_v39 = vmul.f32 1.442695, %v2383_v11  ;;  %v2503_v2 = vmul.f32 1.442695, %v2384_v59  ;;  %9289 = vst [vmem:[#allocation114_spill] sm:$0xff] %v7898_v62  ;;  %v7903_v21 = vpop.xlane.xlu1 %2537  ;;  %v2319_v43 = vpop.xlane.xlu0 %2318  ;;  %v9294_v38 = vld [vmem:[#allocation57_spill] sm:$0xff] }
 0x45e   : > { %v7883_v15 = vmul.f32 %v7098_v55, %v9285_v52  ;;  %v7888_v29 = vmul.f32 %v7101_v58, %v9286_v8  ;;  %v9288_v13 = vmax.f32 %v7616_v30, 0.0  ;;  %v7901_v50 = vmul.f32 %v9290_v36, %v2713_v27  ;;  %v9291_v52 = vld [vmem:[#allocation36_spill] sm:$0xff]  ;;  %v5326_v59 = vpop.eup %5325 }
 0x45f   : > { %v2714_v35 = vmul.f32 %v5320_v12, %v2682_v17  ;;  %v2746_v8 = vmul.f32 %v9291_v52, %v2713_v27  ;;  %v7908_v11 = vadd.f32 %v7643_v61, %v7598_v49  ;;  %5339 = vpow2.f32 %v2501_v39  ;;  %v9293_v30 = vld [vmem:[#allocation56_spill] sm:$0xff]  ;;  %v7917_v52 = vpop.eup %5327 }
 0x460   : > { %v7896_v1 = vmul.f32 %v7098_v55, %v9288_v13  ;;  %v2385_v13 = vsub.f32 %v9293_v30, %v2319_v43  ;;  %v2386_v20 = vsub.f32 %v9294_v38, %v2319_v43  ;;  %v2593_v36 = vadd.f32 %v7898_v62, %v7890_v28  ;;  %9297 = vst [vmem:[#allocation108_spill] sm:$0xff] %v7917_v52 }
 0x461   : > { %9292 = vst [vmem:[#allocation110_spill] sm:$0xff] %v7908_v11  ;;  %v2747_v12 = vmul.f32 %v9295_v46, %v2714_v35  ;;  %v2651_v17 = vmul.f32 %v5326_v59, %v7776_v48  ;;  %5341 = vpow2.f32 %v2503_v2  ;;  %v2748_v27 = vmul.f32 %v9296_v0, %v2714_v35  ;;  %v7925_v43 = vpop.eup %5329  ;;  %v7930_v2 = vpop.xlane.xlu0 %2540 }
 0x462   : > { %5343 = vrcp.f32 %v7903_v21  ;;  %v2505_v49 = vmul.f32 1.442695, %v2385_v13  ;;  %v2507_v61 = vmul.f32 1.442695, %v2386_v20  ;;  %2594 = vadd.xlane.f32.xlu0 %v2593_v36  ;;  %v9298_v39 = vmax.f32 %v7630_v37, 0.0  ;;  %9299 = vst [vmem:[#allocation109_spill] sm:$0xff] %v7925_v43  ;;  %v2322_v0 = vpop.xlane.xlu1 %2321  ;;  %v5332_v30 = vpop.eup %5331 }
 0x463   : > { %v7928_v46 = vpack.c.bf16 %v2747_v12, %v7901_v50  ;;  %v2683_v48 = vsub.f32 2.0, %v2651_v17  ;;  %v7932_v35 = vpack.c.bf16 %v2748_v27, %v2746_v8  ;;  %v7936_v20 = vadd.f32 %v7593_v7, %v7588_v63  ;;  %v9303_v37 = vld [vmem:[#allocation60_spill] sm:$0xff]  ;;  %v9304_v36 = vld [vmem:[#allocation61_spill] sm:$0xff] }
 0x464   : > { %v7923_v38 = vmul.f32 %v7101_v58, %v9298_v39  ;;  %5345 = vpow2.f32 %v2505_v49  ;;  %v2387_v13 = vsub.f32 %v9303_v37, %v2322_v0  ;;  %v2388_v39 = vsub.f32 %v9304_v36, %v2322_v0  ;;  %v7945_v54 = vpop.eup %5333 }
 0x465   : > { %9300 = vst [vmem:[#allocation115_spill] sm:$0xff] %v7928_v46  ;;  %9301 = vst [vmem:[#allocation116_spill] sm:$0xff] %v7932_v35  ;;  %v2596_v28 = vadd.f32 %v7925_v43, %v7917_v52  ;;  %v2873_v17 = vunpack.c.l.bf16 %v7928_v46  ;;  %v2875_v62 = vunpack.c.h.bf16 %v7928_v46  ;;  %v2715_v11 = vmul.f32 %v5326_v59, %v2683_v48  ;;  %v2325_v46 = vpop.xlane.xlu0 %2324  ;;  %v9307_v48 = vld [vmem:[#allocation64_spill] sm:$0xff] }
 0x466   : > { %9302 = vst [vmem:[#allocation41_spill] sm:$0xff] %v7936_v20  ;;  %v2652_v40 = vmul.f32 %v5332_v30, %v7825_v19  ;;  %9305 = vst [vmem:[#allocation42_spill] sm:$0xff] %v7945_v54  ;;  %5347 = vpow2.f32 %v2507_v61  ;;  %v2509_v7 = vmul.f32 1.442695, %v2387_v13  ;;  %v2511_v63 = vmul.f32 1.442695, %v2388_v39  ;;  %v7948_v37 = vpop.eup %5335  ;;  %v7951_v52 = vpop.xlane.xlu1 %2543 }
 0x467   : > { %2597 = vadd.xlane.f32.xlu1 %v2596_v28  ;;  %v2874_v49 = vunpack.c.l.bf16 %v7932_v35  ;;  %9306 = vst [vmem:[#allocation119_spill] sm:$0xff] %v7948_v37  ;;  %v2939_v0 = vsub.f32 %v2747_v12, %v2875_v62  ;;  %5349 = vrcp.f32 %v7930_v2  ;;  %v2876_v59 = vunpack.c.h.bf16 %v7932_v35  ;;  %v5338_v19 = vpop.eup %5337  ;;  %v9308_v13 = vld [vmem:[#allocation65_spill] sm:$0xff] }
 0x468   : > { %v2684_v36 = vsub.f32 2.0, %v2652_v40  ;;  %5351 = vpow2.f32 %v2509_v7  ;;  %v2389_v61 = vsub.f32 %v9307_v48, %v2325_v46  ;;  %v2390_v39 = vsub.f32 %v9308_v13, %v2325_v46 }
 0x469   : > { %v2599_v28 = vadd.f32 %v7948_v37, %v7945_v54  ;;  %v2653_v62 = vmul.f32 %v5338_v19, %v7863_v41  ;;  %5353 = vpow2.f32 %v2511_v63  ;;  %v2938_v40 = vsub.f32 %v2746_v8, %v2874_v49  ;;  %v7959_v12 = vpop.eup %5339  ;;  %v7964_v46 = vpop.xlane.xlu0 %2546  ;;  %v9311_v63 = vld [vmem:[#allocation51_spill] sm:$0xff]  ;;  %v9312_v37 = vld [vmem:[#allocation68_spill] sm:$0xff] }
 0x46a   : > { %v2716_v43 = vmul.f32 %v5332_v30, %v2684_v36  ;;  %9309 = vst [vmem:[#allocation45_spill] sm:$0xff] %v7959_v12  ;;  %5355 = vrcp.f32 %v7951_v52  ;;  %v2513_v20 = vmul.f32 1.442695, %v2389_v61  ;;  %v2515_v35 = vmul.f32 1.442695, %v2390_v39  ;;  %v2328_v13 = vpop.xlane.xlu1 %2327  ;;  %v9310_v36 = vld [vmem:[#allocation44_spill] sm:$0xff] }
 0x46b   : > { %2600 = vadd.xlane.f32.xlu0 %v2599_v28  ;;  %v2940_v7 = vsub.f32 %v2748_v27, %v2876_v59  ;;  %v7962_v6 = vpop.eup %5341  ;;  %v2685_v48 = vsub.f32 2.0, %v2653_v62  ;;  %v2937_v30 = vsub.f32 %v7901_v50, %v2873_v17  ;;  %v2750_v41 = vmul.f32 %v9310_v36, %v2715_v11  ;;  %v9313_v39 = vld [vmem:[#allocation69_spill] sm:$0xff] }
 0x46c   : > { %v2752_v8 = vmul.f32 %v9311_v63, %v2716_v43  ;;  %v5344_v49 = vpop.eup %5343  ;;  %5357 = vpow2.f32 %v2513_v20  ;;  %v2391_v61 = vsub.f32 %v9312_v37, %v2328_v13  ;;  %v2392_v28 = vsub.f32 %v9313_v39, %v2328_v13  ;;  %v5414_v63 = vld [vmem:[#allocation8] ss:$8 sps:$4 sm:$0xff]  }
 0x46d   : > { %v3002_v54 = vpack.c.bf16 %v2940_v7, %v2938_v40  ;;  %v2717_v27 = vmul.f32 %v5338_v19, %v2685_v48  ;;  %v2654_v59 = vmul.f32 %v5344_v49, %v7903_v21  ;;  %5359 = vpow2.f32 %v2515_v35  ;;  %v9316_v19 = vld [vmem:[#allocation50_spill] sm:$0xff]  ;;  %v9319_v48 = vld [vmem:[#allocation43_spill] sm:$0xff] }
 0x46e   : > { %v3001_v62 = vpack.c.bf16 %v2939_v0, %v2937_v30  ;;  %v7972_v25 = vpop.eup %5345  ;;  %5361 = vrcp.f32 %v7964_v46  ;;  %v2517_v50 = vmul.f32 1.442695, %v2391_v61  ;;  %v2519_v17 = vmul.f32 1.442695, %v2392_v28  ;;  %v7977_v37 = vpop.xlane.xlu1 %2549  ;;  %v9320_v30 = vld [vmem:[#allocation55_spill] sm:$0xff] }
 0x46f   : > { %9314 = vst [vmem:[#allocation49_spill] sm:$0xff] %v7972_v25  ;;  %3225 = vmatprep.mubr.bf16.mxu1 %v3002_v54  ;;  %v2602_v20 = vadd.f32 %v7962_v6, %v7959_v12  ;;  %v2686_v40 = vsub.f32 2.0, %v2654_v59  ;;  %v7979_v7 = vpack.c.bf16 %v2752_v8, %v2750_v41  ;;  %v2751_v21 = vmul.f32 %v9316_v19, %v2716_v43  ;;  %v5415_v59 = vld [vmem:[#allocation8 + $0x14] ss:$8 sps:$4 sm:$0xff]   ;;  %v9325_v19 = vld [vmem:[#allocation54_spill] sm:$0xff] }
 0x470   : > { %3226 = vmatmul.mubr.bf16.vlgmr.msra.gmra.mrb[64].mxu1 %v3001_v62  ;;  %v9317_v35 = vmax.f32 %v7635_v57, 0.0  ;;  %v7987_v54 = vpop.eup %5347  ;;  %5363 = vpow2.f32 %v2517_v50  ;;  %v2749_v13 = vmul.f32 %v9319_v48, %v2715_v11  ;;  %v2754_v36 = vmul.f32 %v9320_v30, %v2717_v27  ;;  %v9326_v48 = vld [vmem:[#allocation58_spill] sm:$0xff] }
 0x471   : > { %9315 = vst [vmem:[#allocation122_spill] sm:$0xff] %v7979_v7  ;;  %9318 = vst [vmem:[#allocation123_spill] sm:$0xff] %v7987_v54  ;;  %2603 = vadd.xlane.f32.xlu1 %v2602_v20  ;;  %3387 = vmatpush1.bf16.msra.mxu1 %v5414_v63  ;;  %v7993_v61 = vadd.f32 %v7718_v24, %v7691_v16  ;;  %v5350_v43 = vpop.eup %5349  ;;  %v2718_v39 = vmul.f32 %v5344_v49, %v2686_v40  ;;  %5365 = vpow2.f32 %v2519_v17  ;;  %v8007_v17 = vpop.xlane.xlu0 %2552  ;;  %v9324_v20 = vld [vmem:[#allocation59_spill] sm:$0xff] }
 0x472   : > { %v7985_v0 = vmul.f32 %v7098_v55, %v9317_v35  ;;  %v2605_v57 = vadd.f32 %v7987_v54, %v7972_v25  ;;  %v2878_v28 = vunpack.c.l.bf16 %v7979_v7  ;;  %3388 = vmatprep.subr.bf16.mxu1 %v5415_v59  ;;  %v7998_v62 = vpop.eup %5351  ;;  %v2655_v11 = vmul.f32 %v5350_v43, %v7930_v2  ;;  %v5416_v25 = vld [vmem:[#allocation8 + $0x10] ss:$8 sps:$4 sm:$0xff]  }
 0x473   : > { %9321 = vst [vmem:[#allocation124_spill] sm:$0xff] %v7998_v62  ;;  %5367 = vrcp.f32 %v7977_v37  ;;  %v2880_v50 = vunpack.c.h.bf16 %v7979_v7  ;;  %v8003_v16 = vpack.c.bf16 %v2751_v21, %v2749_v13  ;;  %v8005_v24 = vpop.eup %5353  ;;  %v2756_v40 = vmul.f32 %v9324_v20, %v2718_v39 }
 0x474   : > { %9323 = vst [vmem:[#allocation53_spill] sm:$0xff] %v8005_v24  ;;  %2606 = vadd.xlane.f32.xlu0 %v2605_v57  ;;  %v2942_v49 = vsub.f32 %v2750_v41, %v2878_v28  ;;  %v2753_v35 = vmul.f32 %v9325_v19, %v2717_v27  ;;  %v2755_v30 = vmul.f32 %v9326_v48, %v2718_v39  ;;  %v5356_v63 = vpop.eup %5355  ;;  %v2687_v2 = vsub.f32 2.0, %v2655_v11  ;;  %v5417_v27 = vld [vmem:[#allocation8 + $0x24] ss:$8 sps:$4 sm:$0xff]   ;;  %v8022_v19 = vpop.xlane.xlu1 %2555 }
 0x475   : > { %9322 = vst [vmem:[#allocation52_spill] sm:$0xff] %v8003_v16  ;;  %v2944_v59 = vsub.f32 %v2752_v8, %v2880_v50  ;;  %5369 = vrcp.f32 %v8007_v17  ;;  %v2877_v7 = vunpack.c.l.bf16 %v8003_v16  ;;  %3389 = vmatpush1.bf16.msra.mxu1 %v5416_v25  ;;  %v2656_v57 = vmul.f32 %v5356_v63, %v7951_v52 }
 0x476   : > { %v2879_v41 = vunpack.c.h.bf16 %v8003_v16  ;;  %v2608_v28 = vadd.f32 %v8005_v24, %v7998_v62  ;;  %v8018_v20 = vpack.c.bf16 %v2756_v40, %v2754_v36  ;;  %3390 = vmatprep.subr.bf16.mxu1 %v5417_v27  ;;  %v8020_v39 = vpop.eup %5357  ;;  %v2719_v8 = vmul.f32 %v5350_v43, %v2687_v2  ;;  %v5418_v2 = vld [vmem:[#allocation8 + $0x20] ss:$8 sps:$4 sm:$0xff]  }
 0x477   : > { %9328 = vst [vmem:[#allocation36_spill] sm:$0xff] %v8020_v39  ;;  %v3004_v11 = vpack.c.bf16 %v2944_v59, %v2942_v49  ;;  %v2941_v50 = vsub.f32 %v2749_v13, %v2877_v7  ;;  %v8024_v48 = vpack.c.bf16 %v2755_v30, %v2753_v35  ;;  %v8026_v25 = vpop.eup %5359  ;;  %v2688_v52 = vsub.f32 2.0, %v2656_v57 }
 0x478   : > { %9327 = vst [vmem:[#allocation35_spill] sm:$0xff] %v8018_v20  ;;  %9330 = vst [vmem:[#allocation57_spill] sm:$0xff] %v8026_v25  ;;  %v2943_v16 = vsub.f32 %v2751_v21, %v2879_v41  ;;  %2609 = vadd.xlane.f32.xlu1 %v2608_v28  ;;  %5371 = vrcp.f32 %v8022_v19  ;;  %v2882_v62 = vunpack.c.l.bf16 %v8018_v20  ;;  %v5362_v24 = vpop.eup %5361  ;;  %v2611_v43 = vadd.f32 %v8026_v25, %v8020_v39  ;;  %v5419_v28 = vld [vmem:[#allocation8 + $0x34] ss:$8 sps:$4 sm:$0xff]  }
 0x479   : > { %9329 = vst [vmem:[#allocation56_spill] sm:$0xff] %v8024_v48  ;;  %3235 = vmatprep.mubr.bf16.mxu1 %v3004_v11  ;;  %v2884_v7 = vunpack.c.h.bf16 %v8018_v20  ;;  %v2881_v13 = vunpack.c.l.bf16 %v8024_v48  ;;  %v2883_v49 = vunpack.c.h.bf16 %v8024_v48  ;;  %3391 = vmatpush1.bf16.msra.mxu1 %v5418_v2  ;;  %v2720_v59 = vmul.f32 %v5356_v63, %v2688_v52  ;;  %v9331_v20 = vld [vmem:[#allocation63_spill] sm:$0xff]  ;;  %v8041_v2 = vpop.xlane.xlu0 %2558 }
 0x47a   : > { %v2657_v21 = vmul.f32 %v5362_v24, %v7964_v46  ;;  %v3003_v57 = vpack.c.bf16 %v2943_v16, %v2941_v50  ;;  %v2946_v41 = vsub.f32 %v2754_v36, %v2882_v62  ;;  %3392 = vmatprep.subr.bf16.mxu1 %v5419_v28  ;;  %v8036_v27 = vpop.eup %5363  ;;  %2612 = vadd.xlane.f32.xlu0 %v2611_v43  ;;  %v9332_v63 = vld [vmem:[#allocation67_spill] sm:$0xff]  ;;  %v9333_v16 = vld [vmem:[#allocation62_spill] sm:$0xff]  ;;  %5373 = vrcp.f32 %v8041_v2 }
 0x47b   : > { %v2948_v11 = vsub.f32 %v2756_v40, %v2884_v7  ;;  %v2945_v39 = vsub.f32 %v2753_v35, %v2881_v13  ;;  %v2947_v25 = vsub.f32 %v2755_v30, %v2883_v49  ;;  %v2758_v54 = vmul.f32 %v9331_v20, %v2719_v8  ;;  %v8039_v12 = vpop.eup %5365  ;;  %v9334_v62 = vld [vmem:[#allocation66_spill] sm:$0xff]  ;;  %v5420_v30 = vld [vmem:[#allocation8 + $0x30] ss:$8 sps:$4 sm:$0xff]  }
 0x47c   : > { %v2689_v48 = vsub.f32 2.0, %v2657_v21  ;;  %3236 = vmatmul.mubr.bf16.gmra.mrb[68].mxu1 %v3003_v57  ;;  %v2760_v46 = vmul.f32 %v9332_v63, %v2720_v59  ;;  %v2757_v36 = vmul.f32 %v9333_v16, %v2719_v8  ;;  %v2759_v50 = vmul.f32 %v9334_v62, %v2720_v59  ;;  %v5421_v8 = vld [vmem:[#allocation8 + $0x44] ss:$8 sps:$4 sm:$0xff]   ;;  %v8055_v21 = vpop.xlane.xlu1 %2561  ;;  %v5422_v16 = vld [vmem:[#allocation8 + $0x40] ss:$8 sps:$4 sm:$0xff]  }
 0x47d   : > { %v5368_v52 = vpop.eup %5367  ;;  %v3006_v28 = vpack.c.bf16 %v2948_v11, %v2946_v41  ;;  %v3005_v40 = vpack.c.bf16 %v2947_v25, %v2945_v39  ;;  %v2614_v35 = vadd.f32 %v8039_v12, %v8036_v27  ;;  %3393 = vmatpush1.bf16.msra.mxu1 %v5420_v30  ;;  %v9337_v59 = vld [vmem:[#allocation33_spill] sm:$0xff]  ;;  %v8059_v39 = vadd.f32 %v7786_v32, %v7781_v5  ;;  %v9338_v25 = vld [vmem:[#allocation130_spill] sm:$0xff]  ;;  %v5423_v30 = vld [vmem:[#allocation8 + $0x54] ss:$8 sps:$4 sm:$0xff]  }
 0x47e   : > { %v2721_v20 = vmul.f32 %v5362_v24, %v2689_v48  ;;  %v2658_v43 = vmul.f32 %v5368_v52, %v7977_v37  ;;  %v8050_v7 = vpack.c.bf16 %v2760_v46, %v2758_v54  ;;  %v8052_v13 = vpack.c.bf16 %v2759_v50, %v2757_v36  ;;  %3394 = vmatprep.subr.bf16.mxu1 %v5421_v8  ;;  %v9341_v8 = vld [vmem:[#allocation47_spill] sm:$0xff] }
 0x47f   : > { %v5370_v49 = vpop.eup %5369  ;;  %3245 = vmatprep.mubr.bf16.mxu1 %v3006_v28  ;;  %3656 = vadd.xlane.f32.xlu0 %v9337_v59  ;;  %v8063_v24 = vadd.f32 %v7686_v42, %v9338_v25  ;;  %v8067_v37 = vadd.f32 %v7812_v47, %v7807_v44  ;;  %5375 = vrcp.f32 %v8055_v21  ;;  %v9339_v42 = vld [vmem:[#allocation71_spill] sm:$0xff] }
 0x480   : > { %9335 = vst [vmem:[#allocation39_spill] sm:$0xff] %v8050_v7  ;;  %9336 = vst [vmem:[#allocation40_spill] sm:$0xff] %v8052_v13  ;;  %v2690_v48 = vsub.f32 2.0, %v2658_v43  ;;  %v2659_v57 = vmul.f32 %v5370_v49, %v8007_v17  ;;  %2615 = vadd.xlane.f32.xlu1 %v2614_v35  ;;  %v2886_v41 = vunpack.c.l.bf16 %v8050_v7  ;;  %v2888_v11 = vunpack.c.h.bf16 %v8050_v7  ;;  %v9340_v17 = vld [vmem:[#allocation70_spill] sm:$0xff] }
 0x481   : > { %v2885_v5 = vunpack.c.l.bf16 %v8052_v13  ;;  %v2887_v32 = vunpack.c.h.bf16 %v8052_v13  ;;  %v2762_v63 = vmul.f32 %v9339_v42, %v2721_v20  ;;  %3395 = vmatpush1.bf16.msra.mxu1 %v5422_v16  ;;  %v2761_v35 = vmul.f32 %v9340_v17, %v2721_v20  ;;  %v9342_v42 = vld [vmem:[#allocation80_spill] sm:$0xff]  ;;  %v8080_v16 = vpop.xlane.xlu0 %2564 }
 0x482   : > { %v5372_v44 = vpop.eup %5371  ;;  %v2722_v47 = vmul.f32 %v5368_v52, %v2690_v48  ;;  %v2691_v62 = vsub.f32 2.0, %v2659_v57  ;;  %v2950_v28 = vsub.f32 %v2758_v54, %v2886_v41  ;;  %3396 = vmatprep.subr.bf16.mxu1 %v5423_v30  ;;  %v2952_v59 = vsub.f32 %v2760_v46, %v2888_v11  ;;  %v9343_v52 = vld [vmem:[#allocation73_spill] sm:$0xff]  ;;  %v9344_v54 = vld [vmem:[#allocation72_spill] sm:$0xff] }
 0x483   : > { %v2660_v43 = vmul.f32 %v5372_v44, %v8022_v19  ;;  %3662 = vadd.xlane.f32.xlu0 %v9341_v8  ;;  %v2949_v25 = vsub.f32 %v2757_v36, %v2885_v5  ;;  %v2951_v7 = vsub.f32 %v2759_v50, %v2887_v32  ;;  %5377 = vrcp.f32 %v8080_v16  ;;  %v5424_v17 = vld [vmem:[#allocation8 + $0x50] ss:$8 sps:$4 sm:$0xff]   ;;  %v5425_v5 = vld [vmem:[#allocation8 + $0x64] ss:$8 sps:$4 sm:$0xff]  }
 0x484   : > { %v2723_v13 = vmul.f32 %v5370_v49, %v2691_v62  ;;  %3246 = vmatmul.mubr.bf16.gmra.mrb[72].mxu1 %v3005_v40  ;;  %3659 = vadd.xlane.f32.xlu1 %v9342_v42  ;;  %v2764_v48 = vmul.f32 %v9343_v52, %v2722_v47  ;;  %v2763_v57 = vmul.f32 %v9344_v54, %v2722_v47  ;;  %v9345_v50 = vld [vmem:[#allocation75_spill] sm:$0xff]  ;;  %v9346_v49 = vld [vmem:[#allocation74_spill] sm:$0xff]  ;;  %v5374_v32 = vpop.eup %5373  ;;  %v9347_v62 = vld [vmem:[#allocation84_spill] sm:$0xff] }
 0x485   : > { %v2692_v20 = vsub.f32 2.0, %v2660_v43  ;;  %v3008_v41 = vpack.c.bf16 %v2952_v59, %v2950_v28  ;;  %v3007_v19 = vpack.c.bf16 %v2951_v7, %v2949_v25  ;;  %3397 = vmatpush1.bf16.msra.mxu1 %v5424_v17  ;;  %v8094_v28 = vpop.xlane.xlu1 %2567  ;;  %v8098_v7 = vadd.f32 %v7770_v34, %v7723_v14  ;;  %v9348_v43 = vld [vmem:[#allocation85_spill] sm:$0xff]  ;;  %v9350_v42 = vld [vmem:[#allocation76_spill] sm:$0xff] }
 0x486   : > { %v8085_v46 = vpack.c.bf16 %v2764_v48, %v2762_v63  ;;  %v8087_v36 = vpack.c.bf16 %v2763_v57, %v2761_v35  ;;  %v2766_v40 = vmul.f32 %v9345_v50, %v2723_v13  ;;  %v8091_v11 = vmul.f32 %v9346_v49, %v2723_v13  ;;  %3398 = vmatprep.subr.bf16.mxu1 %v5425_v5  ;;  %v9349_v14 = vld [vmem:[#allocation77_spill] sm:$0xff]  ;;  %v9351_v49 = vld [vmem:[#allocation86_spill] sm:$0xff] }
 0x487   : > { %v2724_v47 = vmul.f32 %v5372_v44, %v2692_v20  ;;  %3255 = vmatprep.mubr.bf16.mxu1 %v3008_v41  ;;  %3668 = vadd.xlane.f32.xlu0 %v9347_v62  ;;  %v8102_v30 = vadd.f32 %v7845_v33, %v7830_v60  ;;  %v2661_v13 = vmul.f32 %v5374_v32, %v8041_v2  ;;  %5379 = vrcp.f32 %v8094_v28  ;;  %v5426_v60 = vld [vmem:[#allocation8 + $0x60] ss:$8 sps:$4 sm:$0xff]   ;;  %v5427_v41 = vld [vmem:[#allocation8 + $0x74] ss:$8 sps:$4 sm:$0xff]  }
 0x488   : > { %3665 = vadd.xlane.f32.xlu1 %v9348_v43  ;;  %v2890_v44 = vunpack.c.l.bf16 %v8085_v46  ;;  %v2892_v8 = vunpack.c.h.bf16 %v8085_v46  ;;  %v2889_v59 = vunpack.c.l.bf16 %v8087_v36  ;;  %v2891_v25 = vunpack.c.h.bf16 %v8087_v36 }
 0x489   : > { %v2768_v34 = vmul.f32 %v9349_v14, %v2724_v47  ;;  %v8113_v52 = vmul.f32 %v9350_v42, %v2724_v47  ;;  %3399 = vmatpush1.bf16.msra.mxu1 %v5426_v60  ;;  %v5376_v33 = vpop.eup %5375  ;;  %v2693_v2 = vsub.f32 2.0, %v2661_v13  ;;  %v8117_v17 = vadd.f32 %v7802_v51, %v7791_v9  ;;  %v9352_v14 = vld [vmem:[#allocation87_spill] sm:$0xff] }
 0x48a   : > { %v2954_v54 = vsub.f32 %v2762_v63, %v2890_v44  ;;  %v2956_v20 = vsub.f32 %v2764_v48, %v2892_v8  ;;  %3400 = vmatprep.subr.bf16.mxu1 %v5427_v41  ;;  %v2662_v50 = vmul.f32 %v5376_v33, %v8055_v21  ;;  %v2953_v5 = vsub.f32 %v2761_v35, %v2889_v59  ;;  %v8124_v63 = vpop.xlane.xlu0 %2570 }
 0x48b   : > { %3674 = vadd.xlane.f32.xlu0 %v9351_v49  ;;  %v2955_v62 = vsub.f32 %v2763_v57, %v2891_v25  ;;  %v8121_v47 = vpack.c.bf16 %v2768_v34, %v2766_v40  ;;  %v2725_v43 = vmul.f32 %v5374_v32, %v2693_v2  ;;  %v8128_v13 = vpack.c.bf16 %v8113_v52, %v8091_v11  ;;  %v5428_v57 = vld [vmem:[#allocation8 + $0x70] ss:$8 sps:$4 sm:$0xff]   ;;  %v5429_v25 = vld [vmem:[#allocation8 + $0x84] ss:$8 sps:$4 sm:$0xff]  }
 0x48c   : > { %3256 = vmatmul.mubr.bf16.gmra.mrb[76].mxu1 %v3007_v19  ;;  %3671 = vadd.xlane.f32.xlu1 %v9352_v14  ;;  %v3010_v48 = vpack.c.bf16 %v2956_v20, %v2954_v54  ;;  %v2694_v9 = vsub.f32 2.0, %v2662_v50  ;;  %5381 = vrcp.f32 %v8124_v63  ;;  %v9353_v21 = vmax.f32 %v7676_v26, 0.0  ;;  %v9355_v2 = vld [vmem:[#allocation88_spill] sm:$0xff]  ;;  %v8141_v26 = vpop.xlane.xlu1 %2573  ;;  %v9357_v49 = vld [vmem:[#allocation78_spill] sm:$0xff]  ;;  %v9359_v14 = vld [vmem:[#allocation17_spill] sm:$0xff] }
 0x48d   : > { %v2894_v51 = vunpack.c.l.bf16 %v8121_v47  ;;  %3401 = vmatpush1.bf16.msra.mxu1 %v5428_v57  ;;  %v3009_v19 = vpack.c.bf16 %v2955_v62, %v2953_v5  ;;  %v2896_v32 = vunpack.c.h.bf16 %v8121_v47  ;;  %v2893_v44 = vunpack.c.l.bf16 %v8128_v13  ;;  %v5378_v42 = vpop.eup %5377  ;;  %v9358_v5 = vld [vmem:[#allocation18_spill] sm:$0xff] }
 0x48e   : > { %v3865_v35 = vmul.f32 %v7098_v55, %v9353_v21  ;;  %3265 = vmatprep.mubr.bf16.mxu1 %v3010_v48  ;;  %v9354_v8 = vmax.f32 %v7679_v3, 0.0  ;;  %3402 = vmatprep.subr.bf16.mxu1 %v5429_v25  ;;  %v2726_v60 = vmul.f32 %v5376_v33, %v2694_v9  ;;  %v2895_v54 = vunpack.c.h.bf16 %v8128_v13  ;;  %v9356_v3 = vld [vmem:[#allocation89_spill] sm:$0xff] }
 0x48f   : > { %3680 = vadd.xlane.f32.xlu0 %v9355_v2  ;;  %v2958_v55 = vsub.f32 %v2766_v40, %v2894_v51  ;;  %v8146_v20 = vadd.f32 %v7878_v45, %v7861_v4  ;;  %v2663_v41 = vmul.f32 %v5378_v42, %v8080_v16  ;;  %5383 = vrcp.f32 %v8141_v26  ;;  %v9360_v40 = vld [vmem:[#allocation79_spill] sm:$0xff]  ;;  %v5430_v51 = vld [vmem:[#allocation8 + $0x80] ss:$8 sps:$4 sm:$0xff]  }
 0x490   : > { %v3866_v59 = vmul.f32 %v7101_v58, %v9354_v8  ;;  %3677 = vadd.xlane.f32.xlu1 %v9356_v3  ;;  %v2960_v50 = vsub.f32 %v2768_v34, %v2896_v32  ;;  %v2770_v33 = vmul.f32 %v9357_v49, %v2725_v43  ;;  %v2772_v62 = vmul.f32 %v9358_v5, %v2726_v60  ;;  %v5431_v34 = vld [vmem:[#allocation8 + $0x94] ss:$8 sps:$4 sm:$0xff]   ;;  %v9361_v8 = vld [vmem:[#allocation94_spill] sm:$0xff] }
 0x491   : > { %v8154_v48 = vmul.f32 %v9359_v14, %v2725_v43  ;;  %v8157_v9 = vmul.f32 %v9360_v40, %v2726_v60  ;;  %3403 = vmatpush1.bf16.msra.mxu1 %v5430_v51  ;;  %v8161_v4 = vadd.f32 %v7823_v18, %v7817_v56  ;;  %v5380_v45 = vpop.eup %5379  ;;  %v2695_v16 = vsub.f32 2.0, %v2663_v41  ;;  %v9365_v14 = vld [vmem:[#allocation100_spill] sm:$0xff]  ;;  %v9367_v51 = vld [vmem:[#allocation21_spill] sm:$0xff] }
 0x492   : > { %v3012_v21 = vpack.c.bf16 %v2960_v50, %v2958_v55  ;;  %3404 = vmatprep.subr.bf16.mxu1 %v5431_v34  ;;  %v8165_v57 = vadd.f32 %v7923_v38, %v7896_v1  ;;  %v8169_v43 = vadd.f32 %v7855_v10, %v7850_v53  ;;  %v2664_v32 = vmul.f32 %v5380_v45, %v8094_v28  ;;  %v9363_v38 = vld [vmem:[#allocation95_spill] sm:$0xff]  ;;  %v8183_v53 = vpop.xlane.xlu0 %2576 }
 0x493   : > { %3686 = vadd.xlane.f32.xlu0 %v9361_v8  ;;  %v8173_v25 = vpack.c.bf16 %v2772_v62, %v2770_v33  ;;  %v8177_v56 = vpack.c.bf16 %v8157_v9, %v8154_v48  ;;  %v9362_v18 = vmax.f32 %v7638_v31, 0.0  ;;  %v2727_v1 = vmul.f32 %v5378_v42, %v2695_v16  ;;  %v5432_v42 = vld [vmem:[#allocation8 + $0x90] ss:$8 sps:$4 sm:$0xff]   ;;  %v5435_v34 = vld [vmem:[#allocation8 + $0xb4] ss:$8 sps:$4 sm:$0xff]   ;;  %v9369_v8 = vld [vmem:[#allocation105_spill] sm:$0xff] }
 0x494   : > { %3266 = vmatmul.mubr.bf16.gmra.mrb[80].mxu1 %v3009_v19  ;;  %3683 = vadd.xlane.f32.xlu1 %v9363_v38  ;;  %v8185_v10 = vadd.f32 %v3866_v59, %v3865_v35  ;;  %v8189_v28 = vadd.f32 %v7888_v29, %v7883_v15  ;;  %v2696_v2 = vsub.f32 2.0, %v2664_v32  ;;  %5385 = vrcp.f32 %v8183_v53  ;;  %v5433_v35 = vld [vmem:[#allocation8 + $0xa4] ss:$8 sps:$4 sm:$0xff]   ;;  %v9364_v15 = vld [vmem:[#allocation99_spill] sm:$0xff]  ;;  %v8197_v29 = vpop.xlane.xlu1 %2579 }
 0x495   : > { %v3864_v60 = vmul.f32 %v7101_v58, %v9362_v18  ;;  %3275 = vmatprep.mubr.bf16.mxu1 %v3012_v21  ;;  %v2898_v31 = vunpack.c.l.bf16 %v8173_v25  ;;  %v2900_v58 = vunpack.c.h.bf16 %v8173_v25  ;;  %3405 = vmatpush1.bf16.msra.mxu1 %v5432_v42  ;;  %v2957_v19 = vsub.f32 %v8091_v11, %v2893_v44  ;;  %v9368_v21 = vld [vmem:[#allocation20_spill] sm:$0xff] }
 0x496   : > { %v2959_v55 = vsub.f32 %v8113_v52, %v2895_v54  ;;  %3406 = vmatprep.subr.bf16.mxu1 %v5433_v35  ;;  %v5382_v59 = vpop.eup %5381  ;;  %v2728_v41 = vmul.f32 %v5380_v45, %v2696_v2  ;;  %5387 = vrcp.f32 %v8197_v29  ;;  %v2897_v11 = vunpack.c.l.bf16 %v8177_v56  ;;  %v9366_v54 = vld [vmem:[#allocation34_spill] sm:$0xff] }
 0x497   : > { %3692 = vadd.xlane.f32.xlu0 %v9364_v15  ;;  %v2962_v3 = vsub.f32 %v2770_v33, %v2898_v31  ;;  %v2964_v50 = vsub.f32 %v2772_v62, %v2900_v58  ;;  %v8200_v49 = vadd.f32 %v3864_v60, %v7985_v0  ;;  %v2665_v5 = vmul.f32 %v5382_v59, %v8124_v63  ;;  %v5434_v33 = vld [vmem:[#allocation8 + $0xa0] ss:$8 sps:$4 sm:$0xff]   ;;  %v9370_v60 = vld [vmem:[#allocation19_spill] sm:$0xff]  ;;  %v8218_v58 = vpop.xlane.xlu0 %2582  ;;  %v5437_v15 = vld [vmem:[#allocation8 + $0xc4] ss:$8 sps:$4 sm:$0xff]  }
 0x498   : > { %3689 = vadd.xlane.f32.xlu1 %v9365_v14  ;;  %v2899_v52 = vunpack.c.h.bf16 %v8177_v56  ;;  %v2774_v40 = vmul.f32 %v9366_v54, %v2727_v1  ;;  %v2776_v45 = vmul.f32 %v9367_v51, %v2728_v41  ;;  %v3011_v16 = vpack.c.bf16 %v2959_v55, %v2957_v19  ;;  %v9371_v31 = vld [vmem:[#allocation106_spill] sm:$0xff]  ;;  %v9374_v51 = vld [vmem:[#allocation23_spill] sm:$0xff] }
 0x499   : > { %v3014_v44 = vpack.c.bf16 %v2964_v50, %v2962_v3  ;;  %3407 = vmatpush1.bf16.msra.mxu1 %v5434_v33  ;;  %v5384_v62 = vpop.eup %5383  ;;  %v2697_v0 = vsub.f32 2.0, %v2665_v5  ;;  %v8210_v63 = vmul.f32 %v9368_v21, %v2728_v41  ;;  %v2773_v38 = vmul.f32 %v9370_v60, %v2727_v1  ;;  %v5436_v41 = vld [vmem:[#allocation8 + $0xb0] ss:$8 sps:$4 sm:$0xff]   ;;  %v8225_v1 = vpop.xlane.xlu1 %2585 }
 0x49a   : > { %3408 = vmatprep.subr.bf16.mxu1 %v5435_v34  ;;  %v2666_v32 = vmul.f32 %v5384_v62, %v8141_v26  ;;  %v8214_v18 = vpack.c.bf16 %v2776_v45, %v2774_v40  ;;  %v2961_v42 = vsub.f32 %v8154_v48, %v2897_v11  ;;  %v2963_v19 = vsub.f32 %v8157_v9, %v2899_v52  ;;  %v9372_v50 = vld [vmem:[#allocation111_spill] sm:$0xff]  ;;  %v9376_v21 = vld [vmem:[#allocation24_spill] sm:$0xff] }
 0x49b   : > { %3698 = vadd.xlane.f32.xlu0 %v9369_v8  ;;  %v2729_v2 = vmul.f32 %v5382_v59, %v2697_v0  ;;  %5389 = vrcp.f32 %v8218_v58  ;;  %v8228_v59 = vpack.c.bf16 %v8210_v63, %v2773_v38  ;;  %v5643_v48 = vmov 0   ;;  %v9375_v0 = vld [vmem:[#allocation25_spill] sm:$0xff] }
 0x49c   : > { %3276 = vmatmul.mubr.bf16.gmra.mrb[84].mxu1 %v3011_v16  ;;  %3695 = vadd.xlane.f32.xlu1 %v9371_v31  ;;  %v2698_v55 = vsub.f32 2.0, %v2666_v32  ;;  %v2902_v26 = vunpack.c.l.bf16 %v8214_v18  ;;  %v2904_v35 = vunpack.c.h.bf16 %v8214_v18  ;;  %5391 = vrcp.f32 %v8225_v1  ;;  %v5439_v31 = vld [vmem:[#allocation8 + $0xd4] ss:$8 sps:$4 sm:$0xff]  }
 0x49d   : > { %3285 = vmatprep.mubr.bf16.mxu1 %v3014_v44  ;;  %3409 = vmatpush1.bf16.msra.mxu1 %v5436_v41  ;;  %v3013_v52 = vpack.c.bf16 %v2963_v19, %v2961_v42  ;;  %v9373_v44 = vld [vmem:[#allocation112_spill] sm:$0xff]  ;;  %v2778_v33 = vmul.f32 %v9374_v51, %v2729_v2  ;;  %v9378_v19 = vld [vmem:[#allocation117_spill] sm:$0xff]  ;;  %v2589_v41 = vpop.xlane.xlu0 %2588 }
 0x49e   : > { %3410 = vmatprep.subr.bf16.mxu1 %v5437_v15  ;;  %5026 = vset.pattern.permute.xlu1 %v5643_v48  ;;  %v5386_v9 = vpop.eup %5385  ;;  %v2730_v3 = vmul.f32 %v5384_v62, %v2698_v55  ;;  %v2966_v5 = vsub.f32 %v2774_v40, %v2902_v26  ;;  %v2968_v14 = vsub.f32 %v2776_v45, %v2904_v35  ;;  %v5438_v62 = vld [vmem:[#allocation8 + $0xc0] ss:$8 sps:$4 sm:$0xff]   ;;  %v2901_v40 = vunpack.c.l.bf16 %v8228_v59 }
 0x49f   : > { %3704 = vadd.xlane.f32.xlu0 %v9372_v50  ;;  %v2667_v11 = vmul.f32 %v5386_v9, %v8183_v53  ;;  %v2903_v45 = vunpack.c.h.bf16 %v8228_v59  ;;  %v9377_v53 = vld [vmem:[#allocation22_spill] sm:$0xff]  ;;  %5393 = vrcp.f32 %v2589_v41  ;;  %v5440_v50 = vld [vmem:[#allocation8 + $0xd0] ss:$8 sps:$4 sm:$0xff]  }
 0x4a0   : > { %3701 = vadd.xlane.f32.xlu1 %v9373_v44  ;;  %5025 = vset.pattern.permute.xlu0 %v5643_v48  ;;  %v3016_v54 = vpack.c.bf16 %v2968_v14, %v2966_v5  ;;  %v2780_v16 = vmul.f32 %v9375_v0, %v2730_v3  ;;  %v2779_v34 = vmul.f32 %v9376_v21, %v2730_v3  ;;  %v5388_v32 = vpop.eup %5387  ;;  %v9379_v35 = vld [vmem:[#allocation118_spill] sm:$0xff]  ;;  %v2592_v14 = vpop.xlane.xlu1 %2591  ;;  %v9380_v44 = vld [vmem:[#allocation120_spill] sm:$0xff]  ;;  %v9381_v21 = vld [vmem:[#allocation121_spill] sm:$0xff] }
 0x4a1   : > { %3411 = vmatpush1.bf16.msra.mxu1 %v5438_v62  ;;  %v2699_v8 = vsub.f32 2.0, %v2667_v11  ;;  %v2777_v60 = vmul.f32 %v9377_v53, %v2729_v2  ;;  %v2668_v42 = vmul.f32 %v5388_v32, %v8197_v29  ;;  %v2965_v29 = vsub.f32 %v2773_v38, %v2901_v40  ;;  %v9382_v40 = vld [vmem:[#allocation26_spill] sm:$0xff]  ;;  %v9383_v53 = vld [vmem:[#allocation28_spill] sm:$0xff] }
 0x4a2   : > { %3412 = vmatprep.subr.bf16.mxu1 %v5439_v31  ;;  %v8242_v55 = vpack.c.bf16 %v2780_v16, %v2778_v33  ;;  %v2967_v5 = vsub.f32 %v8210_v63, %v2903_v45  ;;  %5395 = vrcp.f32 %v2592_v14 }
 0x4a3   : > { %3710 = vadd.xlane.f32.xlu0 %v9378_v19  ;;  %v2731_v26 = vmul.f32 %v5386_v9, %v2699_v8  ;;  %v8245_v15 = vpack.c.bf16 %v2779_v34, %v2777_v60  ;;  %v2700_v48 = vsub.f32 2.0, %v2668_v42  ;;  %v5441_v9 = vld [vmem:[#allocation8 + $0xe4] ss:$8 sps:$4 sm:$0xff]   ;;  %v5442_v19 = vld [vmem:[#allocation8 + $0xe0] ss:$8 sps:$4 sm:$0xff]  }
 0x4a4   : > { %3286 = vmatmul.mubr.bf16.gmra.mrb[88].mxu1 %v3013_v52  ;;  %3707 = vadd.xlane.f32.xlu1 %v9379_v35  ;;  %v2906_v2 = vunpack.c.l.bf16 %v8242_v55  ;;  %v2908_v3 = vunpack.c.h.bf16 %v8242_v55  ;;  %v5443_v35 = vld [vmem:[#allocation8 + $0xf4] ss:$8 sps:$4 sm:$0xff]  }
 0x4a5   : > { %3295 = vmatprep.mubr.bf16.mxu1 %v3016_v54  ;;  %3413 = vmatpush1.bf16.msra.mxu1 %v5440_v50  ;;  %v5390_v11 = vpop.eup %5389  ;;  %v2732_v52 = vmul.f32 %v5388_v32, %v2700_v48  ;;  %v2905_v62 = vunpack.c.l.bf16 %v8245_v15  ;;  %v2907_v38 = vunpack.c.h.bf16 %v8245_v15  ;;  %v2782_v45 = vmul.f32 %v9382_v40, %v2731_v26  ;;  %v9384_v32 = vld [vmem:[#allocation27_spill] sm:$0xff]  ;;  %v9385_v48 = vld [vmem:[#allocation125_spill] sm:$0xff] }
 0x4a6   : > { %3414 = vmatprep.subr.bf16.mxu1 %v5441_v9  ;;  %v2970_v51 = vsub.f32 %v2778_v33, %v2906_v2  ;;  %v2972_v54 = vsub.f32 %v2780_v16, %v2908_v3  ;;  %v2669_v0 = vmul.f32 %v5390_v11, %v8218_v58  ;;  %v5392_v8 = vpop.eup %5391  ;;  %v3015_v58 = vpack.c.bf16 %v2967_v5, %v2965_v29  ;;  %v9386_v3 = vld [vmem:[#allocation46_spill] sm:$0xff]  ;;  %v5444_v5 = vld [vmem:[#allocation8 + $0xf0] ss:$8 sps:$4 sm:$0xff]  }
 0x4a7   : > { %3716 = vadd.xlane.f32.xlu0 %v9380_v44  ;;  %v2784_v31 = vmul.f32 %v9383_v53, %v2732_v52  ;;  %v2783_v42 = vmul.f32 %v9384_v32, %v2732_v52  ;;  %v2670_v16 = vmul.f32 %v5392_v8, %v8225_v1  ;;  %v2781_v50 = vmul.f32 %v9386_v3, %v2731_v26  ;;  %v9388_v53 = vld [vmem:[#allocation127_spill] sm:$0xff] }
 0x4a8   : > { %3713 = vadd.xlane.f32.xlu1 %v9381_v21  ;;  %v3018_v63 = vpack.c.bf16 %v2972_v54, %v2970_v51  ;;  %v2701_v33 = vsub.f32 2.0, %v2669_v0  ;;  %v9387_v51 = vld [vmem:[#allocation126_spill] sm:$0xff]  ;;  %v2969_v52 = vsub.f32 %v2777_v60, %v2905_v62  ;;  %v2971_v54 = vsub.f32 %v2779_v34, %v2907_v38  ;;  %v9391_v34 = vld [vmem:[#allocation32_spill] sm:$0xff] }
 0x4a9   : > { %3415 = vmatpush1.bf16.msra.mxu1 %v5442_v19  ;;  %v8260_v2 = vpack.c.bf16 %v2784_v31, %v2782_v45  ;;  %v2702_v44 = vsub.f32 2.0, %v2670_v16  ;;  %v8266_v29 = vpack.c.bf16 %v2783_v42, %v2781_v50  ;;  %v5394_v40 = vpop.eup %5393  ;;  %v9389_v19 = vld [vmem:[#allocation128_spill] sm:$0xff]  ;;  %v9390_v60 = vld [vmem:[#allocation30_spill] sm:$0xff] }
 0x4aa   : > { %3416 = vmatprep.subr.bf16.mxu1 %v5443_v35  ;;  %v2733_v9 = vmul.f32 %v5390_v11, %v2701_v33  ;;  %v2671_v32 = vmul.f32 %v5394_v40, %v2589_v41  ;;  %v3017_v33 = vpack.c.bf16 %v2971_v54, %v2969_v52  ;;  %v9392_v35 = vld [vmem:[#allocation31_spill] sm:$0xff]  ;;  %v9393_v41 = vld [vmem:[#allocation129_spill] sm:$0xff] }
 0x4ab   : > { %3722 = vadd.xlane.f32.xlu0 %v9385_v48  ;;  %v2910_v0 = vunpack.c.l.bf16 %v8260_v2  ;;  %v2912_v1 = vunpack.c.h.bf16 %v8260_v2  ;;  %v2734_v21 = vmul.f32 %v5392_v8, %v2702_v44  ;;  %v2911_v44 = vunpack.c.h.bf16 %v8266_v29 }
 0x4ac   : > { %3296 = vmatmul.mubr.bf16.gmra.mrb[92].mxu1 %v3015_v58  ;;  %3719 = vadd.xlane.f32.xlu1 %v9387_v51  ;;  %v2786_v62 = vmul.f32 %v9390_v60, %v2733_v9  ;;  %v2909_v58 = vunpack.c.l.bf16 %v8266_v29  ;;  %v2703_v8 = vsub.f32 2.0, %v2671_v32 }
 0x4ad   : > { %3305 = vmatprep.mubr.bf16.mxu1 %v3018_v63  ;;  %3417 = vmatpush1.bf16.msra.mxu1 %v5444_v5  ;;  %v2974_v26 = vsub.f32 %v2782_v45, %v2910_v0  ;;  %v2976_v11 = vsub.f32 %v2784_v31, %v2912_v1  ;;  %v2788_v38 = vmul.f32 %v9391_v34, %v2734_v21  ;;  %v5396_v63 = vpop.eup %5395  ;;  %v9394_v31 = vld [vmem:[#allocation29_spill] sm:$0xff] }
 0x4ae   : > { %v2787_v48 = vmul.f32 %v9392_v35, %v2734_v21  ;;  %v2672_v3 = vmul.f32 %v5396_v63, %v2592_v14  ;;  %v2785_v51 = vmul.f32 %v9394_v31, %v2733_v9  ;;  %v2735_v0 = vmul.f32 %v5394_v40, %v2703_v8  ;;  %v9395_v9 = vld [vmem:[#allocation131_spill] sm:$0xff]  ;;  %v9396_v40 = vld [vmem:[#allocation81_spill] sm:$0xff]  ;;  %v9401_v35 = vld [vmem:[#allocation48_spill] sm:$0xff] }
 0x4af   : > { %3728 = vadd.xlane.f32.xlu0 %v9388_v53  ;;  %v3020_v16 = vpack.c.bf16 %v2976_v11, %v2974_v26  ;;  %v8275_v45 = vpack.c.bf16 %v2788_v38, %v2786_v62  ;;  %v2973_v5 = vsub.f32 %v2781_v50, %v2909_v58  ;;  %v2975_v53 = vsub.f32 %v2783_v42, %v2911_v44 }
 0x4b0   : > { %3725 = vadd.xlane.f32.xlu1 %v9389_v19  ;;  %v2704_v1 = vsub.f32 2.0, %v2672_v3  ;;  %v8282_v14 = vpack.c.bf16 %v2787_v48, %v2785_v51  ;;  %v2790_v32 = vmul.f32 %v9396_v40, %v2735_v0  ;;  %v9397_v19 = vld [vmem:[#allocation83_spill] sm:$0xff]  ;;  %v2789_v8 = vmul.f32 %v9401_v35, %v2735_v0  ;;  %v9405_v0 = vld [vmem:[#allocation136_spill] sm:$0xff]  ;;  %v9407_v40 = vld [vmem:[#allocation93_spill] sm:$0xff] }
 0x4b1   : > { %v2914_v52 = vunpack.c.l.bf16 %v8275_v45  ;;  %v2916_v54 = vunpack.c.h.bf16 %v8275_v45  ;;  %v9420_v35 = vld [vmem:[#allocation110_spill] sm:$0xff] }
 0x4b2   : > { %v2736_v21 = vmul.f32 %v5396_v63, %v2704_v1  ;;  %v2913_v34 = vunpack.c.l.bf16 %v8282_v14  ;;  %v2915_v50 = vunpack.c.h.bf16 %v8282_v14  ;;  %v9398_v63 = vld [vmem:[#allocation82_spill] sm:$0xff] }
 0x4b3   : > { %3734 = vadd.xlane.f32.xlu0 %v9393_v41  ;;  %v2978_v26 = vsub.f32 %v2786_v62, %v2914_v52  ;;  %v2980_v11 = vsub.f32 %v2788_v38, %v2916_v54  ;;  %v9399_v62 = vld [vmem:[#allocation132_spill] sm:$0xff]  ;;  %v9402_v52 = vld [vmem:[#allocation134_spill] sm:$0xff]  ;;  %v9403_v54 = vld [vmem:[#allocation91_spill] sm:$0xff] }
 0x4b4   : > { %3306 = vmatmul.mubr.bf16.gmra.mrb[96].mxu1 %v3017_v33  ;;  %3731 = vadd.xlane.f32.xlu1 %v7673_v23  ;;  %v2792_v23 = vmul.f32 %v9397_v19, %v2736_v21  ;;  %v3019_v33 = vpack.c.bf16 %v2975_v53, %v2973_v5  ;;  %v2791_v42 = vmul.f32 %v9398_v63, %v2736_v21  ;;  %v9408_v19 = vld [vmem:[#allocation90_spill] sm:$0xff]  ;;  %v9414_v63 = vld [vmem:[#allocation104_spill] sm:$0xff] }
 0x4b5   : > { %3315 = vmatprep.mubr.bf16.mxu1 %v3020_v16  ;;  %v3022_v60 = vpack.c.bf16 %v2980_v11, %v2978_v26  ;;  %v2977_v3 = vsub.f32 %v2785_v51, %v2913_v34  ;;  %v2979_v44 = vsub.f32 %v2787_v48, %v2915_v50  ;;  %v9404_v11 = vld [vmem:[#allocation135_spill] sm:$0xff]  ;;  %v9411_v34 = vld [vmem:[#allocation37_spill] sm:$0xff]  ;;  %v9413_v50 = vld [vmem:[#allocation96_spill] sm:$0xff] }
 0x4b6   : > { %v8290_v16 = vpack.c.bf16 %v2792_v23, %v2790_v32  ;;  %v8298_v1 = vpack.c.bf16 %v2791_v42, %v2789_v8 }
 0x4b7   : > { %3740 = vadd.xlane.f32.xlu0 %v7681_v22  ;;  %v9400_v22 = vld [vmem:[#allocation133_spill] sm:$0xff]  ;;  %v3021_v21 = vpack.c.bf16 %v2979_v44, %v2977_v3 }
 0x4b8   : > { %3737 = vadd.xlane.f32.xlu1 %v9395_v9  ;;  %v2918_v38 = vunpack.c.l.bf16 %v8290_v16  ;;  %v2920_v58 = vunpack.c.h.bf16 %v8290_v16  ;;  %v2917_v53 = vunpack.c.l.bf16 %v8298_v1  ;;  %v2919_v26 = vunpack.c.h.bf16 %v8298_v1  ;;  %v9406_v9 = vld [vmem:[#allocation92_spill] sm:$0xff] }
 0x4ba   : > { %v2982_v41 = vsub.f32 %v2790_v32, %v2918_v38  ;;  %v2984_v31 = vsub.f32 %v2792_v23, %v2920_v58  ;;  %v2981_v48 = vsub.f32 %v2789_v8, %v2917_v53  ;;  %v2983_v51 = vsub.f32 %v2791_v42, %v2919_v26  ;;  %v9409_v23 = vld [vmem:[#allocation98_spill] sm:$0xff]  ;;  %v9415_v42 = vld [vmem:[#allocation97_spill] sm:$0xff]  ;;  %v9419_v58 = vld [vmem:[#allocation103_spill] sm:$0xff] }
 0x4bb   : > { %3746 = vadd.xlane.f32.xlu0 %v9399_v62  ;;  %v9416_v62 = vld [vmem:[#allocation102_spill] sm:$0xff]  ;;  %v9418_v38 = vld [vmem:[#allocation41_spill] sm:$0xff]  ;;  %v9424_v53 = vld [vmem:[#allocation108_spill] sm:$0xff] }
 0x4bc   : > { %3316 = vmatmul.mubr.bf16.gmra.mrb[100].mxu1 %v3019_v33  ;;  %3743 = vadd.xlane.f32.xlu1 %v9400_v22  ;;  %v3024_v5 = vpack.c.bf16 %v2984_v31, %v2982_v41  ;;  %v3023_v32 = vpack.c.bf16 %v2983_v51, %v2981_v48  ;;  %v9412_v33 = vld [vmem:[#allocation38_spill] sm:$0xff]  ;;  %v9417_v22 = vld [vmem:[#allocation107_spill] sm:$0xff] }
 0x4bd   : > { %3325 = vmatprep.mubr.bf16.mxu1 %v3022_v60  ;;  %v9410_v60 = vld [vmem:[#allocation101_spill] sm:$0xff] }
 0x4bf   : > { %3868 = vadd.xlane.f32.xlu0 %v9402_v52  ;;  %v9421_v52 = vld [vmem:[#allocation114_spill] sm:$0xff] }
 0x4c0   : > { %3749 = vadd.xlane.f32.xlu1 %v9403_v54  ;;  %v9422_v54 = vld [vmem:[#allocation109_spill] sm:$0xff] }
 0x4c3   : > { %3874 = vadd.xlane.f32.xlu0 %v9404_v11 }
 0x4c4   : > { %3326 = vmatmul.mubr.bf16.gmra.mrb[104].mxu1 %v3021_v21  ;;  %3871 = vadd.xlane.f32.xlu1 %v9405_v0 }
 0x4c5   : > { %3335 = vmatprep.mubr.bf16.mxu1 %v3024_v5  ;;  %v9423_v5 = vld [vmem:[#allocation113_spill] sm:$0xff] }
 0x4c7   : > { %3880 = vadd.xlane.f32.xlu0 %v9406_v9 }
 0x4c8   : > { %3877 = vadd.xlane.f32.xlu1 %v9407_v40 }
 0x4cb   : > { %3886 = vadd.xlane.f32.xlu0 %v9408_v19 }
 0x4cc   : > { %3336 = vmatmul.mubr.bf16.gmra.mrb[108].mxu1 %v3023_v32  ;;  %3883 = vadd.xlane.f32.xlu1 %v9409_v23 }
 0x4cf   : > { %3892 = vadd.xlane.f32.xlu0 %v9410_v60 }
 0x4d0   : > { %3889 = vadd.xlane.f32.xlu1 %v9411_v34 }
 0x4d3   : > { %3898 = vadd.xlane.f32.xlu0 %v9412_v33 }
 0x4d4   : > { %3895 = vadd.xlane.f32.xlu1 %v9413_v50  ;;  %v8350_v50 = vld [vmem:[%s8729_s6] ss:$0 sm:$0xff] }
 0x4d7   : > { %3904 = vadd.xlane.f32.xlu0 %v9414_v63 }
 0x4d8   : > { %3901 = vadd.xlane.f32.xlu1 %v9415_v42 }
 0x4db   : > { %3910 = vadd.xlane.f32.xlu0 %v9416_v62 }
 0x4dc   : > { %3907 = vadd.xlane.f32.xlu1 %v9417_v22 }
 0x4df   : > { %3916 = vadd.xlane.f32.xlu0 %v9418_v38 }
 0x4e0   : > { %3913 = vadd.xlane.f32.xlu1 %v9419_v58 }
 0x4e3   : > { %3922 = vadd.xlane.f32.xlu0 %v8063_v24 }
 0x4e4   : > { %3919 = vadd.xlane.f32.xlu1 %v9420_v35 }
 0x4e7   : > { %3928 = vadd.xlane.f32.xlu0 %v8098_v7 }
 0x4e8   : > { %3925 = vadd.xlane.f32.xlu1 %v7993_v61 }
 0x4eb   : > { %3934 = vadd.xlane.f32.xlu0 %v8117_v17 }
 0x4ec   : > { %3931 = vadd.xlane.f32.xlu1 %v8059_v39 }
 0x4ef   : > { %3940 = vadd.xlane.f32.xlu0 %v8161_v4  ;;  %v2595_v8 = vpop.xlane.xlu0 %2594 }
 0x4f0   : > { %3937 = vadd.xlane.f32.xlu1 %v8067_v37  ;;  %5397 = vrcp.f32 %v2595_v8 }
 0x4f3   : > { %3946 = vadd.xlane.f32.xlu0 %v8169_v43 }
 0x4f4   : > { %v2598_v3 = vpop.xlane.xlu1 %2597  ;;  %3943 = vadd.xlane.f32.xlu1 %v8102_v30 }
 0x4f5   : > { %5399 = vrcp.f32 %v2598_v3 }
 0x4f7   : > { %3952 = vadd.xlane.f32.xlu0 %v8189_v28 }
 0x4f8   : > { %v2601_v24 = vpop.xlane.xlu0 %2600  ;;  %3949 = vadd.xlane.f32.xlu1 %v8146_v20 }
 0x4f9   : > { %5401 = vrcp.f32 %v2601_v24 }
 0x4fa   : > { %v5398_v61 = vpop.eup %5397 }
 0x4fb   : > { %3958 = vadd.xlane.f32.xlu0 %v8200_v49  ;;  %v2673_v39 = vmul.f32 %v5398_v61, %v2595_v8 }
 0x4fc   : > { %3955 = vadd.xlane.f32.xlu1 %v8165_v57 }
 0x4fd   : > { %v2705_v37 = vsub.f32 2.0, %v2673_v39 }
 0x4fe   : > { %v2604_v7 = vpop.xlane.xlu1 %2603 }
 0x4ff   : > { %v5400_v17 = vpop.eup %5399  ;;  %5403 = vrcp.f32 %v2604_v7  ;;  %v2737_v30 = vmul.f32 %v5398_v61, %v2705_v37 }
 0x500   : > { %v2674_v4 = vmul.f32 %v5400_v17, %v2598_v3  ;;  %3961 = vadd.xlane.f32.xlu1 %v8185_v10 }
 0x501   : > { %v2607_v43 = vpop.xlane.xlu0 %2606  ;;  %v2794_v49 = vmul.f32 %v9421_v52, %v2737_v30  ;;  %v2793_v21 = vmul.f32 %v9423_v5, %v2737_v30 }
 0x502   : > { %v2706_v28 = vsub.f32 2.0, %v2674_v4  ;;  %5405 = vrcp.f32 %v2607_v43  ;;  %v9425_v4 = vld [vmem:[#allocation119_spill] sm:$0xff] }
 0x503   : > { %v5402_v44 = vpop.eup %5401 }
 0x504   : > { %v2738_v20 = vmul.f32 %v5400_v17, %v2706_v28  ;;  %v2675_v41 = vmul.f32 %v5402_v44, %v2601_v24 }
 0x505   : > { %v2610_v31 = vpop.xlane.xlu1 %2609 }
 0x506   : > { %5407 = vrcp.f32 %v2610_v31  ;;  %v2796_v57 = vmul.f32 %v9422_v54, %v2738_v20  ;;  %v2795_v26 = vmul.f32 %v9424_v53, %v2738_v20  ;;  %v2707_v11 = vsub.f32 2.0, %v2675_v41 }
 0x507   : > { %v2613_v0 = vpop.xlane.xlu0 %2612 }
 0x508   : > { %v8339_v10 = vpack.c.bf16 %v2796_v57, %v2794_v49  ;;  %v8341_v48 = vpack.c.bf16 %v2795_v26, %v2793_v21  ;;  %5409 = vrcp.f32 %v2613_v0  ;;  %v2739_v23 = vmul.f32 %v5402_v44, %v2707_v11  ;;  %v9426_v44 = vld [vmem:[#allocation42_spill] sm:$0xff] }
 0x509   : > { %v5404_v51 = vpop.eup %5403 }
 0x50a   : > { %v2676_v9 = vmul.f32 %v5404_v51, %v2604_v7  ;;  %v2922_v40 = vunpack.c.l.bf16 %v8339_v10  ;;  %v2924_v32 = vunpack.c.h.bf16 %v8339_v10  ;;  %v2921_v19 = vunpack.c.l.bf16 %v8341_v48 }
 0x50b   : > { %v2923_v60 = vunpack.c.h.bf16 %v8341_v48  ;;  %v2798_v30 = vmul.f32 %v9425_v4, %v2739_v23  ;;  %v2797_v20 = vmul.f32 %v9426_v44, %v2739_v23 }
 0x50c   : > { %v5406_v34 = vpop.eup %5405  ;;  %v2708_v33 = vsub.f32 2.0, %v2676_v9  ;;  %v3657_v63 = vpop.xlane.xlu0 %3656  ;;  %v2986_v42 = vsub.f32 %v2794_v49, %v2922_v40  ;;  %v2988_v62 = vsub.f32 %v2796_v57, %v2924_v32  ;;  %v2985_v22 = vsub.f32 %v2793_v21, %v2921_v19 }
 0x50d   : > { %v2677_v38 = vmul.f32 %v5406_v34, %v2607_v43  ;;  %v3758_v58 = vadd.f32 %v8350_v50, %v3657_v63  ;;  %v2616_v35 = vpop.xlane.xlu1 %2615  ;;  %v2987_v8 = vsub.f32 %v2795_v26, %v2923_v60  ;;  %v9427_v43 = vld [vmem:[#allocation45_spill] sm:$0xff] }
 0x50e   : > { %v2740_v3 = vmul.f32 %v5404_v51, %v2708_v33  ;;  %5411 = vrcp.f32 %v2616_v35  ;;  %v3026_v24 = vpack.c.bf16 %v2988_v62, %v2986_v42 }
 0x50f   : > { %v2709_v61 = vsub.f32 2.0, %v2677_v38  ;;  %v3995_v39 = vmax.f32 %v3758_v58, 0.0  ;;  %v3025_v37 = vpack.c.bf16 %v2987_v8, %v2985_v22  ;;  %v9428_v38 = vld [vmem:[#allocation123_spill] sm:$0xff]  ;;  %v9429_v8 = vld [vmem:[#allocation53_spill] sm:$0xff] }
 0x510   : > { %v5408_v7 = vpop.eup %5407  ;;  %v3663_v17 = vpop.xlane.xlu0 %3662  ;;  %3345 = vmatprep.mubr.bf16.mxu1 %v3026_v24  ;;  %v2800_v28 = vmul.f32 %v7962_v6, %v2740_v3  ;;  %v2799_v41 = vmul.f32 %v9427_v43, %v2740_v3 }
 0x511   : > { %v2678_v52 = vmul.f32 %v5408_v7, %v2610_v31  ;;  %v3760_v49 = vadd.f32 %v8350_v50, %v3663_v17  ;;  %v3660_v54 = vpop.xlane.xlu1 %3659  ;;  %3346 = vmatmul.mubr.bf16.gmra.mrb[112].mxu1 %v3025_v37  ;;  %4029 = vperm.xlu0 %5025, %v3995_v39   ;;  %v2741_v26 = vmul.f32 %v5406_v34, %v2709_v61  ;;  %v9430_v37 = vld [vmem:[#allocation49_spill] sm:$0xff]  ;;  %v9431_v17 = vld [vmem:[#allocation124_spill] sm:$0xff] }
 0x512   : > { %v3759_v57 = vadd.f32 %v8350_v50, %v3660_v54  ;;  %v8359_v5 = vpack.c.bf16 %v2800_v28, %v2798_v30  ;;  %v8361_v21 = vpack.c.bf16 %v2799_v41, %v2797_v20  ;;  %v5410_v53 = vpop.eup %5409 }
 0x513   : > { %v2710_v11 = vsub.f32 2.0, %v2678_v52  ;;  %v2679_v6 = vmul.f32 %v5410_v53, %v2613_v0  ;;  %v3997_v19 = vmax.f32 %v3760_v49, 0.0  ;;  %v2802_v58 = vmul.f32 %v9428_v38, %v2741_v26 }
 0x514   : > { %v3996_v51 = vmax.f32 %v3759_v57, 0.0  ;;  %v3669_v9 = vpop.xlane.xlu0 %3668  ;;  %v2926_v40 = vunpack.c.l.bf16 %v8359_v5  ;;  %v2928_v31 = vunpack.c.h.bf16 %v8359_v5  ;;  %v2925_v60 = vunpack.c.l.bf16 %v8361_v21 }
 0x515   : > { %v2742_v32 = vmul.f32 %v5408_v7, %v2710_v11  ;;  %v3666_v23 = vpop.xlane.xlu1 %3665  ;;  %v2927_v33 = vunpack.c.h.bf16 %v8361_v21  ;;  %v2711_v63 = vsub.f32 2.0, %v2679_v6  ;;  %v2801_v7 = vmul.f32 %v9430_v37, %v2741_v26 }
 0x516   : > { %v3761_v42 = vadd.f32 %v8350_v50, %v3666_v23  ;;  %4034 = vperm.xlu1 %5026, %v3996_v51   ;;  %v2990_v34 = vsub.f32 %v2798_v30, %v2926_v40  ;;  %v2992_v62 = vsub.f32 %v2800_v28, %v2928_v31  ;;  %v2989_v0 = vsub.f32 %v2797_v20, %v2925_v60  ;;  %v9432_v60 = vld [vmem:[#allocation57_spill] sm:$0xff] }
 0x517   : > { %v2991_v22 = vsub.f32 %v2799_v41, %v2927_v33  ;;  %v2804_v3 = vmul.f32 %v9429_v8, %v2742_v32  ;;  %v2803_v4 = vmul.f32 %v9431_v17, %v2742_v32  ;;  %v3762_v43 = vadd.f32 %v8350_v50, %v3669_v9 }
 0x518   : > { %v5412_v24 = vpop.eup %5411  ;;  %v3675_v61 = vpop.xlane.xlu0 %3674  ;;  %v3028_v39 = vpack.c.bf16 %v2992_v62, %v2990_v34  ;;  %v2743_v28 = vmul.f32 %v5410_v53, %v2711_v63  ;;  %v3998_v20 = vmax.f32 %v3761_v42, 0.0  ;;  %v9433_v34 = vld [vmem:[#allocation36_spill] sm:$0xff] }
 0x519   : > { %v2680_v44 = vmul.f32 %v5412_v24, %v2616_v35  ;;  %v3672_v52 = vpop.xlane.xlu1 %3671  ;;  %v3027_v49 = vpack.c.bf16 %v2991_v22, %v2989_v0  ;;  %v8373_v30 = vpack.c.bf16 %v2804_v3, %v2802_v58  ;;  %v8375_v41 = vpack.c.bf16 %v2803_v4, %v2801_v7 }
 0x51a   : > { %3355 = vmatprep.mubr.bf16.mxu1 %v3028_v39  ;;  %4039 = vperm.xlu1 %5026, %v3997_v19   ;;  %v3999_v9 = vmax.f32 %v3762_v43, 0.0  ;;  %v3763_v32 = vadd.f32 %v8350_v50, %v3672_v52  ;;  %v2806_v33 = vmul.f32 %v9432_v60, %v2743_v28  ;;  %v2805_v62 = vmul.f32 %v9433_v34, %v2743_v28 }
 0x51b   : > { %v2712_v54 = vsub.f32 2.0, %v2680_v44  ;;  %3356 = vmatmul.mubr.bf16.gmra.mrb[116].mxu1 %v3027_v49  ;;  %v2930_v57 = vunpack.c.l.bf16 %v8373_v30  ;;  %v2932_v26 = vunpack.c.h.bf16 %v8373_v30  ;;  %v2929_v35 = vunpack.c.l.bf16 %v8375_v41 }
 0x51c   : > { %v3681_v11 = vpop.xlane.xlu0 %3680  ;;  %v2931_v6 = vunpack.c.h.bf16 %v8375_v41  ;;  %v4000_v39 = vmax.f32 %v3763_v32, 0.0 }
 0x51d   : > { %v2744_v51 = vmul.f32 %v5412_v24, %v2712_v54  ;;  %v3678_v40 = vpop.xlane.xlu1 %3677  ;;  %v2994_v53 = vsub.f32 %v2802_v58, %v2930_v57  ;;  %v2996_v31 = vsub.f32 %v2804_v3, %v2932_v26  ;;  %v2993_v19 = vsub.f32 %v2801_v7, %v2929_v35 }
 0x51e   : > { %4044 = vperm.xlu1 %5026, %v3998_v20   ;;  %v2995_v23 = vsub.f32 %v2803_v4, %v2931_v6  ;;  %v3764_v24 = vadd.f32 %v8350_v50, %v3675_v61  ;;  %v3765_v20 = vadd.f32 %v8350_v50, %v3678_v40 }
 0x51f   : > { %v3030_v63 = vpack.c.bf16 %v2996_v31, %v2994_v53  ;;  %v2808_v42 = vmul.f32 %v8039_v12, %v2744_v51  ;;  %v2807_v0 = vmul.f32 %v8036_v27, %v2744_v51  ;;  %v3766_v53 = vadd.f32 %v8350_v50, %v3681_v11 }
 0x520   : > { %v3687_v22 = vpop.xlane.xlu0 %3686  ;;  %v3029_v38 = vpack.c.bf16 %v2995_v23, %v2993_v19  ;;  %v4001_v61 = vmax.f32 %v3764_v24, 0.0  ;;  %v4002_v31 = vmax.f32 %v3765_v20, 0.0  ;;  %v9434_v19 = vld [vmem:[#allocation116_spill] sm:$0xff]  ;;  %v9435_v24 = vld [vmem:[#allocation115_spill] sm:$0xff] }
 0x521   : > { %3365 = vmatprep.mubr.bf16.mxu1 %v3030_v63  ;;  %v3684_v8 = vpop.xlane.xlu1 %3683  ;;  %v8386_v58 = vpack.c.bf16 %v2808_v42, %v2806_v33  ;;  %v8388_v3 = vpack.c.bf16 %v2807_v0, %v2805_v62  ;;  %v3768_v63 = vadd.f32 %v8350_v50, %v3687_v22 }
 0x522   : > { %v3767_v37 = vadd.f32 %v8350_v50, %v3684_v8  ;;  %4049 = vperm.xlu1 %5026, %v3999_v9  }
 0x523   : > { %3366 = vmatmul.mubr.bf16.gmra.mrb[120].mxu1 %v3029_v38  ;;  %v2934_v12 = vunpack.c.l.bf16 %v8386_v58  ;;  %v2936_v7 = vunpack.c.h.bf16 %v8386_v58  ;;  %v2933_v27 = vunpack.c.l.bf16 %v8388_v3  ;;  %v2935_v44 = vunpack.c.h.bf16 %v8388_v3 }
 0x524   : > { %v4004_v17 = vmax.f32 %v3767_v37, 0.0  ;;  %v3693_v4 = vpop.xlane.xlu0 %3692  ;;  %v9436_v37 = vld [vmem:[#allocation122_spill] sm:$0xff] }
 0x525   : > { %v3690_v43 = vpop.xlane.xlu1 %3689  ;;  %v2998_v52 = vsub.f32 %v2806_v33, %v2934_v12  ;;  %v3000_v49 = vsub.f32 %v2808_v42, %v2936_v7  ;;  %v2997_v28 = vsub.f32 %v2805_v62, %v2933_v27  ;;  %v2999_v57 = vsub.f32 %v2807_v0, %v2935_v44 }
 0x526   : > { %v3769_v54 = vadd.f32 %v8350_v50, %v3690_v43  ;;  %4054 = vperm.xlu1 %5026, %v4000_v39   ;;  %4074 = vperm.xlu0 %5025, %v4004_v17   ;;  %v4003_v33 = vmax.f32 %v3766_v53, 0.0  ;;  %v4005_v0 = vmax.f32 %v3768_v63, 0.0  ;;  %v3770_v38 = vadd.f32 %v8350_v50, %v3693_v4 }
 0x527   : > { %v3032_v26 = vpack.c.bf16 %v3000_v49, %v2998_v52  ;;  %v3031_v51 = vpack.c.bf16 %v2999_v57, %v2997_v28 }
 0x528   : > { %v4006_v35 = vmax.f32 %v3769_v54, 0.0  ;;  %v3699_v6 = vpop.xlane.xlu0 %3698  ;;  %v4007_v7 = vmax.f32 %v3770_v38, 0.0  ;;  %v9438_v54 = vld [vmem:[#allocation35_spill] sm:$0xff] }
 0x529   : > { %3375 = vmatprep.mubr.bf16.mxu1 %v3032_v26  ;;  %v3696_v9 = vpop.xlane.xlu1 %3695  ;;  %v3772_v27 = vadd.f32 %v8350_v50, %v3699_v6 }
 0x52a   : > { %v3771_v32 = vadd.f32 %v8350_v50, %v3696_v9  ;;  %4059 = vperm.xlu1 %5026, %v4001_v61   ;;  %4084 = vperm.xlu0 %5025, %v4006_v35   ;;  %v9437_v61 = vld [vmem:[#allocation52_spill] sm:$0xff] }
 0x52b   : > { %3376 = vmatmul.mubr.bf16.gmra.mrb[124].mxu1 %v3031_v51  ;;  %v4009_v52 = vmax.f32 %v3772_v27, 0.0 }
 0x52c   : > { %v4008_v40 = vmax.f32 %v3771_v32, 0.0  ;;  %3418 = vmatprep.mubr.bf16.mxu1 %v9434_v19  ;;  %v3705_v23 = vpop.xlane.xlu0 %3704 }
 0x52d   : > { %v3702_v60 = vpop.xlane.xlu1 %3701  ;;  %v3774_v49 = vadd.f32 %v8350_v50, %v3705_v23  ;;  %v9439_v23 = vld [vmem:[#allocation56_spill] sm:$0xff] }
 0x52e   : > { %v3773_v42 = vadd.f32 %v8350_v50, %v3702_v60  ;;  %4064 = vperm.xlu1 %5026, %v4002_v31   ;;  %4094 = vperm.xlu0 %5025, %v4008_v40  }
 0x52f   : > { %v4011_v35 = vmax.f32 %v3774_v49, 0.0 }
 0x530   : > { %v4010_v34 = vmax.f32 %v3773_v42, 0.0  ;;  %v3711_v11 = vpop.xlane.xlu0 %3710 }
 0x531   : > { %v3708_v62 = vpop.xlane.xlu1 %3707  ;;  %v3776_v6 = vadd.f32 %v8350_v50, %v3711_v11 }
 0x532   : > { %v3775_v8 = vadd.f32 %v8350_v50, %v3708_v62  ;;  %4069 = vperm.xlu1 %5026, %v4003_v33   ;;  %4104 = vperm.xlu0 %5025, %v4010_v34   ;;  %v9440_v33 = vld [vmem:[#allocation39_spill] sm:$0xff] }
 0x533   : > { %3419 = vmatmul.mubr.bf16.vlgmr.msra.gmra.mrb[64].mxu1 %v9435_v24  ;;  %v4013_v32 = vmax.f32 %v3776_v6, 0.0 }
 0x534   : > { %v4012_v39 = vmax.f32 %v3775_v8, 0.0  ;;  %3428 = vmatprep.mubr.bf16.mxu1 %v9436_v37  ;;  %v3717_v22 = vpop.xlane.xlu0 %3716 }
 0x535   : > { %v3714_v12 = vpop.xlane.xlu1 %3713  ;;  %v3778_v40 = vadd.f32 %v8350_v50, %v3717_v22  ;;  %v9441_v22 = vld [vmem:[#allocation40_spill] sm:$0xff] }
 0x536   : > { %v3777_v17 = vadd.f32 %v8350_v50, %v3714_v12  ;;  %4079 = vperm.xlu1 %5026, %v4005_v0   ;;  %4114 = vperm.xlu0 %5025, %v4012_v39  }
 0x537   : > { %v4015_v34 = vmax.f32 %v3778_v40, 0.0 }
 0x538   : > { %v4014_v44 = vmax.f32 %v3777_v17, 0.0  ;;  %v3723_v4 = vpop.xlane.xlu0 %3722 }
 0x539   : > { %v3720_v43 = vpop.xlane.xlu1 %3719  ;;  %v3780_v11 = vadd.f32 %v8350_v50, %v3723_v4 }
 0x53a   : > { %v3779_v28 = vadd.f32 %v8350_v50, %v3720_v43  ;;  %4089 = vperm.xlu1 %5026, %v4007_v7   ;;  %4124 = vperm.xlu0 %5025, %v4014_v44  }
 0x53b   : > { %3429 = vmatmul.mubr.bf16.gmra.mrb[68].mxu1 %v9437_v61  ;;  %v4017_v24 = vmax.f32 %v3780_v11, 0.0 }
 0x53c   : > { %v4016_v20 = vmax.f32 %v3779_v28, 0.0  ;;  %3438 = vmatprep.mubr.bf16.mxu1 %v9438_v54  ;;  %v3729_v57 = vpop.xlane.xlu0 %3728 }
 0x53d   : > { %v3726_v26 = vpop.xlane.xlu1 %3725  ;;  %v3782_v39 = vadd.f32 %v8350_v50, %v3729_v57 }
 0x53e   : > { %v3781_v51 = vadd.f32 %v8350_v50, %v3726_v26  ;;  %4099 = vperm.xlu1 %5026, %v4009_v52   ;;  %4134 = vperm.xlu0 %5025, %v4016_v20  }
 0x53f   : > { %v4019_v17 = vmax.f32 %v3782_v39, 0.0 }
 0x540   : > { %v4018_v9 = vmax.f32 %v3781_v51, 0.0  ;;  %v3735_v53 = vpop.xlane.xlu0 %3734 }
 0x541   : > { %v3732_v31 = vpop.xlane.xlu1 %3731  ;;  %v3784_v44 = vadd.f32 %v8350_v50, %v3735_v53 }
 0x542   : > { %v3783_v19 = vadd.f32 %v8350_v50, %v3732_v31  ;;  %4109 = vperm.xlu1 %5026, %v4011_v35   ;;  %4144 = vperm.xlu0 %5025, %v4018_v9   ;;  %v5644_v35 = vmov 1  }
 0x543   : > { %3439 = vmatmul.mubr.bf16.gmra.mrb[72].mxu1 %v9439_v23  ;;  %v4021_v28 = vmax.f32 %v3784_v44, 0.0 }
 0x544   : > { %v4020_v60 = vmax.f32 %v3783_v19, 0.0  ;;  %3448 = vmatprep.mubr.bf16.mxu1 %v9440_v33  ;;  %v3741_v63 = vpop.xlane.xlu0 %3740 }
 0x545   : > { %v3738_v42 = vpop.xlane.xlu1 %3737  ;;  %v3786_v61 = vadd.f32 %v8350_v50, %v3741_v63 }
 0x546   : > { %v3785_v62 = vadd.f32 %v8350_v50, %v3738_v42  ;;  %4119 = vperm.xlu1 %5026, %v4013_v32   ;;  %4154 = vperm.xlu0 %5025, %v4020_v60  }
 0x547   : > { %v4023_v57 = vmax.f32 %v3786_v61, 0.0 }
 0x548   : > { %v4022_v0 = vmax.f32 %v3785_v62, 0.0  ;;  %v3747_v38 = vpop.xlane.xlu0 %3746 }
 0x549   : > { %v3744_v8 = vpop.xlane.xlu1 %3743  ;;  %v3788_v26 = vadd.f32 %v8350_v50, %v3747_v38 }
 0x54a   : > { %v3787_v37 = vadd.f32 %v8350_v50, %v3744_v8  ;;  %4129 = vperm.xlu1 %5026, %v4015_v34   ;;  %4164 = vperm.xlu0 %5025, %v4022_v0  }
 0x54b   : > { %3449 = vmatmul.mubr.bf16.gmra.mrb[76].mxu1 %v9441_v22  ;;  %v4025_v53 = vmax.f32 %v3788_v26, 0.0 }
 0x54c   : > { %v4024_v12 = vmax.f32 %v3787_v37, 0.0  ;;  %3458 = vmatprep.mubr.bf16.mxu1 %v8085_v46  ;;  %v3869_v7 = vpop.xlane.xlu0 %3868 }
 0x54d   : > { %v3750_v27 = vpop.xlane.xlu1 %3749  ;;  %v3963_v40 = vadd.f32 %v8350_v50, %v3869_v7 }
 0x54e   : > { %v3789_v4 = vadd.f32 %v8350_v50, %v3750_v27  ;;  %4139 = vperm.xlu1 %5026, %v4017_v24   ;;  %4174 = vperm.xlu0 %5025, %v4024_v12  }
 0x550   : > { %v4026_v43 = vmax.f32 %v3789_v4, 0.0  ;;  %v3875_v52 = vpop.xlane.xlu0 %3874 }
 0x551   : > { %v3872_v49 = vpop.xlane.xlu1 %3871 }
 0x552   : > { %4149 = vperm.xlu1 %5026, %v4019_v17   ;;  %4184 = vperm.xlu0 %5025, %v4026_v43   ;;  %v3964_v20 = vadd.f32 %v8350_v50, %v3872_v49 }
 0x553   : > { %3459 = vmatmul.mubr.bf16.gmra.mrb[80].mxu1 %v8087_v36 }
 0x554   : > { %3468 = vmatprep.mubr.bf16.mxu1 %v8121_v47  ;;  %v3881_v46 = vpop.xlane.xlu0 %3880 }
 0x555   : > { %v3878_v54 = vpop.xlane.xlu1 %3877  ;;  %v3967_v51 = vadd.f32 %v8350_v50, %v3881_v46 }
 0x556   : > { %4159 = vperm.xlu1 %5026, %v4021_v28   ;;  %5028 = vset.pattern.permute.xlu0 %v5644_v35  ;;  %v3966_v34 = vadd.f32 %v8350_v50, %v3878_v54 }
 0x557   : > { %4258 = vperm.xlu0 %5028, %v3964_v20  }
 0x558   : > { %v3887_v6 = vpop.xlane.xlu0 %3886 }
 0x559   : > { %v3884_v9 = vpop.xlane.xlu1 %3883  ;;  %v3969_v47 = vadd.f32 %v8350_v50, %v3887_v6 }
 0x55a   : > { %4169 = vperm.xlu1 %5026, %v4023_v57   ;;  %v3968_v62 = vadd.f32 %v8350_v50, %v3884_v9 }
 0x55b   : > { %3469 = vmatmul.mubr.bf16.gmra.mrb[84].mxu1 %v8128_v13  ;;  %4273 = vperm.xlu0 %5028, %v3967_v51  }
 0x55c   : > { %3478 = vmatprep.mubr.bf16.mxu1 %v8173_v25  ;;  %v3893_v36 = vpop.xlane.xlu0 %3892  ;;  %v3965_v25 = vadd.f32 %v8350_v50, %v3875_v52 }
 0x55d   : > { %v3890_v31 = vpop.xlane.xlu1 %3889  ;;  %v3971_v23 = vadd.f32 %v8350_v50, %v3893_v36 }
 0x55e   : > { %4179 = vperm.xlu1 %5026, %v4025_v53   ;;  %v3970_v24 = vadd.f32 %v8350_v50, %v3890_v31 }
 0x55f   : > { %4283 = vperm.xlu0 %5028, %v3969_v47  }
 0x560   : > { %v3899_v32 = vpop.xlane.xlu0 %3898 }
 0x561   : > { %v3896_v19 = vpop.xlane.xlu1 %3895  ;;  %v3973_v33 = vadd.f32 %v8350_v50, %v3899_v32 }
 0x562   : > { %5027 = vset.pattern.permute.xlu1 %v5644_v35  ;;  %v3972_v37 = vadd.f32 %v8350_v50, %v3896_v19 }
 0x563   : > { %3479 = vmatmul.mubr.bf16.gmra.mrb[88].mxu1 %v8177_v56  ;;  %4253 = vperm.xlu1 %5027, %v3963_v40  }
 0x564   : > { %3488 = vmatprep.mubr.bf16.mxu1 %v8214_v18  ;;  %4293 = vperm.xlu0 %5028, %v3971_v23   ;;  %v3905_v13 = vpop.xlane.xlu0 %3904 }
 0x565   : > { %v3902_v60 = vpop.xlane.xlu1 %3901  ;;  %v3975_v63 = vadd.f32 %v8350_v50, %v3905_v13 }
 0x566   : > { %v3974_v27 = vadd.f32 %v8350_v50, %v3902_v60 }
 0x567   : > { %4263 = vperm.xlu1 %5027, %v3965_v25  }
 0x568   : > { %4303 = vperm.xlu0 %5028, %v3973_v33   ;;  %v3911_v42 = vpop.xlane.xlu0 %3910 }
 0x569   : > { %v3908_v11 = vpop.xlane.xlu1 %3907  ;;  %v3977_v56 = vadd.f32 %v8350_v50, %v3911_v42 }
 0x56a   : > { %v3976_v44 = vadd.f32 %v8350_v50, %v3908_v11 }
 0x56b   : > { %3489 = vmatmul.mubr.bf16.gmra.mrb[92].mxu1 %v8228_v59  ;;  %4268 = vperm.xlu1 %5027, %v3966_v34  }
 0x56c   : > { %3498 = vmatprep.mubr.bf16.mxu1 %v8242_v55  ;;  %4313 = vperm.xlu0 %5028, %v3975_v63   ;;  %v3917_v18 = vpop.xlane.xlu0 %3916 }
 0x56d   : > { %v3914_v0 = vpop.xlane.xlu1 %3913  ;;  %v3979_v38 = vadd.f32 %v8350_v50, %v3917_v18 }
 0x56e   : > { %v3978_v49 = vadd.f32 %v8350_v50, %v3914_v0 }
 0x56f   : > { %4278 = vperm.xlu1 %5027, %v3968_v62  }
 0x570   : > { %4323 = vperm.xlu0 %5028, %v3977_v56   ;;  %v3923_v8 = vpop.xlane.xlu0 %3922 }
 0x571   : > { %v3920_v39 = vpop.xlane.xlu1 %3919  ;;  %v3981_v59 = vadd.f32 %v8350_v50, %v3923_v8 }
 0x573   : > { %3499 = vmatmul.mubr.bf16.gmra.mrb[96].mxu1 %v8245_v15  ;;  %4288 = vperm.xlu1 %5027, %v3970_v24  }
 0x574   : > { %3508 = vmatprep.mubr.bf16.mxu1 %v8260_v2  ;;  %4333 = vperm.xlu0 %5028, %v3979_v38   ;;  %v3929_v55 = vpop.xlane.xlu0 %3928 }
 0x575   : > { %v3926_v22 = vpop.xlane.xlu1 %3925  ;;  %v3983_v12 = vadd.f32 %v8350_v50, %v3929_v55 }
 0x576   : > { %v3982_v54 = vadd.f32 %v8350_v50, %v3926_v22 }
 0x577   : > { %4298 = vperm.xlu1 %5027, %v3972_v37  }
 0x578   : > { %4343 = vperm.xlu0 %5028, %v3981_v59   ;;  %v3935_v7 = vpop.xlane.xlu0 %3934 }
 0x579   : > { %v3932_v17 = vpop.xlane.xlu1 %3931  ;;  %v3985_v15 = vadd.f32 %v8350_v50, %v3935_v7 }
 0x57a   : > { %v3984_v26 = vadd.f32 %v8350_v50, %v3932_v17 }
 0x57b   : > { %3509 = vmatmul.mubr.bf16.gmra.mrb[100].mxu1 %v8266_v29  ;;  %4308 = vperm.xlu1 %5027, %v3974_v27  }
 0x57c   : > { %3518 = vmatprep.mubr.bf16.mxu1 %v8275_v45  ;;  %4353 = vperm.xlu0 %5028, %v3983_v12   ;;  %v3941_v2 = vpop.xlane.xlu0 %3940  ;;  %v3980_v45 = vadd.f32 %v8350_v50, %v3920_v39 }
 0x57d   : > { %v3938_v4 = vpop.xlane.xlu1 %3937  ;;  %v3987_v43 = vadd.f32 %v8350_v50, %v3941_v2 }
 0x57e   : > { %v3986_v35 = vadd.f32 %v8350_v50, %v3938_v4 }
 0x57f   : > { %4318 = vperm.xlu1 %5027, %v3976_v44  }
 0x580   : > { %4363 = vperm.xlu0 %5028, %v3985_v15   ;;  %v3947_v52 = vpop.xlane.xlu0 %3946 }
 0x581   : > { %v3944_v28 = vpop.xlane.xlu1 %3943  ;;  %v3989_v29 = vadd.f32 %v8350_v50, %v3947_v52 }
 0x582   : > { %v3988_v51 = vadd.f32 %v8350_v50, %v3944_v28 }
 0x583   : > { %3519 = vmatmul.mubr.bf16.gmra.mrb[104].mxu1 %v8282_v14  ;;  %4328 = vperm.xlu1 %5027, %v3978_v49  }
 0x584   : > { %3528 = vmatprep.mubr.bf16.mxu1 %v8290_v16  ;;  %4373 = vperm.xlu0 %5028, %v3987_v43   ;;  %v3953_v46 = vpop.xlane.xlu0 %3952 }
 0x585   : > { %v3950_v61 = vpop.xlane.xlu1 %3949  ;;  %v3991_v20 = vadd.f32 %v8350_v50, %v3953_v46 }
 0x587   : > { %4338 = vperm.xlu1 %5027, %v3980_v45  }
 0x588   : > { %4383 = vperm.xlu0 %5028, %v3989_v29   ;;  %v3959_v14 = vpop.xlane.xlu0 %3958 }
 0x589   : > { %v3956_v57 = vpop.xlane.xlu1 %3955  ;;  %v3993_v16 = vadd.f32 %v8350_v50, %v3959_v14 }
 0x58a   : > { %v3992_v53 = vadd.f32 %v8350_v50, %v3956_v57 }
 0x58b   : > { %3529 = vmatmul.mubr.bf16.gmra.mrb[108].mxu1 %v8298_v1  ;;  %4348 = vperm.xlu1 %5027, %v3982_v54  }
 0x58c   : > { %3538 = vmatprep.mubr.bf16.mxu1 %v8339_v10  ;;  %4393 = vperm.xlu0 %5028, %v3991_v20   ;;  %v3990_v10 = vadd.f32 %v8350_v50, %v3950_v61 }
 0x58d   : > { %v3962_v6 = vpop.xlane.xlu1 %3961 }
 0x58e   : > { %v3994_v36 = vadd.f32 %v8350_v50, %v3962_v6 }
 0x58f   : > { %4358 = vperm.xlu1 %5027, %v3984_v26  }
 0x590   : > { %4403 = vperm.xlu0 %5028, %v3993_v16  }
 0x593   : > { %3539 = vmatmul.mubr.bf16.gmra.mrb[112].mxu1 %v8341_v48  ;;  %4368 = vperm.xlu1 %5027, %v3986_v35  }
 0x594   : > { %3548 = vmatprep.mubr.bf16.mxu1 %v8359_v5 }
 0x595   : > { %v4035_v1 = vpop.permute.xlu1 %4034 }
 0x597   : > { %4378 = vperm.xlu1 %5027, %v3988_v51  }
 0x599   : > { %v8477_v9 = vpop.permute.xlu1 %4039 }
 0x59b   : > { %3549 = vmatmul.mubr.bf16.gmra.mrb[116].mxu1 %v8361_v21  ;;  %4388 = vperm.xlu1 %5027, %v3990_v10  }
 0x59c   : > { %3558 = vmatprep.mubr.bf16.mxu1 %v8373_v30  ;;  %v4030_v30 = vpop.permute.xlu0 %4029 }
 0x59d   : > { %v8483_v48 = vpop.permute.xlu1 %4044 }
 0x59f   : > { %4398 = vperm.xlu1 %5027, %v3992_v53  }
 0x5a1   : > { %v8487_v5 = vpop.permute.xlu1 %4049 }
 0x5a3   : > { %3559 = vmatmul.mubr.bf16.gmra.mrb[120].mxu1 %v8375_v41  ;;  %4408 = vperm.xlu1 %5027, %v3994_v36  }
 0x5a4   : > { %3568 = vmatprep.mubr.bf16.mxu1 %v8386_v58 }
 0x5a5   : > { %v8490_v47 = vpop.permute.xlu1 %4054  ;;  %v8498_v32 = vpop.permute.xlu0 %4074 }
 0x5a9   : > { %v8492_v21 = vpop.permute.xlu1 %4059  ;;  %v8502_v41 = vpop.permute.xlu0 %4084 }
 0x5ab   : > { %3569 = vmatmul.mubr.bf16.gmra.mrb[124].mxu1 %v8388_v3 }
 0x5ad   : > { %v8494_v31 = vpop.permute.xlu1 %4064  ;;  %v8506_v19 = vpop.permute.xlu0 %4094 }
 0x5b1   : > { %v8496_v50 = vpop.permute.xlu1 %4069  ;;  %v8510_v23 = vpop.permute.xlu0 %4104 }
 0x5b5   : > { %v8500_v40 = vpop.permute.xlu1 %4079  ;;  %v8514_v25 = vpop.permute.xlu0 %4114 }
 0x5b9   : > { %v8504_v58 = vpop.permute.xlu1 %4089  ;;  %v8518_v33 = vpop.permute.xlu0 %4124 }
 0x5bd   : > { %v8508_v3 = vpop.permute.xlu1 %4099  ;;  %v8522_v42 = vpop.permute.xlu0 %4134 }
 0x5c1   : > { %v8512_v13 = vpop.permute.xlu1 %4109  ;;  %v8526_v11 = vpop.permute.xlu0 %4144 }
 0x5c5   : > { %v8516_v60 = vpop.permute.xlu1 %4119  ;;  %v8530_v18 = vpop.permute.xlu0 %4154 }
 0x5c9   : > { %v8520_v63 = vpop.permute.xlu1 %4129  ;;  %v8534_v0 = vpop.permute.xlu0 %4164 }
 0x5cd   : > { %v8524_v34 = vpop.permute.xlu1 %4139  ;;  %v8538_v8 = vpop.permute.xlu0 %4174 }
 0x5d1   : > { %v8528_v56 = vpop.permute.xlu1 %4149  ;;  %v8542_v39 = vpop.permute.xlu0 %4184 }
 0x5d5   : > { %v8532_v62 = vpop.permute.xlu1 %4159 }
 0x5d6   : > { %v4259_v2 = vpop.permute.xlu0 %4258 }
 0x5d9   : > { %v8536_v38 = vpop.permute.xlu1 %4169 }
 0x5dd   : > { %v8540_v24 = vpop.permute.xlu1 %4179 }
 0x5e2   : > { %v4254_v59 = vpop.permute.xlu1 %4253 }
 0x5e6   : > { %v4264_v52 = vpop.permute.xlu1 %4263 }
 0x5ea   : > { %v4269_v14 = vpop.permute.xlu1 %4268 }
 0x606   : > { %v3420_v55 = vpop.f32.mrb[64].mxu1 }
 0x607   : > { %v4187_v37 = vmul.f32 %v4030_v30, %v3420_v55  ;;  %v3422_v22 = vpop.f32.mrb[65].mxu1  ;;  %v4279_v55 = vpop.permute.xlu1 %4278 }
 0x608   : > { %v4188_v12 = vmul.f32 %v4030_v30, %v3422_v22  ;;  %v3424_v7 = vpop.f32.mrb[66].mxu1 }
 0x609   : > { %v4411_v27 = vadd.f32 %v4254_v59, %v4187_v37  ;;  %v4189_v17 = vmul.f32 %v4035_v1, %v3424_v7  ;;  %v3426_v15 = vpop.f32.mrb[67].mxu1 }
 0x60a   : > { %v4412_v44 = vadd.f32 %v4254_v59, %v4188_v12  ;;  %v4190_v4 = vmul.f32 %v4035_v1, %v3426_v15 }
 0x60b   : > { %4475 = vst [vmem:[%s8546_s21] sm:$0xff] %v4411_v27  ;;  %v4413_v43 = vadd.f32 %v4259_v2, %v4189_v17 }
 0x60c   : > { %4476 = vst [vmem:[%s8546_s21 + $0x8] sm:$0xff] %v4412_v44  ;;  %v4414_v49 = vadd.f32 %v4259_v2, %v4190_v4 }
 0x60d   : > { %4477 = vst [vmem:[%s8546_s21 + $0x10] sm:$0xff] %v4413_v43 }
 0x60e   : > { %4478 = vst [vmem:[%s8546_s21 + $0x18] sm:$0xff] %v4414_v49  ;;  %v3430_v28 = vpop.f32.mrb[68].mxu1 }
 0x60f   : > { %v4191_v29 = vmul.f32 %v8477_v9, %v3430_v28  ;;  %v3432_v45 = vpop.f32.mrb[69].mxu1 }
 0x610   : > { %v4192_v61 = vmul.f32 %v8477_v9, %v3432_v45  ;;  %v3434_v46 = vpop.f32.mrb[70].mxu1  ;;  %v4274_v9 = vpop.permute.xlu0 %4273 }
 0x611   : > { %v4415_v20 = vadd.f32 %v4264_v52, %v4191_v29  ;;  %v4193_v54 = vmul.f32 %v8483_v48, %v3434_v46  ;;  %v3436_v57 = vpop.f32.mrb[71].mxu1 }
 0x612   : > { %v4416_v16 = vadd.f32 %v4264_v52, %v4192_v61  ;;  %v4194_v26 = vmul.f32 %v8483_v48, %v3436_v57  ;;  %v4289_v52 = vpop.permute.xlu1 %4288 }
 0x613   : > { %4479 = vst [vmem:[%s8546_s21 + $0x20] sm:$0xff] %v4415_v20  ;;  %v4417_v35 = vadd.f32 %v4269_v14, %v4193_v54 }
 0x614   : > { %4480 = vst [vmem:[%s8546_s21 + $0x28] sm:$0xff] %v4416_v16  ;;  %v4418_v6 = vadd.f32 %v4269_v14, %v4194_v26  ;;  %v4284_v15 = vpop.permute.xlu0 %4283 }
 0x615   : > { %4481 = vst [vmem:[%s8546_s21 + $0x30] sm:$0xff] %v4417_v35 }
 0x616   : > { %4482 = vst [vmem:[%s8546_s21 + $0x38] sm:$0xff] %v4418_v6  ;;  %v3440_v51 = vpop.f32.mrb[72].mxu1  ;;  %v4299_v26 = vpop.permute.xlu1 %4298 }
 0x617   : > { %v4195_v1 = vmul.f32 %v8487_v5, %v3440_v51  ;;  %v3442_v10 = vpop.f32.mrb[73].mxu1 }
 0x618   : > { %v4196_v53 = vmul.f32 %v8487_v5, %v3442_v10  ;;  %v3444_v36 = vpop.f32.mrb[74].mxu1  ;;  %v4294_v20 = vpop.permute.xlu0 %4293 }
 0x619   : > { %v4419_v30 = vadd.f32 %v4274_v9, %v4195_v1  ;;  %v4197_v48 = vmul.f32 %v8490_v47, %v3444_v36  ;;  %v3446_v59 = vpop.f32.mrb[75].mxu1 }
 0x61a   : > { %v4420_v37 = vadd.f32 %v4274_v9, %v4196_v53  ;;  %v4198_v22 = vmul.f32 %v8490_v47, %v3446_v59 }
 0x61b   : > { %4483 = vst [vmem:[%s8546_s21 + $0x40] sm:$0xff] %v4419_v30  ;;  %v4421_v12 = vadd.f32 %v4279_v55, %v4197_v48 }
 0x61c   : > { %4484 = vst [vmem:[%s8546_s21 + $0x48] sm:$0xff] %v4420_v37  ;;  %v4422_v7 = vadd.f32 %v4279_v55, %v4198_v22  ;;  %v4304_v53 = vpop.permute.xlu0 %4303  ;;  %v4309_v55 = vpop.permute.xlu1 %4308 }
 0x61d   : > { %4485 = vst [vmem:[%s8546_s21 + $0x50] sm:$0xff] %v4421_v12 }
 0x61e   : > { %4486 = vst [vmem:[%s8546_s21 + $0x58] sm:$0xff] %v4422_v7  ;;  %v3450_v27 = vpop.f32.mrb[76].mxu1 }
 0x61f   : > { %v4199_v5 = vmul.f32 %v8492_v21, %v3450_v27  ;;  %v3452_v17 = vpop.f32.mrb[77].mxu1 }
 0x620   : > { %v4200_v2 = vmul.f32 %v8492_v21, %v3452_v17  ;;  %v3454_v44 = vpop.f32.mrb[78].mxu1  ;;  %v4314_v17 = vpop.permute.xlu0 %4313 }
 0x621   : > { %v4423_v4 = vadd.f32 %v4284_v15, %v4199_v5  ;;  %v4201_v47 = vmul.f32 %v8494_v31, %v3454_v44  ;;  %v3456_v43 = vpop.f32.mrb[79].mxu1 }
 0x622   : > { %v4424_v49 = vadd.f32 %v4284_v15, %v4200_v2  ;;  %v4202_v28 = vmul.f32 %v8494_v31, %v3456_v43 }
 0x623   : > { %4487 = vst [vmem:[%s8546_s21 + $0x60] sm:$0xff] %v4423_v4  ;;  %v4425_v29 = vadd.f32 %v4289_v52, %v4201_v47  ;;  %v4319_v47 = vpop.permute.xlu1 %4318 }
 0x624   : > { %4488 = vst [vmem:[%s8546_s21 + $0x68] sm:$0xff] %v4424_v49  ;;  %v4426_v45 = vadd.f32 %v4289_v52, %v4202_v28 }
 0x625   : > { %4489 = vst [vmem:[%s8546_s21 + $0x70] sm:$0xff] %v4425_v29 }
 0x626   : > { %4490 = vst [vmem:[%s8546_s21 + $0x78] sm:$0xff] %v4426_v45  ;;  %v3460_v61 = vpop.f32.mrb[80].mxu1 }
 0x627   : > { %v4203_v21 = vmul.f32 %v8496_v50, %v3460_v61  ;;  %v3462_v46 = vpop.f32.mrb[81].mxu1  ;;  %v4324_v61 = vpop.permute.xlu0 %4323 }
 0x628   : > { %v4204_v54 = vmul.f32 %v8496_v50, %v3462_v46  ;;  %v3464_v57 = vpop.f32.mrb[82].mxu1 }
 0x629   : > { %v4427_v14 = vadd.f32 %v4294_v20, %v4203_v21  ;;  %v4205_v31 = vmul.f32 %v8498_v32, %v3464_v57  ;;  %v3466_v16 = vpop.f32.mrb[83].mxu1  ;;  %v4329_v57 = vpop.permute.xlu1 %4328 }
 0x62a   : > { %v4428_v35 = vadd.f32 %v4294_v20, %v4204_v54  ;;  %v4206_v6 = vmul.f32 %v8498_v32, %v3466_v16 }
 0x62b   : > { %4491 = vst [vmem:[%s8546_s21 + $0x80] sm:$0xff] %v4427_v14  ;;  %v4429_v51 = vadd.f32 %v4299_v26, %v4205_v31 }
 0x62c   : > { %4492 = vst [vmem:[%s8546_s21 + $0x88] sm:$0xff] %v4428_v35  ;;  %v4430_v1 = vadd.f32 %v4299_v26, %v4206_v6 }
 0x62d   : > { %4493 = vst [vmem:[%s8546_s21 + $0x90] sm:$0xff] %v4429_v51  ;;  %v4334_v51 = vpop.permute.xlu0 %4333 }
 0x62e   : > { %4494 = vst [vmem:[%s8546_s21 + $0x98] sm:$0xff] %v4430_v1  ;;  %v3470_v10 = vpop.f32.mrb[84].mxu1 }
 0x62f   : > { %v4207_v50 = vmul.f32 %v8500_v40, %v3470_v10  ;;  %v3472_v9 = vpop.f32.mrb[85].mxu1 }
 0x630   : > { %v4208_v36 = vmul.f32 %v8500_v40, %v3472_v9  ;;  %v3474_v30 = vpop.f32.mrb[86].mxu1 }
 0x631   : > { %v4431_v48 = vadd.f32 %v4304_v53, %v4207_v50  ;;  %v4209_v32 = vmul.f32 %v8502_v41, %v3474_v30  ;;  %v3476_v59 = vpop.f32.mrb[87].mxu1 }
 0x632   : > { %v4432_v37 = vadd.f32 %v4304_v53, %v4208_v36  ;;  %v4210_v22 = vmul.f32 %v8502_v41, %v3476_v59  ;;  %v4339_v53 = vpop.permute.xlu1 %4338 }
 0x633   : > { %4495 = vst [vmem:[%s8546_s21 + $0xa0] sm:$0xff] %v4431_v48  ;;  %v4433_v12 = vadd.f32 %v4309_v55, %v4209_v32 }
 0x634   : > { %4496 = vst [vmem:[%s8546_s21 + $0xa8] sm:$0xff] %v4432_v37  ;;  %v4434_v7 = vadd.f32 %v4309_v55, %v4210_v22  ;;  %v4344_v37 = vpop.permute.xlu0 %4343 }
 0x635   : > { %4497 = vst [vmem:[%s8546_s21 + $0xb0] sm:$0xff] %v4433_v12 }
 0x636   : > { %4498 = vst [vmem:[%s8546_s21 + $0xb8] sm:$0xff] %v4434_v7  ;;  %v3480_v27 = vpop.f32.mrb[88].mxu1 }
 0x637   : > { %v4211_v40 = vmul.f32 %v8504_v58, %v3480_v27  ;;  %v3482_v5 = vpop.f32.mrb[89].mxu1 }
 0x638   : > { %v4212_v15 = vmul.f32 %v8504_v58, %v3482_v5  ;;  %v3484_v2 = vpop.f32.mrb[90].mxu1 }
 0x639   : > { %v4435_v44 = vadd.f32 %v4314_v17, %v4211_v40  ;;  %v4213_v41 = vmul.f32 %v8506_v19, %v3484_v2  ;;  %v3486_v4 = vpop.f32.mrb[91].mxu1  ;;  %v4349_v40 = vpop.permute.xlu1 %4348 }
 0x63a   : > { %v4436_v43 = vadd.f32 %v4314_v17, %v4212_v15  ;;  %v4214_v52 = vmul.f32 %v8506_v19, %v3486_v4  ;;  %v4354_v4 = vpop.permute.xlu0 %4353 }
 0x63b   : > { %4499 = vst [vmem:[%s8546_s21 + $0xc0] sm:$0xff] %v4435_v44  ;;  %v4437_v49 = vadd.f32 %v4319_v47, %v4213_v41 }
 0x63c   : > { %4500 = vst [vmem:[%s8546_s21 + $0xc8] sm:$0xff] %v4436_v43  ;;  %v4438_v28 = vadd.f32 %v4319_v47, %v4214_v52 }
 0x63d   : > { %4501 = vst [vmem:[%s8546_s21 + $0xd0] sm:$0xff] %v4437_v49 }
 0x63e   : > { %4502 = vst [vmem:[%s8546_s21 + $0xd8] sm:$0xff] %v4438_v28  ;;  %v3490_v29 = vpop.f32.mrb[92].mxu1  ;;  %v4359_v28 = vpop.permute.xlu1 %4358 }
 0x63f   : > { %v4215_v58 = vmul.f32 %v8508_v3, %v3490_v29  ;;  %v3492_v45 = vpop.f32.mrb[93].mxu1 }
 0x640   : > { %v4216_v21 = vmul.f32 %v8508_v3, %v3492_v45  ;;  %v3494_v46 = vpop.f32.mrb[94].mxu1 }
 0x641   : > { %v4439_v20 = vadd.f32 %v4324_v61, %v4215_v58  ;;  %v4217_v19 = vmul.f32 %v8510_v23, %v3494_v46  ;;  %v3496_v54 = vpop.f32.mrb[95].mxu1 }
 0x642   : > { %v4440_v14 = vadd.f32 %v4324_v61, %v4216_v21  ;;  %v4218_v31 = vmul.f32 %v8510_v23, %v3496_v54 }
 0x643   : > { %4503 = vst [vmem:[%s8546_s21 + $0xe0] sm:$0xff] %v4439_v20  ;;  %v4441_v16 = vadd.f32 %v4329_v57, %v4217_v19  ;;  %v4364_v20 = vpop.permute.xlu0 %4363 }
 0x644   : > { %4504 = vst [vmem:[%s8546_s21 + $0xe8] sm:$0xff] %v4440_v14  ;;  %v4442_v26 = vadd.f32 %v4329_v57, %v4218_v31  ;;  %v4369_v31 = vpop.permute.xlu1 %4368 }
 0x645   : > { %4505 = vst [vmem:[%s8546_s21 + $0xf0] sm:$0xff] %v4441_v16 }
 0x646   : > { %4506 = vst [vmem:[%s8546_s21 + $0xf8] sm:$0xff] %v4442_v26  ;;  %v3500_v35 = vpop.f32.mrb[96].mxu1 }
 0x647   : > { %v4219_v3 = vmul.f32 %v8512_v13, %v3500_v35  ;;  %v3502_v6 = vpop.f32.mrb[97].mxu1 }
 0x648   : > { %v4220_v1 = vmul.f32 %v8512_v13, %v3502_v6  ;;  %v3504_v10 = vpop.f32.mrb[98].mxu1 }
 0x649   : > { %v4443_v50 = vadd.f32 %v4334_v51, %v4219_v3  ;;  %v4221_v23 = vmul.f32 %v8514_v25, %v3504_v10  ;;  %v3506_v9 = vpop.f32.mrb[99].mxu1 }
 0x64a   : > { %v4444_v36 = vadd.f32 %v4334_v51, %v4220_v1  ;;  %v4222_v30 = vmul.f32 %v8514_v25, %v3506_v9  ;;  %v4374_v1 = vpop.permute.xlu0 %4373 }
 0x64b   : > { %4507 = vst [vmem:[%s8546_s21 + $0x100] sm:$0xff] %v4443_v50  ;;  %v4445_v48 = vadd.f32 %v4339_v53, %v4221_v23 }
 0x64c   : > { %4508 = vst [vmem:[%s8546_s21 + $0x108] sm:$0xff] %v4444_v36  ;;  %v4446_v32 = vadd.f32 %v4339_v53, %v4222_v30  ;;  %v4379_v53 = vpop.permute.xlu1 %4378 }
 0x64d   : > { %4509 = vst [vmem:[%s8546_s21 + $0x110] sm:$0xff] %v4445_v48 }
 0x64e   : > { %4510 = vst [vmem:[%s8546_s21 + $0x118] sm:$0xff] %v4446_v32  ;;  %v3510_v59 = vpop.f32.mrb[100].mxu1 }
 0x64f   : > { %v4223_v13 = vmul.f32 %v8516_v60, %v3510_v59  ;;  %v3512_v55 = vpop.f32.mrb[101].mxu1 }
 0x650   : > { %v4224_v22 = vmul.f32 %v8516_v60, %v3512_v55  ;;  %v3514_v12 = vpop.f32.mrb[102].mxu1  ;;  %v4384_v55 = vpop.permute.xlu0 %4383 }
 0x651   : > { %v4447_v7 = vadd.f32 %v4344_v37, %v4223_v13  ;;  %v4225_v25 = vmul.f32 %v8518_v33, %v3514_v12  ;;  %v3516_v27 = vpop.f32.mrb[103].mxu1 }
 0x652   : > { %v4448_v5 = vadd.f32 %v4344_v37, %v4224_v22  ;;  %v4226_v17 = vmul.f32 %v8518_v33, %v3516_v27 }
 0x653   : > { %4511 = vst [vmem:[%s8546_s21 + $0x120] sm:$0xff] %v4447_v7  ;;  %v4449_v15 = vadd.f32 %v4349_v40, %v4225_v25  ;;  %v4389_v25 = vpop.permute.xlu1 %4388 }
 0x654   : > { %4512 = vst [vmem:[%s8546_s21 + $0x128] sm:$0xff] %v4448_v5  ;;  %v4450_v2 = vadd.f32 %v4349_v40, %v4226_v17 }
 0x655   : > { %4513 = vst [vmem:[%s8546_s21 + $0x130] sm:$0xff] %v4449_v15 }
 0x656   : > { %4514 = vst [vmem:[%s8546_s21 + $0x138] sm:$0xff] %v4450_v2  ;;  %v3520_v44 = vpop.f32.mrb[104].mxu1 }
 0x657   : > { %v4227_v60 = vmul.f32 %v8520_v63, %v3520_v44  ;;  %v3522_v41 = vpop.f32.mrb[105].mxu1  ;;  %v4394_v44 = vpop.permute.xlu0 %4393 }
 0x658   : > { %v4228_v47 = vmul.f32 %v8520_v63, %v3522_v41  ;;  %v3524_v43 = vpop.f32.mrb[106].mxu1 }
 0x659   : > { %v4451_v52 = vadd.f32 %v4354_v4, %v4227_v60  ;;  %v4229_v33 = vmul.f32 %v8522_v42, %v3524_v43  ;;  %v3526_v49 = vpop.f32.mrb[107].mxu1  ;;  %v4399_v43 = vpop.permute.xlu1 %4398 }
 0x65a   : > { %v4452_v29 = vadd.f32 %v4354_v4, %v4228_v47  ;;  %v4230_v58 = vmul.f32 %v8522_v42, %v3526_v49 }
 0x65b   : > { %4515 = vst [vmem:[%s8546_s21 + $0x140] sm:$0xff] %v4451_v52  ;;  %v4453_v45 = vadd.f32 %v4359_v28, %v4229_v33 }
 0x65c   : > { %4516 = vst [vmem:[%s8546_s21 + $0x148] sm:$0xff] %v4452_v29  ;;  %v4454_v61 = vadd.f32 %v4359_v28, %v4230_v58 }
 0x65d   : > { %4517 = vst [vmem:[%s8546_s21 + $0x150] sm:$0xff] %v4453_v45  ;;  %v4404_v45 = vpop.permute.xlu0 %4403 }
 0x65e   : > { %4518 = vst [vmem:[%s8546_s21 + $0x158] sm:$0xff] %v4454_v61  ;;  %v3530_v21 = vpop.f32.mrb[108].mxu1 }
 0x65f   : > { %v4231_v63 = vmul.f32 %v8524_v34, %v3530_v21  ;;  %v3532_v46 = vpop.f32.mrb[109].mxu1 }
 0x660   : > { %v4232_v19 = vmul.f32 %v8524_v34, %v3532_v46  ;;  %v3534_v54 = vpop.f32.mrb[110].mxu1 }
 0x661   : > { %v4455_v57 = vadd.f32 %v4364_v20, %v4231_v63  ;;  %v4233_v42 = vmul.f32 %v8526_v11, %v3534_v54  ;;  %v3536_v14 = vpop.f32.mrb[111].mxu1 }
 0x662   : > { %v4456_v16 = vadd.f32 %v4364_v20, %v4232_v19  ;;  %v4234_v26 = vmul.f32 %v8526_v11, %v3536_v14  ;;  %v4409_v20 = vpop.permute.xlu1 %4408 }
 0x663   : > { %4519 = vst [vmem:[%s8546_s21 + $0x160] sm:$0xff] %v4455_v57  ;;  %v4457_v35 = vadd.f32 %v4369_v31, %v4233_v42 }
 0x664   : > { %4520 = vst [vmem:[%s8546_s21 + $0x168] sm:$0xff] %v4456_v16  ;;  %v4458_v3 = vadd.f32 %v4369_v31, %v4234_v26 }
 0x665   : > { %4521 = vst [vmem:[%s8546_s21 + $0x170] sm:$0xff] %v4457_v35 }
 0x666   : > { %4522 = vst [vmem:[%s8546_s21 + $0x178] sm:$0xff] %v4458_v3  ;;  %v3540_v6 = vpop.f32.mrb[112].mxu1 }
 0x667   : > { %v4235_v34 = vmul.f32 %v8528_v56, %v3540_v6  ;;  %v3542_v51 = vpop.f32.mrb[113].mxu1 }
 0x668   : > { %v4236_v10 = vmul.f32 %v8528_v56, %v3542_v51  ;;  %v3544_v50 = vpop.f32.mrb[114].mxu1 }
 0x669   : > { %v4459_v23 = vadd.f32 %v4374_v1, %v4235_v34  ;;  %v4237_v11 = vmul.f32 %v8530_v18, %v3544_v50  ;;  %v3546_v9 = vpop.f32.mrb[115].mxu1 }
 0x66a   : > { %v4460_v36 = vadd.f32 %v4374_v1, %v4236_v10  ;;  %v4238_v30 = vmul.f32 %v8530_v18, %v3546_v9 }
 0x66b   : > { %4523 = vst [vmem:[%s8546_s21 + $0x180] sm:$0xff] %v4459_v23  ;;  %v4461_v48 = vadd.f32 %v4379_v53, %v4237_v11 }
 0x66c   : > { %4524 = vst [vmem:[%s8546_s21 + $0x188] sm:$0xff] %v4460_v36  ;;  %v4462_v32 = vadd.f32 %v4379_v53, %v4238_v30 }
 0x66d   : > { %4525 = vst [vmem:[%s8546_s21 + $0x190] sm:$0xff] %v4461_v48 }
 0x66e   : > { %4526 = vst [vmem:[%s8546_s21 + $0x198] sm:$0xff] %v4462_v32  ;;  %v3550_v59 = vpop.f32.mrb[116].mxu1 }
 0x66f   : > { %v4239_v56 = vmul.f32 %v8532_v62, %v3550_v59  ;;  %v3552_v13 = vpop.f32.mrb[117].mxu1 }
 0x670   : > { %v4240_v37 = vmul.f32 %v8532_v62, %v3552_v13  ;;  %v3554_v22 = vpop.f32.mrb[118].mxu1 }
 0x671   : > { %v4463_v12 = vadd.f32 %v4384_v55, %v4239_v56  ;;  %v4241_v18 = vmul.f32 %v8534_v0, %v3554_v22  ;;  %v3556_v7 = vpop.f32.mrb[119].mxu1 }
 0x672   : > { %v4464_v27 = vadd.f32 %v4384_v55, %v4240_v37  ;;  %v4242_v40 = vmul.f32 %v8534_v0, %v3556_v7 }
 0x673   : > { %4527 = vst [vmem:[%s8546_s21 + $0x1a0] sm:$0xff] %v4463_v12  ;;  %v4465_v5 = vadd.f32 %v4389_v25, %v4241_v18 }
 0x674   : > { %4528 = vst [vmem:[%s8546_s21 + $0x1a8] sm:$0xff] %v4464_v27  ;;  %v4466_v17 = vadd.f32 %v4389_v25, %v4242_v40 }
 0x675   : > { %4529 = vst [vmem:[%s8546_s21 + $0x1b0] sm:$0xff] %v4465_v5 }
 0x676   : > { %4530 = vst [vmem:[%s8546_s21 + $0x1b8] sm:$0xff] %v4466_v17  ;;  %v3560_v15 = vpop.f32.mrb[120].mxu1 }
 0x677   : > { %v4243_v62 = vmul.f32 %v8536_v38, %v3560_v15  ;;  %v3562_v2 = vpop.f32.mrb[121].mxu1 }
 0x678   : > { %v4244_v60 = vmul.f32 %v8536_v38, %v3562_v2  ;;  %v3564_v41 = vpop.f32.mrb[122].mxu1 }
 0x679   : > { %v4467_v4 = vadd.f32 %v4394_v44, %v4243_v62  ;;  %v4245_v0 = vmul.f32 %v8538_v8, %v3564_v41  ;;  %v3566_v47 = vpop.f32.mrb[123].mxu1 }
 0x67a   : > { %v4468_v52 = vadd.f32 %v4394_v44, %v4244_v60  ;;  %v4246_v33 = vmul.f32 %v8538_v8, %v3566_v47 }
 0x67b   : > { %4531 = vst [vmem:[%s8546_s21 + $0x1c0] sm:$0xff] %v4467_v4  ;;  %v4469_v49 = vadd.f32 %v4399_v43, %v4245_v0 }
 0x67c   : > { %4532 = vst [vmem:[%s8546_s21 + $0x1c8] sm:$0xff] %v4468_v52  ;;  %v4470_v28 = vadd.f32 %v4399_v43, %v4246_v33 }
 0x67d   : > { %4533 = vst [vmem:[%s8546_s21 + $0x1d0] sm:$0xff] %v4469_v49 }
 0x67e   : > { %4534 = vst [vmem:[%s8546_s21 + $0x1d8] sm:$0xff] %v4470_v28  ;;  %v3570_v29 = vpop.f32.mrb[124].mxu1 }
 0x67f   : > { %v4247_v38 = vmul.f32 %v8540_v24, %v3570_v29  ;;  %v3572_v58 = vpop.f32.mrb[125].mxu1 }
 0x680   : > { %v4248_v61 = vmul.f32 %v8540_v24, %v3572_v58  ;;  %v3574_v21 = vpop.f32.mrb[126].mxu1 }
 0x681   : > { %v4471_v8 = vadd.f32 %v4404_v45, %v4247_v38  ;;  %v4249_v63 = vmul.f32 %v8542_v39, %v3574_v21  ;;  %v3576_v46 = vpop.f32.mrb[127].mxu1 }
 0x682   : > { %v4472_v19 = vadd.f32 %v4404_v45, %v4248_v61  ;;  %v4250_v54 = vmul.f32 %v8542_v39, %v3576_v46 }
 0x683   : > { %4535 = vst [vmem:[%s8546_s21 + $0x1e0] sm:$0xff] %v4471_v8  ;;  %v4473_v57 = vadd.f32 %v4409_v20, %v4249_v63 }
 0x684   : > { %4536 = vst [vmem:[%s8546_s21 + $0x1e8] sm:$0xff] %v4472_v19  ;;  %v4474_v24 = vadd.f32 %v4409_v20, %v4250_v54 }
 0x685   : > { %4537 = vst [vmem:[%s8546_s21 + $0x1f0] sm:$0xff] %v4473_v57 }
 0x686   : > { %4538 = vst [vmem:[%s8546_s21 + $0x1f8] sm:$0xff] %v4474_v24 }
 0x687   : > { %5572 = shalt.err (!%p5569_p4)
}
 0x688   : > { %s5573_s26 = scalar_lea.hbm %s8674_s19, 8192  ;;  %s5577_s14 = scalar_lea.hbm %s8731_s8, 16384 }
 0x689   : > { %p5574_p9 = scmp.ne.s32.totalorder %s8674_s19, %s5573_s26  ;;  %p5578_p8 = scmp.lt.u32.totalorder %s8674_s19, %s8731_s8 }
 0x68a   : > { %p5579_p13 = scmp.lt.u32.totalorder %s5577_s14, %s5573_s26  ;;  %p5581_p10 = scmp.lt.u32.totalorder %s5573_s26, %s8674_s19 }
 0x68b   : > { %p5575_p0 = pnand %p5574_p9, %p5838_p5 }
 0x68c   : > { %p5580_p6 = por %p5579_p13, %p5578_p8 }
 0x68d   : > { %p5576_p11 = pneg %p5575_p0 }
 0x68e   : > { %p5582_p3 = por %p5581_p10, %p5580_p6 }
 0x690   : > { %p5583_p7 = pnand %p5582_p3, %p5576_p11 }
 0x692   : > { %5586 = shalt.err (!%p5583_p7)
}
 0x693   : > { %s5646_s27 = smov 256   ;;  %s5647_s11 = smov 16  }
 0x694   : > { %4954 = dma.vmem_to_hbm [thread:$0]  (%p5838_p5), %s8676_s15, 8192, %s8674_s19, %s4540_s9, %s5646_s27, %s5646_s27, %s5647_s11  }
 0x695 PF: > { %s9442_s13 = sld [smem:[#allocation15_spill]]  ;;  %s9443_s23 = sld [smem:[#allocation16_spill]] }
 0x696   : > { %p9445_p1 = scmp.ge.s32.totalorder %s5633_s30, 2 }
 0x69b   : > { %s4569_s18 = sand.u32 1, %s9442_s13   ;;  %p9444_p12 = scmp.ne.s32.totalorder %s9443_s23, 0 }
 0x69c   : > { %s4570_s22 = scalar_lea.sflag [#allocation4], %s4569_s18 }
 0x69d   : > { %p4971_p2 = pnand %p9445_p1, %p9444_p12 }
 0x69f   : > { %5616 = dma.done.wait (!%p4971_p2), %s4570_s22, 8192  }
 0x6a0   : > { %5618 = vsyncadd (!%p4971_p2), %s4570_s22, 4294959104  ;;  %p23_p4 = scmp.ge.s32.totalorder %s5806_s25, 4   ;;  %s9446_s27 = smov %s5625_s28 }
 0x6a1   : > { %s9447_s28 = smov %s5629_s29  ;;  %s9448_s29 = smov %s5834_s16 }
 0x6a2   : > { %s9449_s30 = smov %s5806_s25  ;;  %25 = sbr.rel (!%p23_p4) target bundleno = 9 (0x9), region = 110 }
 0x6a9   :  { %4575 = vsyncpa [#allocation3], 1 }
 0x6aa   :  { %4577 = vsyncpa [#allocation3 + $0x1], 1 }
 0x6ab   :  { %4578 = vsyncpa [#allocation6], 1 }
 0x6ac   :  { %4579 = vsyncpa [#allocation9], 1 }
 0x6ad   :  { %4580 = vsyncpa [#allocation4], 1 }
 0x6ae   :  { %4582 = vsyncpa [#allocation4 + $0x1], 1 }

</bundles_post_ra>
